<compile_context>
chip_gen: v7x
topology: tpu7x:2x2x1
jax: 0.10.0
libtpu: 0.0.40
codegen_flags: <defaults>
</compile_context>

<pallas_src>
import math

import jax
import jax.numpy as jnp
from jax.experimental import pallas as pl
from jax.experimental.pallas import tpu as pltpu


# ----------------------------------------------------------------------------- kernel


def _make_fc_kernel(num_blocks):
    """Build the fused FCModel forward kernel for a fixed number of residual blocks."""

    def kernel(*refs):
        x_ref = refs[0]
        w_in_ref, s_in_ref = refs[1], refs[2]
        blk_refs = refs[3:3 + 4 * num_blocks]
        w_out_ref = refs[3 + 4 * num_blocks]
        b_out_ref = refs[4 + 4 * num_blocks]
        o_ref = refs[5 + 4 * num_blocks]

        # ---- Input projection + folded BN1 + ReLU (dropout = identity in eval) ----
        x = x_ref[...].astype(jnp.bfloat16)
        y = jnp.dot(x, w_in_ref[...], preferred_element_type=jnp.float32)
        y = jnp.maximum(y + s_in_ref[...], 0.0)

        # ---- Residual blocks (unrolled at trace time; weights VMEM-resident) ----
        for b in range(num_blocks):
            wa_ref, sa_ref, wb_ref, sb_ref = blk_refs[4 * b: 4 * b + 4]
            t = jnp.dot(y.astype(jnp.bfloat16), wa_ref[...],
                        preferred_element_type=jnp.float32)
            t = jnp.maximum(t + sa_ref[...], 0.0)
            t = jnp.dot(t.astype(jnp.bfloat16), wb_ref[...],
                        preferred_element_type=jnp.float32)
            t = jnp.maximum(t + sb_ref[...], 0.0)
            y = y + t

        # ---- Output projection + sigmoid (exp on EUP, approx reciprocal on EUP) ----
        z = jnp.dot(y.astype(jnp.bfloat16), w_out_ref[...],
                    preferred_element_type=jnp.float32)
        z = z + b_out_ref[...]
        o_ref[...] = pl.reciprocal(1.0 + jnp.exp(-z), approx=True).astype(o_ref.dtype)

    return kernel


# ----------------------------------------------------------------------------- helpers


def _round_up(v, m):
    return ((v + m - 1) // m) * m


def _tensorcores_per_chip():
    """2 TensorCores per chip on v7x; 1 on v5e/v6e (heuristic, perf-only)."""
    try:
        kind = jax.devices()[0].device_kind.lower()
    except Exception:
        return 1
    return 2 if "v7" in kind else 1


def _vmem_cap_bytes():
    """Per-generation VMEM cap (~75% of physical) for vmem_limit_bytes."""
    try:
        phys = pltpu.get_tpu_info().vmem_capacity_bytes
    except Exception:
        phys = 64 << 20  # conservative (v7x-sized) fallback
    return int(phys * 0.75)


def _vmem_limit_bytes(tm, f_in, h, f_out_p, num_blocks, weight_bufs):
    """Derive the scoped VMEM limit from the actual resident + pipelined sizes."""
    wt = 2 * (f_in * h + 2 * num_blocks * h * h + h * f_out_p) * weight_bufs  # bf16 weights
    vec = 4 * ((1 + 2 * num_blocks) * h + f_out_p) * weight_bufs              # f32 shift vecs
    io = 2 * 4 * tm * (f_in + f_out_p)                                        # dbl-buffered x/out
    act = 4 * 4 * tm * h                                                      # f32 y/t temporaries
    need = int((wt + vec + io + act) * 1.5) + (4 << 20)
    cap = _vmem_cap_bytes()
    return min(cap, max(need, 32 << 20))


# ----------------------------------------------------------------------------- wrapper


def fc_forward(x, params, *, tm=None, single_buffer_weights=True):
    n, f_in = x.shape
    h = params["w_in"].shape[1]
    f_out = params["w_out"].shape[1]
    num_blocks = len(params["blocks"])

    # Row tile: grid=1 on 1-TC chips; keep grid a multiple of the TC count on v7x.
    ntc = _tensorcores_per_chip()
    if tm is None:
        tm = n // ntc if (ntc > 1 and n % ntc == 0 and n // ntc >= 8) else n
        tm = min(tm, 1024)
    assert n % tm == 0, "wrapper assumes the batch is divisible by the row tile"

    # Lane-dense output: zero-pad f_out up to a multiple of 128 (unmasked stores).
    f_out_p = _round_up(f_out, 128)
    w_out, b_out = params["w_out"], params["b_out"]
    if f_out_p != f_out:
        w_out = jnp.pad(w_out, ((0, 0), (0, f_out_p - f_out)))
        b_out = jnp.pad(b_out, ((0, 0), (0, f_out_p - f_out)))

    args = [x, params["w_in"], params["s_in"]]
    for blk in params["blocks"]:
        args += [blk["wa"], blk["sa"], blk["wb"], blk["sb"]]
    args += [w_out, b_out]

    weight_elems = f_in * h + 2 * num_blocks * h * h + h * f_out_p
    flops = 2 * n * weight_elems
    bytes_accessed = (n * f_in * 4 + n * f_out_p * 4          # x in, out (f32)
                      + weight_elems * 2                       # bf16 weights (resident)
                      + ((1 + 2 * num_blocks) * h + f_out_p) * 4)

    def build(sbw):
        def row_tiled(shape):
            return pl.BlockSpec(shape, lambda i: (i, 0))

        def resident(shape):
            # Same block for every grid step -> DMA'd once, stays in VMEM.
            if sbw:
                return pl.BlockSpec(shape, lambda i: (0, 0),
                                    pipeline_mode=pl.Buffered(1))
            return pl.BlockSpec(shape, lambda i: (0, 0))

        in_specs = [row_tiled((tm, f_in)),
                    resident((f_in, h)), resident((1, h))]
        for _ in range(num_blocks):
            in_specs += [resident((h, h)), resident((1, h)),
                         resident((h, h)), resident((1, h))]
        in_specs += [resident((h, f_out_p)), resident((1, f_out_p))]

        return pl.pallas_call(
            _make_fc_kernel(num_blocks),
            out_shape=jax.ShapeDtypeStruct((n, f_out_p), jnp.float32),
            grid=(n // tm,),
            in_specs=in_specs,
            out_specs=row_tiled((tm, f_out_p)),
            compiler_params=pltpu.CompilerParams(
                dimension_semantics=("parallel",),
                vmem_limit_bytes=_vmem_limit_bytes(
                    tm, f_in, h, f_out_p, num_blocks, 1 if sbw else 2),
            ),
            cost_estimate=pl.CostEstimate(
                flops=flops,
                transcendentals=n * f_out_p,
                bytes_accessed=bytes_accessed,
            ),
        )

    try:
        out = build(single_buffer_weights)(*args)
    except Exception:
        # Fallback: default (double) buffering of the resident weights.
        out = build(False)(*args)

    return out[:, :f_out] if f_out_p != f_out else out


# ----------------------------------------------------------------------------- params / ref


def init_params(key, *, input_size, linear_size, output_size, num_blocks):
    """Deterministic params matching the PyTorch module __init__ (eval-mode BN folded)."""
    eps = 1e-5
    f_in, h, f_out = input_size, linear_size, output_size
    keys = iter(jax.random.split(key, 4 + 4 * num_blocks))

    def kaiming(k, out_dim, in_dim):
        return jax.random.normal(k, (out_dim, in_dim), jnp.float32) * math.sqrt(2.0 / in_dim)

    def lin_bias(k, out_dim, fan_in):
        bound = 1.0 / math.sqrt(fan_in)
        return jax.random.uniform(k, (out_dim,), jnp.float32, -bound, bound)

    # BN eval stats: mean=0, var=1, gamma=1, beta=0  =>  scale = 1/sqrt(1+eps), shift = scale*b
    bn_scale = 1.0 / math.sqrt(1.0 + eps)

    # FCModel.w1 : Linear(f_in -> h) followed by BN1; fold BN scale into weight columns.
    w = kaiming(next(keys), h, f_in)
    b = lin_bias(next(keys), h, f_in)
    w_in = (w.T * bn_scale).astype(jnp.bfloat16)
    s_in = (b * bn_scale).reshape(1, h)

    blocks = []
    for _ in range(num_blocks):
        wa = kaiming(next(keys), h, h)
        ba = lin_bias(next(keys), h, h)
        wb = kaiming(next(keys), h, h)
        bb = lin_bias(next(keys), h, h)
        blocks.append(dict(
            wa=(wa.T * bn_scale).astype(jnp.bfloat16),
            sa=(ba * bn_scale).reshape(1, h),
            wb=(wb.T * bn_scale).astype(jnp.bfloat16),
            sb=(bb * bn_scale).reshape(1, h),
        ))

    # FCModel.w2 : Linear(h -> f_out), no BN, followed by sigmoid.
    w = kaiming(next(keys), f_out, h)
    b = lin_bias(next(keys), f_out, h)
    w_out = w.T.astype(jnp.bfloat16)
    b_out = b.reshape(1, f_out)

    return dict(w_in=w_in, s_in=s_in, blocks=blocks, w_out=w_out, b_out=b_out)


def reference(x, params):
    """Plain-JAX reference mirroring the kernel's bf16-operand / f32-accumulate math."""
    bf = jnp.bfloat16
    y = jnp.dot(x.astype(bf), params["w_in"], preferred_element_type=jnp.float32)
    y = jnp.maximum(y + params["s_in"], 0.0)
    for blk in params["blocks"]:
        t = jnp.dot(y.astype(bf), blk["wa"], preferred_element_type=jnp.float32)
        t = jnp.maximum(t + blk["sa"], 0.0)
        t = jnp.dot(t.astype(bf), blk["wb"], preferred_element_type=jnp.float32)
        t = jnp.maximum(t + blk["sb"], 0.0)
        y = y + t
    z = jnp.dot(y.astype(bf), params["w_out"], preferred_element_type=jnp.float32)
    z = z + params["b_out"]
    return jax.nn.sigmoid(z)


# ----------------------------------------------------------------------------- demo


if __name__ == "__main__":
    INPUT_SIZE = 32     # FCModel default input_size
    LINEAR_SIZE = 256   # scaled-down hidden width (lane-aligned, matches MXU N/K)
    OUTPUT_SIZE = 64    # FCModel default output_size (padded to 128 inside the wrapper)
    NUM_BLOCKS = 2      # FCModel default num_blocks
    BATCH = 128

    key = jax.random.PRNGKey(0)
    kx, kp = jax.random.split(key)
    x = jax.random.normal(kx, (BATCH, INPUT_SIZE), jnp.float32)
    params = init_params(kp, input_size=INPUT_SIZE, linear_size=LINEAR_SIZE,
                         output_size=OUTPUT_SIZE, num_blocks=NUM_BLOCKS)

    # tm chosen automatically: full batch (grid=1) on v5e/v6e, batch/2 (grid=2) on v7x.
    out = fc_forward(x, params)
    out = jax.block_until_ready(out)

    ref = reference(x, params)
    assert out.shape == (BATCH, OUTPUT_SIZE)
    assert jnp.allclose(out, ref, atol=1e-2, rtol=1e-2), "mismatch vs reference"

    # TODO(synk): training-mode BatchNorm (batch statistics), stochastic Dropout and
    # the optional use_multichar embedding path are not implemented; the kernel
    # reproduces the deterministic eval-mode forward with use_multichar=False.
    print("KERNEL_OK")
</pallas_src>

<mosaic_0001>
module attributes {stable_mosaic.version = 11 : i64} {
  func.func @kernel(%arg0: i32, %arg1: memref<128x32xf32, #tpu.memory_space<vmem>>, %arg2: memref<32x256xbf16, #tpu.memory_space<vmem>>, %arg3: memref<1x256xf32, #tpu.memory_space<vmem>>, %arg4: memref<256x256xbf16, #tpu.memory_space<vmem>>, %arg5: memref<1x256xf32, #tpu.memory_space<vmem>>, %arg6: memref<256x256xbf16, #tpu.memory_space<vmem>>, %arg7: memref<1x256xf32, #tpu.memory_space<vmem>>, %arg8: memref<256x256xbf16, #tpu.memory_space<vmem>>, %arg9: memref<1x256xf32, #tpu.memory_space<vmem>>, %arg10: memref<256x256xbf16, #tpu.memory_space<vmem>>, %arg11: memref<1x256xf32, #tpu.memory_space<vmem>>, %arg12: memref<256x128xbf16, #tpu.memory_space<vmem>>, %arg13: memref<1x128xf32, #tpu.memory_space<vmem>>, %arg14: memref<128x128xf32, #tpu.memory_space<vmem>>) attributes {dimension_semantics = [#tpu.dimension_semantics<parallel>], iteration_bounds = array<i64: 1>, scalar_prefetch = 0 : i64, scratch_operands = 0 : i64, tpu.core_type = #tpu.core_type<tc>, window_params = [{transform_indices = @transform_0, window_bounds = array<i64: 128, 32>}, {pipeline_mode = #tpu.pipeline_mode<synchronous>, transform_indices = @transform_1, window_bounds = array<i64: 32, 256>}, {pipeline_mode = #tpu.pipeline_mode<synchronous>, transform_indices = @transform_2, window_bounds = array<i64: 1, 256>}, {pipeline_mode = #tpu.pipeline_mode<synchronous>, transform_indices = @transform_3, window_bounds = array<i64: 256, 256>}, {pipeline_mode = #tpu.pipeline_mode<synchronous>, transform_indices = @transform_4, window_bounds = array<i64: 1, 256>}, {pipeline_mode = #tpu.pipeline_mode<synchronous>, transform_indices = @transform_5, window_bounds = array<i64: 256, 256>}, {pipeline_mode = #tpu.pipeline_mode<synchronous>, transform_indices = @transform_6, window_bounds = array<i64: 1, 256>}, {pipeline_mode = #tpu.pipeline_mode<synchronous>, transform_indices = @transform_7, window_bounds = array<i64: 256, 256>}, {pipeline_mode = #tpu.pipeline_mode<synchronous>, transform_indices = @transform_8, window_bounds = array<i64: 1, 256>}, {pipeline_mode = #tpu.pipeline_mode<synchronous>, transform_indices = @transform_9, window_bounds = array<i64: 256, 256>}, {pipeline_mode = #tpu.pipeline_mode<synchronous>, transform_indices = @transform_10, window_bounds = array<i64: 1, 256>}, {pipeline_mode = #tpu.pipeline_mode<synchronous>, transform_indices = @transform_11, window_bounds = array<i64: 256, 128>}, {pipeline_mode = #tpu.pipeline_mode<synchronous>, transform_indices = @transform_12, window_bounds = array<i64: 1, 128>}, {transform_indices = @transform_13, window_bounds = array<i64: 128, 128>}]} {
    %c0 = arith.constant 0 : index
    %c0_0 = arith.constant 0 : index
    %0 = vector.load %arg1[%c0, %c0_0] : memref<128x32xf32, #tpu.memory_space<vmem>>, vector<128x32xf32>
    %1 = arith.truncf %0 : vector<128x32xf32> to vector<128x32xbf16>
    %c0_1 = arith.constant 0 : index
    %c0_2 = arith.constant 0 : index
    %2 = vector.load %arg2[%c0_1, %c0_2] : memref<32x256xbf16, #tpu.memory_space<vmem>>, vector<32x256xbf16>
    %cst = arith.constant dense<0.000000e+00> : vector<128x256xf32>
    %3 = tpu.matmul %1, %2, %cst {dimension_numbers = #tpu.dot_dimension_numbers<[1], [0], [0], [1], [0, 0, 1, 1], [], []>} : vector<128x32xbf16>, vector<32x256xbf16>, vector<128x256xf32> -> vector<128x256xf32>
    %c0_3 = arith.constant 0 : index
    %c0_4 = arith.constant 0 : index
    %4 = vector.load %arg3[%c0_3, %c0_4] : memref<1x256xf32, #tpu.memory_space<vmem>>, vector<1x256xf32>
    %5 = vector.broadcast %4 : vector<1x256xf32> to vector<128x256xf32>
    %6 = arith.addf %3, %5 : vector<128x256xf32>
    %cst_5 = arith.constant 0.000000e+00 : f32
    %7 = vector.broadcast %cst_5 : f32 to vector<128x256xf32>
    %8 = arith.maximumf %6, %7 : vector<128x256xf32>
    %9 = arith.truncf %8 : vector<128x256xf32> to vector<128x256xbf16>
    %c0_6 = arith.constant 0 : index
    %c0_7 = arith.constant 0 : index
    %10 = vector.load %arg4[%c0_6, %c0_7] : memref<256x256xbf16, #tpu.memory_space<vmem>>, vector<256x256xbf16>
    %cst_8 = arith.constant dense<0.000000e+00> : vector<128x256xf32>
    %11 = tpu.matmul %9, %10, %cst_8 {dimension_numbers = #tpu.dot_dimension_numbers<[1], [0], [0], [1], [0, 0, 1, 1], [], []>} : vector<128x256xbf16>, vector<256x256xbf16>, vector<128x256xf32> -> vector<128x256xf32>
    %c0_9 = arith.constant 0 : index
    %c0_10 = arith.constant 0 : index
    %12 = vector.load %arg5[%c0_9, %c0_10] : memref<1x256xf32, #tpu.memory_space<vmem>>, vector<1x256xf32>
    %13 = vector.broadcast %12 : vector<1x256xf32> to vector<128x256xf32>
    %14 = arith.addf %11, %13 : vector<128x256xf32>
    %cst_11 = arith.constant 0.000000e+00 : f32
    %15 = vector.broadcast %cst_11 : f32 to vector<128x256xf32>
    %16 = arith.maximumf %14, %15 : vector<128x256xf32>
    %17 = arith.truncf %16 : vector<128x256xf32> to vector<128x256xbf16>
    %c0_12 = arith.constant 0 : index
    %c0_13 = arith.constant 0 : index
    %18 = vector.load %arg6[%c0_12, %c0_13] : memref<256x256xbf16, #tpu.memory_space<vmem>>, vector<256x256xbf16>
    %cst_14 = arith.constant dense<0.000000e+00> : vector<128x256xf32>
    %19 = tpu.matmul %17, %18, %cst_14 {dimension_numbers = #tpu.dot_dimension_numbers<[1], [0], [0], [1], [0, 0, 1, 1], [], []>} : vector<128x256xbf16>, vector<256x256xbf16>, vector<128x256xf32> -> vector<128x256xf32>
    %c0_15 = arith.constant 0 : index
    %c0_16 = arith.constant 0 : index
    %20 = vector.load %arg7[%c0_15, %c0_16] : memref<1x256xf32, #tpu.memory_space<vmem>>, vector<1x256xf32>
    %21 = vector.broadcast %20 : vector<1x256xf32> to vector<128x256xf32>
    %22 = arith.addf %19, %21 : vector<128x256xf32>
    %cst_17 = arith.constant 0.000000e+00 : f32
    %23 = vector.broadcast %cst_17 : f32 to vector<128x256xf32>
    %24 = arith.maximumf %22, %23 : vector<128x256xf32>
    %25 = arith.addf %8, %24 : vector<128x256xf32>
    %26 = arith.truncf %25 : vector<128x256xf32> to vector<128x256xbf16>
    %c0_18 = arith.constant 0 : index
    %c0_19 = arith.constant 0 : index
    %27 = vector.load %arg8[%c0_18, %c0_19] : memref<256x256xbf16, #tpu.memory_space<vmem>>, vector<256x256xbf16>
    %cst_20 = arith.constant dense<0.000000e+00> : vector<128x256xf32>
    %28 = tpu.matmul %26, %27, %cst_20 {dimension_numbers = #tpu.dot_dimension_numbers<[1], [0], [0], [1], [0, 0, 1, 1], [], []>} : vector<128x256xbf16>, vector<256x256xbf16>, vector<128x256xf32> -> vector<128x256xf32>
    %c0_21 = arith.constant 0 : index
    %c0_22 = arith.constant 0 : index
    %29 = vector.load %arg9[%c0_21, %c0_22] : memref<1x256xf32, #tpu.memory_space<vmem>>, vector<1x256xf32>
    %30 = vector.broadcast %29 : vector<1x256xf32> to vector<128x256xf32>
    %31 = arith.addf %28, %30 : vector<128x256xf32>
    %cst_23 = arith.constant 0.000000e+00 : f32
    %32 = vector.broadcast %cst_23 : f32 to vector<128x256xf32>
    %33 = arith.maximumf %31, %32 : vector<128x256xf32>
    %34 = arith.truncf %33 : vector<128x256xf32> to vector<128x256xbf16>
    %c0_24 = arith.constant 0 : index
    %c0_25 = arith.constant 0 : index
    %35 = vector.load %arg10[%c0_24, %c0_25] : memref<256x256xbf16, #tpu.memory_space<vmem>>, vector<256x256xbf16>
    %cst_26 = arith.constant dense<0.000000e+00> : vector<128x256xf32>
    %36 = tpu.matmul %34, %35, %cst_26 {dimension_numbers = #tpu.dot_dimension_numbers<[1], [0], [0], [1], [0, 0, 1, 1], [], []>} : vector<128x256xbf16>, vector<256x256xbf16>, vector<128x256xf32> -> vector<128x256xf32>
    %c0_27 = arith.constant 0 : index
    %c0_28 = arith.constant 0 : index
    %37 = vector.load %arg11[%c0_27, %c0_28] : memref<1x256xf32, #tpu.memory_space<vmem>>, vector<1x256xf32>
    %38 = vector.broadcast %37 : vector<1x256xf32> to vector<128x256xf32>
    %39 = arith.addf %36, %38 : vector<128x256xf32>
    %cst_29 = arith.constant 0.000000e+00 : f32
    %40 = vector.broadcast %cst_29 : f32 to vector<128x256xf32>
    %41 = arith.maximumf %39, %40 : vector<128x256xf32>
    %42 = arith.addf %25, %41 : vector<128x256xf32>
    %43 = arith.truncf %42 : vector<128x256xf32> to vector<128x256xbf16>
    %c0_30 = arith.constant 0 : index
    %c0_31 = arith.constant 0 : index
    %44 = vector.load %arg12[%c0_30, %c0_31] : memref<256x128xbf16, #tpu.memory_space<vmem>>, vector<256x128xbf16>
    %cst_32 = arith.constant dense<0.000000e+00> : vector<128x128xf32>
    %45 = tpu.matmul %43, %44, %cst_32 {dimension_numbers = #tpu.dot_dimension_numbers<[1], [0], [0], [1], [0, 0, 1, 1], [], []>} : vector<128x256xbf16>, vector<256x128xbf16>, vector<128x128xf32> -> vector<128x128xf32>
    %c0_33 = arith.constant 0 : index
    %c0_34 = arith.constant 0 : index
    %46 = vector.load %arg13[%c0_33, %c0_34] : memref<1x128xf32, #tpu.memory_space<vmem>>, vector<1x128xf32>
    %47 = vector.broadcast %46 : vector<1x128xf32> to vector<128x128xf32>
    %48 = arith.addf %45, %47 : vector<128x128xf32>
    %cst_35 = arith.constant 0.000000e+00 : f32
    %49 = vector.broadcast %cst_35 : f32 to vector<128x128xf32>
    %50 = arith.subf %49, %48 : vector<128x128xf32>
    %51 = math.exp %50 : vector<128x128xf32>
    %cst_36 = arith.constant 1.000000e+00 : f32
    %52 = vector.broadcast %cst_36 : f32 to vector<128x128xf32>
    %53 = arith.addf %52, %51 : vector<128x128xf32>
    %54 = tpu.reciprocal %53 {approx = true} : vector<128x128xf32> -> vector<128x128xf32>
    %c0_37 = arith.constant 0 : index
    %c0_38 = arith.constant 0 : index
    %55 = vector.load %arg14[%c0_37, %c0_38] : memref<128x128xf32, #tpu.memory_space<vmem>>, vector<128x128xf32>
    tpu.vector_store %arg14[%c0_37, %c0_38], %54 {strides = array<i32>} : memref<128x128xf32, #tpu.memory_space<vmem>>, vector<128x128xf32>,
    return
  }
  func.func @transform_0(%arg0: i32) -> (i32, i32) {
    %c0_i32 = arith.constant 0 : i32
    %c0_i32_0 = arith.constant 0 : i32
    return %arg0, %c0_i32 : i32, i32
  }
  func.func @transform_1(%arg0: i32) -> (i32, i32) {
    %c0_i32 = arith.constant 0 : i32
    %c0_i32_0 = arith.constant 0 : i32
    %c0_i32_1 = arith.constant 0 : i32
    return %c0_i32, %c0_i32_0 : i32, i32
  }
  func.func @transform_2(%arg0: i32) -> (i32, i32) {
    %c0_i32 = arith.constant 0 : i32
    %c0_i32_0 = arith.constant 0 : i32
    %c0_i32_1 = arith.constant 0 : i32
    return %c0_i32, %c0_i32_0 : i32, i32
  }
  func.func @transform_3(%arg0: i32) -> (i32, i32) {
    %c0_i32 = arith.constant 0 : i32
    %c0_i32_0 = arith.constant 0 : i32
    %c0_i32_1 = arith.constant 0 : i32
    return %c0_i32, %c0_i32_0 : i32, i32
  }
  func.func @transform_4(%arg0: i32) -> (i32, i32) {
    %c0_i32 = arith.constant 0 : i32
    %c0_i32_0 = arith.constant 0 : i32
    %c0_i32_1 = arith.constant 0 : i32
    return %c0_i32, %c0_i32_0 : i32, i32
  }
  func.func @transform_5(%arg0: i32) -> (i32, i32) {
    %c0_i32 = arith.constant 0 : i32
    %c0_i32_0 = arith.constant 0 : i32
    %c0_i32_1 = arith.constant 0 : i32
    return %c0_i32, %c0_i32_0 : i32, i32
  }
  func.func @transform_6(%arg0: i32) -> (i32, i32) {
    %c0_i32 = arith.constant 0 : i32
    %c0_i32_0 = arith.constant 0 : i32
    %c0_i32_1 = arith.constant 0 : i32
    return %c0_i32, %c0_i32_0 : i32, i32
  }
  func.func @transform_7(%arg0: i32) -> (i32, i32) {
    %c0_i32 = arith.constant 0 : i32
    %c0_i32_0 = arith.constant 0 : i32
    %c0_i32_1 = arith.constant 0 : i32
    return %c0_i32, %c0_i32_0 : i32, i32
  }
  func.func @transform_8(%arg0: i32) -> (i32, i32) {
    %c0_i32 = arith.constant 0 : i32
    %c0_i32_0 = arith.constant 0 : i32
    %c0_i32_1 = arith.constant 0 : i32
    return %c0_i32, %c0_i32_0 : i32, i32
  }
  func.func @transform_9(%arg0: i32) -> (i32, i32) {
    %c0_i32 = arith.constant 0 : i32
    %c0_i32_0 = arith.constant 0 : i32
    %c0_i32_1 = arith.constant 0 : i32
    return %c0_i32, %c0_i32_0 : i32, i32
  }
  func.func @transform_10(%arg0: i32) -> (i32, i32) {
    %c0_i32 = arith.constant 0 : i32
    %c0_i32_0 = arith.constant 0 : i32
    %c0_i32_1 = arith.constant 0 : i32
    return %c0_i32, %c0_i32_0 : i32, i32
  }
  func.func @transform_11(%arg0: i32) -> (i32, i32) {
    %c0_i32 = arith.constant 0 : i32
    %c0_i32_0 = arith.constant 0 : i32
    %c0_i32_1 = arith.constant 0 : i32
    return %c0_i32, %c0_i32_0 : i32, i32
  }
  func.func @transform_12(%arg0: i32) -> (i32, i32) {
    %c0_i32 = arith.constant 0 : i32
    %c0_i32_0 = arith.constant 0 : i32
    %c0_i32_1 = arith.constant 0 : i32
    return %c0_i32, %c0_i32_0 : i32, i32
  }
  func.func @transform_13(%arg0: i32) -> (i32, i32) {
    %c0_i32 = arith.constant 0 : i32
    %c0_i32_0 = arith.constant 0 : i32
    return %arg0, %c0_i32 : i32, i32
  }
}

module attributes {stable_mosaic.version = 11 : i64} {
  func.func @kernel(%arg0: i32, %arg1: memref<128x32xf32, #tpu.memory_space<vmem>>, %arg2: memref<32x256xbf16, #tpu.memory_space<vmem>>, %arg3: memref<1x256xf32, #tpu.memory_space<vmem>>, %arg4: memref<256x256xbf16, #tpu.memory_space<vmem>>, %arg5: memref<1x256xf32, #tpu.memory_space<vmem>>, %arg6: memref<256x256xbf16, #tpu.memory_space<vmem>>, %arg7: memref<1x256xf32, #tpu.memory_space<vmem>>, %arg8: memref<256x256xbf16, #tpu.memory_space<vmem>>, %arg9: memref<1x256xf32, #tpu.memory_space<vmem>>, %arg10: memref<256x256xbf16, #tpu.memory_space<vmem>>, %arg11: memref<1x256xf32, #tpu.memory_space<vmem>>, %arg12: memref<256x128xbf16, #tpu.memory_space<vmem>>, %arg13: memref<1x128xf32, #tpu.memory_space<vmem>>, %arg14: memref<128x128xf32, #tpu.memory_space<vmem>>) attributes {dimension_semantics = [#tpu.dimension_semantics<parallel>], iteration_bounds = array<i64: 1>, scalar_prefetch = 0 : i64, scratch_operands = 0 : i64, tpu.core_type = #tpu.core_type<tc>, window_params = [{transform_indices = @transform_0, window_bounds = array<i64: 128, 32>}, {pipeline_mode = #tpu.pipeline_mode<synchronous>, transform_indices = @transform_1, window_bounds = array<i64: 32, 256>}, {pipeline_mode = #tpu.pipeline_mode<synchronous>, transform_indices = @transform_2, window_bounds = array<i64: 1, 256>}, {pipeline_mode = #tpu.pipeline_mode<synchronous>, transform_indices = @transform_3, window_bounds = array<i64: 256, 256>}, {pipeline_mode = #tpu.pipeline_mode<synchronous>, transform_indices = @transform_4, window_bounds = array<i64: 1, 256>}, {pipeline_mode = #tpu.pipeline_mode<synchronous>, transform_indices = @transform_5, window_bounds = array<i64: 256, 256>}, {pipeline_mode = #tpu.pipeline_mode<synchronous>, transform_indices = @transform_6, window_bounds = array<i64: 1, 256>}, {pipeline_mode = #tpu.pipeline_mode<synchronous>, transform_indices = @transform_7, window_bounds = array<i64: 256, 256>}, {pipeline_mode = #tpu.pipeline_mode<synchronous>, transform_indices = @transform_8, window_bounds = array<i64: 1, 256>}, {pipeline_mode = #tpu.pipeline_mode<synchronous>, transform_indices = @transform_9, window_bounds = array<i64: 256, 256>}, {pipeline_mode = #tpu.pipeline_mode<synchronous>, transform_indices = @transform_10, window_bounds = array<i64: 1, 256>}, {pipeline_mode = #tpu.pipeline_mode<synchronous>, transform_indices = @transform_11, window_bounds = array<i64: 256, 128>}, {pipeline_mode = #tpu.pipeline_mode<synchronous>, transform_indices = @transform_12, window_bounds = array<i64: 1, 128>}, {transform_indices = @transform_13, window_bounds = array<i64: 128, 128>}]} {
    %c0 = arith.constant 0 : index
    %c0_0 = arith.constant 0 : index
    %0 = vector.load %arg1[%c0, %c0_0] : memref<128x32xf32, #tpu.memory_space<vmem>>, vector<128x32xf32>
    %1 = arith.truncf %0 : vector<128x32xf32> to vector<128x32xbf16>
    %c0_1 = arith.constant 0 : index
    %c0_2 = arith.constant 0 : index
    %2 = vector.load %arg2[%c0_1, %c0_2] : memref<32x256xbf16, #tpu.memory_space<vmem>>, vector<32x256xbf16>
    %cst = arith.constant dense<0.000000e+00> : vector<128x256xf32>
    %3 = tpu.matmul %1, %2, %cst {dimension_numbers = #tpu.dot_dimension_numbers<[1], [0], [0], [1], [0, 0, 1, 1], [], []>} : vector<128x32xbf16>, vector<32x256xbf16>, vector<128x256xf32> -> vector<128x256xf32>
    %c0_3 = arith.constant 0 : index
    %c0_4 = arith.constant 0 : index
    %4 = vector.load %arg3[%c0_3, %c0_4] : memref<1x256xf32, #tpu.memory_space<vmem>>, vector<1x256xf32>
    %5 = vector.broadcast %4 : vector<1x256xf32> to vector<128x256xf32>
    %6 = arith.addf %3, %5 : vector<128x256xf32>
    %cst_5 = arith.constant 0.000000e+00 : f32
    %7 = vector.broadcast %cst_5 : f32 to vector<128x256xf32>
    %8 = arith.maximumf %6, %7 : vector<128x256xf32>
    %9 = arith.truncf %8 : vector<128x256xf32> to vector<128x256xbf16>
    %c0_6 = arith.constant 0 : index
    %c0_7 = arith.constant 0 : index
    %10 = vector.load %arg4[%c0_6, %c0_7] : memref<256x256xbf16, #tpu.memory_space<vmem>>, vector<256x256xbf16>
    %cst_8 = arith.constant dense<0.000000e+00> : vector<128x256xf32>
    %11 = tpu.matmul %9, %10, %cst_8 {dimension_numbers = #tpu.dot_dimension_numbers<[1], [0], [0], [1], [0, 0, 1, 1], [], []>} : vector<128x256xbf16>, vector<256x256xbf16>, vector<128x256xf32> -> vector<128x256xf32>
    %c0_9 = arith.constant 0 : index
    %c0_10 = arith.constant 0 : index
    %12 = vector.load %arg5[%c0_9, %c0_10] : memref<1x256xf32, #tpu.memory_space<vmem>>, vector<1x256xf32>
    %13 = vector.broadcast %12 : vector<1x256xf32> to vector<128x256xf32>
    %14 = arith.addf %11, %13 : vector<128x256xf32>
    %cst_11 = arith.constant 0.000000e+00 : f32
    %15 = vector.broadcast %cst_11 : f32 to vector<128x256xf32>
    %16 = arith.maximumf %14, %15 : vector<128x256xf32>
    %17 = arith.truncf %16 : vector<128x256xf32> to vector<128x256xbf16>
    %c0_12 = arith.constant 0 : index
    %c0_13 = arith.constant 0 : index
    %18 = vector.load %arg6[%c0_12, %c0_13] : memref<256x256xbf16, #tpu.memory_space<vmem>>, vector<256x256xbf16>
    %cst_14 = arith.constant dense<0.000000e+00> : vector<128x256xf32>
    %19 = tpu.matmul %17, %18, %cst_14 {dimension_numbers = #tpu.dot_dimension_numbers<[1], [0], [0], [1], [0, 0, 1, 1], [], []>} : vector<128x256xbf16>, vector<256x256xbf16>, vector<128x256xf32> -> vector<128x256xf32>
    %c0_15 = arith.constant 0 : index
    %c0_16 = arith.constant 0 : index
    %20 = vector.load %arg7[%c0_15, %c0_16] : memref<1x256xf32, #tpu.memory_space<vmem>>, vector<1x256xf32>
    %21 = vector.broadcast %20 : vector<1x256xf32> to vector<128x256xf32>
    %22 = arith.addf %19, %21 : vector<128x256xf32>
    %cst_17 = arith.constant 0.000000e+00 : f32
    %23 = vector.broadcast %cst_17 : f32 to vector<128x256xf32>
    %24 = arith.maximumf %22, %23 : vector<128x256xf32>
    %25 = arith.addf %8, %24 : vector<128x256xf32>
    %26 = arith.truncf %25 : vector<128x256xf32> to vector<128x256xbf16>
    %c0_18 = arith.constant 0 : index
    %c0_19 = arith.constant 0 : index
    %27 = vector.load %arg8[%c0_18, %c0_19] : memref<256x256xbf16, #tpu.memory_space<vmem>>, vector<256x256xbf16>
    %cst_20 = arith.constant dense<0.000000e+00> : vector<128x256xf32>
    %28 = tpu.matmul %26, %27, %cst_20 {dimension_numbers = #tpu.dot_dimension_numbers<[1], [0], [0], [1], [0, 0, 1, 1], [], []>} : vector<128x256xbf16>, vector<256x256xbf16>, vector<128x256xf32> -> vector<128x256xf32>
    %c0_21 = arith.constant 0 : index
    %c0_22 = arith.constant 0 : index
    %29 = vector.load %arg9[%c0_21, %c0_22] : memref<1x256xf32, #tpu.memory_space<vmem>>, vector<1x256xf32>
    %30 = vector.broadcast %29 : vector<1x256xf32> to vector<128x256xf32>
    %31 = arith.addf %28, %30 : vector<128x256xf32>
    %cst_23 = arith.constant 0.000000e+00 : f32
    %32 = vector.broadcast %cst_23 : f32 to vector<128x256xf32>
    %33 = arith.maximumf %31, %32 : vector<128x256xf32>
    %34 = arith.truncf %33 : vector<128x256xf32> to vector<128x256xbf16>
    %c0_24 = arith.constant 0 : index
    %c0_25 = arith.constant 0 : index
    %35 = vector.load %arg10[%c0_24, %c0_25] : memref<256x256xbf16, #tpu.memory_space<vmem>>, vector<256x256xbf16>
    %cst_26 = arith.constant dense<0.000000e+00> : vector<128x256xf32>
    %36 = tpu.matmul %34, %35, %cst_26 {dimension_numbers = #tpu.dot_dimension_numbers<[1], [0], [0], [1], [0, 0, 1, 1], [], []>} : vector<128x256xbf16>, vector<256x256xbf16>, vector<128x256xf32> -> vector<128x256xf32>
    %c0_27 = arith.constant 0 : index
    %c0_28 = arith.constant 0 : index
    %37 = vector.load %arg11[%c0_27, %c0_28] : memref<1x256xf32, #tpu.memory_space<vmem>>, vector<1x256xf32>
    %38 = vector.broadcast %37 : vector<1x256xf32> to vector<128x256xf32>
    %39 = arith.addf %36, %38 : vector<128x256xf32>
    %cst_29 = arith.constant 0.000000e+00 : f32
    %40 = vector.broadcast %cst_29 : f32 to vector<128x256xf32>
    %41 = arith.maximumf %39, %40 : vector<128x256xf32>
    %42 = arith.addf %25, %41 : vector<128x256xf32>
    %43 = arith.truncf %42 : vector<128x256xf32> to vector<128x256xbf16>
    %c0_30 = arith.constant 0 : index
    %c0_31 = arith.constant 0 : index
    %44 = vector.load %arg12[%c0_30, %c0_31] : memref<256x128xbf16, #tpu.memory_space<vmem>>, vector<256x128xbf16>
    %cst_32 = arith.constant dense<0.000000e+00> : vector<128x128xf32>
    %45 = tpu.matmul %43, %44, %cst_32 {dimension_numbers = #tpu.dot_dimension_numbers<[1], [0], [0], [1], [0, 0, 1, 1], [], []>} : vector<128x256xbf16>, vector<256x128xbf16>, vector<128x128xf32> -> vector<128x128xf32>
    %c0_33 = arith.constant 0 : index
    %c0_34 = arith.constant 0 : index
    %46 = vector.load %arg13[%c0_33, %c0_34] : memref<1x128xf32, #tpu.memory_space<vmem>>, vector<1x128xf32>
    %47 = vector.broadcast %46 : vector<1x128xf32> to vector<128x128xf32>
    %48 = arith.addf %45, %47 : vector<128x128xf32>
    %cst_35 = arith.constant 0.000000e+00 : f32
    %49 = vector.broadcast %cst_35 : f32 to vector<128x128xf32>
    %50 = arith.subf %49, %48 : vector<128x128xf32>
    %51 = math.exp %50 : vector<128x128xf32>
    %cst_36 = arith.constant 1.000000e+00 : f32
    %52 = vector.broadcast %cst_36 : f32 to vector<128x128xf32>
    %53 = arith.addf %52, %51 : vector<128x128xf32>
    %54 = tpu.reciprocal %53 {approx = true} : vector<128x128xf32> -> vector<128x128xf32>
    %c0_37 = arith.constant 0 : index
    %c0_38 = arith.constant 0 : index
    %55 = vector.load %arg14[%c0_37, %c0_38] : memref<128x128xf32, #tpu.memory_space<vmem>>, vector<128x128xf32>
    tpu.vector_store %arg14[%c0_37, %c0_38], %54 {strides = array<i32>} : memref<128x128xf32, #tpu.memory_space<vmem>>, vector<128x128xf32>,
    return
  }
  func.func @transform_0(%arg0: i32) -> (i32, i32) {
    %c0_i32 = arith.constant 0 : i32
    %c0_i32_0 = arith.constant 0 : i32
    return %arg0, %c0_i32 : i32, i32
  }
  func.func @transform_1(%arg0: i32) -> (i32, i32) {
    %c0_i32 = arith.constant 0 : i32
    %c0_i32_0 = arith.constant 0 : i32
    %c0_i32_1 = arith.constant 0 : i32
    return %c0_i32, %c0_i32_0 : i32, i32
  }
  func.func @transform_2(%arg0: i32) -> (i32, i32) {
    %c0_i32 = arith.constant 0 : i32
    %c0_i32_0 = arith.constant 0 : i32
    %c0_i32_1 = arith.constant 0 : i32
    return %c0_i32, %c0_i32_0 : i32, i32
  }
  func.func @transform_3(%arg0: i32) -> (i32, i32) {
    %c0_i32 = arith.constant 0 : i32
    %c0_i32_0 = arith.constant 0 : i32
    %c0_i32_1 = arith.constant 0 : i32
    return %c0_i32, %c0_i32_0 : i32, i32
  }
  func.func @transform_4(%arg0: i32) -> (i32, i32) {
    %c0_i32 = arith.constant 0 : i32
    %c0_i32_0 = arith.constant 0 : i32
    %c0_i32_1 = arith.constant 0 : i32
    return %c0_i32, %c0_i32_0 : i32, i32
  }
  func.func @transform_5(%arg0: i32) -> (i32, i32) {
    %c0_i32 = arith.constant 0 : i32
    %c0_i32_0 = arith.constant 0 : i32
    %c0_i32_1 = arith.constant 0 : i32
    return %c0_i32, %c0_i32_0 : i32, i32
  }
  func.func @transform_6(%arg0: i32) -> (i32, i32) {
    %c0_i32 = arith.constant 0 : i32
    %c0_i32_0 = arith.constant 0 : i32
    %c0_i32_1 = arith.constant 0 : i32
    return %c0_i32, %c0_i32_0 : i32, i32
  }
  func.func @transform_7(%arg0: i32) -> (i32, i32) {
    %c0_i32 = arith.constant 0 : i32
    %c0_i32_0 = arith.constant 0 : i32
    %c0_i32_1 = arith.constant 0 : i32
    return %c0_i32, %c0_i32_0 : i32, i32
  }
  func.func @transform_8(%arg0: i32) -> (i32, i32) {
    %c0_i32 = arith.constant 0 : i32
    %c0_i32_0 = arith.constant 0 : i32
    %c0_i32_1 = arith.constant 0 : i32
    return %c0_i32, %c0_i32_0 : i32, i32
  }
  func.func @transform_9(%arg0: i32) -> (i32, i32) {
    %c0_i32 = arith.constant 0 : i32
    %c0_i32_0 = arith.constant 0 : i32
    %c0_i32_1 = arith.constant 0 : i32
    return %c0_i32, %c0_i32_0 : i32, i32
  }
  func.func @transform_10(%arg0: i32) -> (i32, i32) {
    %c0_i32 = arith.constant 0 : i32
    %c0_i32_0 = arith.constant 0 : i32
    %c0_i32_1 = arith.constant 0 : i32
    return %c0_i32, %c0_i32_0 : i32, i32
  }
  func.func @transform_11(%arg0: i32) -> (i32, i32) {
    %c0_i32 = arith.constant 0 : i32
    %c0_i32_0 = arith.constant 0 : i32
    %c0_i32_1 = arith.constant 0 : i32
    return %c0_i32, %c0_i32_0 : i32, i32
  }
  func.func @transform_12(%arg0: i32) -> (i32, i32) {
    %c0_i32 = arith.constant 0 : i32
    %c0_i32_0 = arith.constant 0 : i32
    %c0_i32_1 = arith.constant 0 : i32
    return %c0_i32, %c0_i32_0 : i32, i32
  }
  func.func @transform_13(%arg0: i32) -> (i32, i32) {
    %c0_i32 = arith.constant 0 : i32
    %c0_i32_0 = arith.constant 0 : i32
    return %arg0, %c0_i32 : i32, i32
  }
}

</mosaic_0001>

<bundles_post_ra>
// kernel: tpu_custom_call.1
= control target key start
LH: loop header
LB: loop body
LE: loop exit
PB: predicated region body
PF: predicated region fallthrough
CT: control target
= control target key end

     0   :  { %18 = vsyncpa [#allocation3], 0  ;;  %s3740_s0 = inlined_call_operand.vmem [shape: f32[128,32], index: 0, kind: input, shape index: {}]   ;;  %s3741_s1 = inlined_call_operand.vmem [shape: bf16[32,256], index: 1, kind: input, shape index: {}]   ;;  %s3742_s2 = inlined_call_operand.vmem [shape: f32[1,256], index: 2, kind: input, shape index: {}]   ;;  %s3743_s3 = inlined_call_operand.hbm [shape: bf16[256,256], index: 3, kind: input, shape index: {}]   ;;  %s3744_s4 = inlined_call_operand.vmem [shape: f32[1,256], index: 4, kind: input, shape index: {}]   ;;  %s3745_s5 = inlined_call_operand.hbm [shape: bf16[256,256], index: 5, kind: input, shape index: {}]   ;;  %s3746_s6 = inlined_call_operand.vmem [shape: f32[1,256], index: 6, kind: input, shape index: {}]   ;;  %s3747_s7 = inlined_call_operand.hbm [shape: bf16[256,256], index: 7, kind: input, shape index: {}]   ;;  %s3748_s8 = inlined_call_operand.vmem [shape: f32[1,256], index: 8, kind: input, shape index: {}]   ;;  %s3749_s9 = inlined_call_operand.hbm [shape: bf16[256,256], index: 9, kind: input, shape index: {}]   ;;  %s3750_s10 = inlined_call_operand.vmem [shape: f32[1,256], index: 10, kind: input, shape index: {}]   ;;  %s3751_s11 = inlined_call_operand.vmem [shape: bf16[256,128], index: 11, kind: input, shape index: {}]   ;;  %s3752_s12 = inlined_call_operand.vmem [shape: f32[1,128], index: 12, kind: input, shape index: {}]   ;;  %s3753_s13 = inlined_call_operand.hbm [shape: f32[128,128], index: 13, kind: output, shape index: {}]  }
   0x1   :  { %19 = vsyncpa [#allocation6], 0 }
   0x2   :  { %20 = vsyncpa [#allocation9], 0 }
   0x3   :  { %21 = vsyncpa [#allocation4], 0  ;;  %s2859_s25 = smov [#allocation5]   ;;  %s2860_s27 = smov [#allocation2]  }
   0x4   :  { %s47_s26 = sshll.u32 %s2859_s25, 4  ;;  %s33_s28 = sshll.u32 %s2860_s27, 4  ;;  %s48_s26 = int_to_ptr.vmem [resolvable:$true] %s47_s26  ;;  %s2937_s28 = int_to_ptr.vmem [resolvable:$true] %s33_s28 }
   0x5   :  { %s2741_s14 = scalar_lea.hbm %s3745_s5, 4096 }
   0x6   :  { %p2742_p0 = scmp.ne.s32.totalorder %s3745_s5, %s2741_s14  ;;  %p2745_p1 = scmp.lt.u32.totalorder %s2741_s14, %s3745_s5 }
   0x8   :  { %p2747_p2 = pnand %p2745_p1, %p2742_p0 }
   0xa   :  { %2750 = shalt.err (!%p2747_p2)
}
   0xb   :  { %s2751_s19 = scalar_lea.vmem %s48_s26, 4096  ;;  %p2756_p4 = scmp.lt.s32.totalorder %s48_s26, %s48_s26 }
   0xc   :  { %p2752_p3 = scmp.ne.s32.totalorder %s48_s26, %s2751_s19  ;;  %p2757_p5 = scmp.lt.s32.totalorder %s2751_s19, %s2751_s19 }
   0xe   :  { %p2758_p6 = por %p2757_p5, %p2756_p4 }
  0x10   :  { %p2759_p7 = pnand %p2758_p6, %p2752_p3 }
  0x12   :  { %2762 = shalt.err (!%p2759_p7)
}
  0x13   :  { %s2861_s20 = smov 128   ;;  %s2862_s21 = smov 8  }
  0x14   :  { %53 = dma.hbm_to_vmem [thread:$0]  %s3745_s5, 4096, %s48_s26, [#allocation6], %s2861_s20, %s2861_s20, %s2862_s21  }
  0x15   :  { %s2763_s27 = scalar_lea.hbm %s3743_s3, 4096 }
  0x16   :  { %p2764_p8 = scmp.ne.s32.totalorder %s3743_s3, %s2763_s27  ;;  %p2767_p9 = scmp.lt.u32.totalorder %s2763_s27, %s3743_s3 }
  0x18   :  { %p2769_p10 = pnand %p2767_p9, %p2764_p8 }
  0x1a   :  { %2772 = shalt.err (!%p2769_p10)
}
  0x1b   :  { %s2773_s16 = scalar_lea.vmem %s2937_s28, 4096  ;;  %p2778_p12 = scmp.lt.s32.totalorder %s2937_s28, %s2937_s28 }
  0x1c   :  { %p2774_p11 = scmp.ne.s32.totalorder %s2937_s28, %s2773_s16  ;;  %p2779_p13 = scmp.lt.s32.totalorder %s2773_s16, %s2773_s16 }
  0x1e   :  { %p2780_p0 = por %p2779_p13, %p2778_p12 }
  0x20   :  { %p2781_p1 = pnand %p2780_p0, %p2774_p11 }
  0x22   :  { %2784 = shalt.err (!%p2781_p1)
}
  0x23   :  { %39 = dma.hbm_to_vmem [thread:$0]  %s3743_s3, 4096, %s2937_s28, [#allocation3], %s2861_s20, %s2861_s20, %s2862_s21  }
  0x24   :  { %s2863_s17 = smov [#allocation7]   ;;  %s2864_s19 = smov [#allocation8]  }
  0x25   :  { %s61_s18 = sshll.u32 %s2863_s17, 4  ;;  %s75_s22 = sshll.u32 %s2864_s19, 4  ;;  %s62_s18 = int_to_ptr.vmem [resolvable:$true] %s61_s18  ;;  %s2974_s22 = int_to_ptr.vmem [resolvable:$true] %s75_s22 }
  0x26   :  { %s2785_s25 = scalar_lea.hbm %s3747_s7, 4096 }
  0x27   :  { %p2786_p2 = scmp.ne.s32.totalorder %s3747_s7, %s2785_s25  ;;  %p2789_p3 = scmp.lt.u32.totalorder %s2785_s25, %s3747_s7 }
  0x29   :  { %p2791_p4 = pnand %p2789_p3, %p2786_p2 }
  0x2b   :  { %2794 = shalt.err (!%p2791_p4)
}
  0x2c   :  { %s2795_s3 = scalar_lea.vmem %s62_s18, 4096  ;;  %p2800_p6 = scmp.lt.s32.totalorder %s62_s18, %s62_s18 }
  0x2d   :  { %p2796_p5 = scmp.ne.s32.totalorder %s62_s18, %s2795_s3  ;;  %p2801_p7 = scmp.lt.s32.totalorder %s2795_s3, %s2795_s3 }
  0x2f   :  { %p2802_p8 = por %p2801_p7, %p2800_p6 }
  0x31   :  { %p2803_p9 = pnand %p2802_p8, %p2796_p5 }
  0x33   :  { %2806 = shalt.err (!%p2803_p9)
}
  0x34   :  { %67 = dma.hbm_to_vmem [thread:$0]  %s3747_s7, 4096, %s62_s18, [#allocation6], %s2861_s20, %s2861_s20, %s2862_s21  }
  0x35   :  { %s2807_s26 = scalar_lea.hbm %s3749_s9, 4096 }
  0x36   :  { %p2808_p10 = scmp.ne.s32.totalorder %s3749_s9, %s2807_s26  ;;  %p2811_p11 = scmp.lt.u32.totalorder %s2807_s26, %s3749_s9 }
  0x38   :  { %p2813_p12 = pnand %p2811_p11, %p2808_p10 }
  0x3a   :  { %2816 = shalt.err (!%p2813_p12)
}
  0x3b   :  { %s2817_s25 = scalar_lea.vmem %s2974_s22, 4096  ;;  %p2822_p0 = scmp.lt.s32.totalorder %s2974_s22, %s2974_s22 }
  0x3c   :  { %p2818_p13 = scmp.ne.s32.totalorder %s2974_s22, %s2817_s25  ;;  %p2823_p1 = scmp.lt.s32.totalorder %s2817_s25, %s2817_s25 }
  0x3e   :  { %p2824_p2 = por %p2823_p1, %p2822_p0 }
  0x40   :  { %p2825_p3 = pnand %p2824_p2, %p2818_p13 }
  0x42   :  { %2828 = shalt.err (!%p2825_p3)
}
  0x43   :  { %81 = dma.hbm_to_vmem [thread:$0]  %s3749_s9, 4096, %s2974_s22, [#allocation9], %s2861_s20, %s2861_s20, %s2862_s21  }
  0x44   :  { %2851 = dma.done.wait [#allocation3], 4096  }
  0x45   :  { %2852 = vsyncadd [#allocation3], 4294963200 }
  0x46   :  { %2853 = dma.done.wait [#allocation6], 8192  }
  0x47   :  { %2854 = vsyncadd [#allocation6], 4294959104 }
  0x48   :  { %2855 = dma.done.wait [#allocation9], 4096  }
  0x49   :  { %2856 = vsyncadd [#allocation9], 4294963200  ;;  %v2865_v0 = vmov 0   ;;  %v2463_v1 = vld [vmem:[%s3741_s1 + $0x4] ss:$8 sps:$4 sm:$0xff]   ;;  %vm161_vm0 = vcmask 261120  }
  0x4a   :  { %218 = vmatprep.mubr.bf16.mxu0 %v2865_v0  ;;  %v2465_v2 = vld [vmem:[%s3741_s1] ss:$8 sps:$4 sm:$0xff]   ;;  %186 = vmatprep.subr.bf16.mxu0 %v2463_v1  ;;  %v2466_v3 = vld [vmem:[%s3741_s1 + $0x14] ss:$8 sps:$4 sm:$0xff]   ;;  %v2468_v4 = vld [vmem:[%s3741_s1 + $0x10] ss:$8 sps:$4 sm:$0xff]  }
  0x4b   :  { %187 = vmatpush1.bf16.msra.mxu0 %v2465_v2  ;;  %v101_v5 = vld [vmem:[%s3740_s0] sm:$0xff]  ;;  %v102_v6 = vld [vmem:[%s3740_s0 + $0x8] sm:$0xff]  ;;  %v103_v10 = vld [vmem:[%s3740_s0 + $0x10] sm:$0xff] }
  0x4c   :  { %188 = vmatprep.subr.bf16.mxu0 %v2466_v3  ;;  %v117_v7 = vpack.c.bf16 %v102_v6, %v101_v5  ;;  %v2469_v8 = vld [vmem:[#allocation2 + $0x4] ss:$8 sps:$4 sm:$0xff]   ;;  %v2471_v9 = vld [vmem:[#allocation2] ss:$8 sps:$4 sm:$0xff]   ;;  %v2472_v11 = vld [vmem:[#allocation2 + $0x14] ss:$8 sps:$4 sm:$0xff]  }
  0x4d   :  { %551 = vmatprep.subr.bf16.mxu1 %v2469_v8  ;;  %v104_v12 = vld [vmem:[%s3740_s0 + $0x18] sm:$0xff]  ;;  %v2475_v14 = vld [vmem:[#allocation2 + $0x24] ss:$8 sps:$4 sm:$0xff]   ;;  %v2477_v16 = vld [vmem:[#allocation2 + $0x20] ss:$8 sps:$4 sm:$0xff]  }
  0x4e   :  { %552 = vmatpush1.bf16.msra.mxu1 %v2471_v9  ;;  %v2474_v13 = vld [vmem:[#allocation2 + $0x10] ss:$8 sps:$4 sm:$0xff]   ;;  %v118_v15 = vpack.c.bf16 %v104_v12, %v103_v10  ;;  %v2478_v17 = vld [vmem:[#allocation2 + $0x34] ss:$8 sps:$4 sm:$0xff]   ;;  %v105_v18 = vld [vmem:[%s3740_s0 + $0x20] sm:$0xff] }
  0x4f   :  { %189 = vmatpush1.bf16.msra.mxu0 %v2468_v4  ;;  %553 = vmatprep.subr.bf16.mxu1 %v2472_v11  ;;  %v106_v19 = vld [vmem:[%s3740_s0 + $0x28] sm:$0xff]  ;;  %v2480_v20 = vld [vmem:[#allocation2 + $0x30] ss:$8 sps:$4 sm:$0xff]   ;;  %v2484_v24 = vld [vmem:[#allocation2 + $0x54] ss:$8 sps:$4 sm:$0xff]  }
  0x50   :  { %v2481_v21 = vld [vmem:[#allocation2 + $0x44] ss:$8 sps:$4 sm:$0xff]   ;;  %v119_v22 = vpack.c.bf16 %v106_v19, %v105_v18  ;;  %v2483_v23 = vld [vmem:[#allocation2 + $0x40] ss:$8 sps:$4 sm:$0xff]   ;;  %v107_v25 = vld [vmem:[%s3740_s0 + $0x30] sm:$0xff] }
  0x51   :  { %v108_v26 = vld [vmem:[%s3740_s0 + $0x38] sm:$0xff]  ;;  %v2487_v28 = vld [vmem:[#allocation2 + $0x64] ss:$8 sps:$4 sm:$0xff]   ;;  %v2489_v29 = vld [vmem:[#allocation2 + $0x60] ss:$8 sps:$4 sm:$0xff]  }
  0x52   :  { %2222 = vmatmul.mubr.msk.bf16.vlgmr.msra.gmra.mrb[0].mxu0 %vm161_vm0, %v117_v7  ;;  %554 = vmatpush1.bf16.msra.mxu1 %v2474_v13  ;;  %v2486_v27 = vld [vmem:[#allocation2 + $0x50] ss:$8 sps:$4 sm:$0xff]   ;;  %v120_v30 = vpack.c.bf16 %v108_v26, %v107_v25  ;;  %v2490_v31 = vld [vmem:[#allocation2 + $0x74] ss:$8 sps:$4 sm:$0xff]   ;;  %v109_v32 = vld [vmem:[%s3740_s0 + $0x40] sm:$0xff] }
  0x53   :  { %228 = vmatprep.mubr.bf16.mxu0 %v2865_v0  ;;  %555 = vmatprep.subr.bf16.mxu1 %v2475_v14  ;;  %v110_v33 = vld [vmem:[%s3740_s0 + $0x48] sm:$0xff]  ;;  %v2492_v34 = vld [vmem:[#allocation2 + $0x70] ss:$8 sps:$4 sm:$0xff]   ;;  %v2496_v38 = vld [vmem:[#allocation2 + $0x94] ss:$8 sps:$4 sm:$0xff]  }
  0x54   :  { %v2493_v35 = vld [vmem:[#allocation2 + $0x84] ss:$8 sps:$4 sm:$0xff]   ;;  %v2495_v36 = vld [vmem:[#allocation2 + $0x80] ss:$8 sps:$4 sm:$0xff]   ;;  %v121_v37 = vpack.c.bf16 %v110_v33, %v109_v32  ;;  %v111_v39 = vld [vmem:[%s3740_s0 + $0x50] sm:$0xff] }
  0x55   :  { %v112_v40 = vld [vmem:[%s3740_s0 + $0x58] sm:$0xff]  ;;  %v2499_v42 = vld [vmem:[#allocation2 + $0xa4] ss:$8 sps:$4 sm:$0xff]   ;;  %v2501_v43 = vld [vmem:[#allocation2 + $0xa0] ss:$8 sps:$4 sm:$0xff]  }
  0x56   :  { %556 = vmatpush1.bf16.msra.mxu1 %v2477_v16  ;;  %v2498_v41 = vld [vmem:[#allocation2 + $0x90] ss:$8 sps:$4 sm:$0xff]   ;;  %v122_v44 = vpack.c.bf16 %v112_v40, %v111_v39  ;;  %v2502_v45 = vld [vmem:[#allocation2 + $0xb4] ss:$8 sps:$4 sm:$0xff]   ;;  %v113_v46 = vld [vmem:[%s3740_s0 + $0x60] sm:$0xff] }
  0x57   :  { %557 = vmatprep.subr.bf16.mxu1 %v2478_v17  ;;  %v114_v47 = vld [vmem:[%s3740_s0 + $0x68] sm:$0xff]  ;;  %v2504_v48 = vld [vmem:[#allocation2 + $0xb0] ss:$8 sps:$4 sm:$0xff]   ;;  %v2508_v52 = vld [vmem:[#allocation2 + $0xd4] ss:$8 sps:$4 sm:$0xff]  }
  0x58   :  { %v2505_v49 = vld [vmem:[#allocation2 + $0xc4] ss:$8 sps:$4 sm:$0xff]   ;;  %v2507_v50 = vld [vmem:[#allocation2 + $0xc0] ss:$8 sps:$4 sm:$0xff]   ;;  %v123_v51 = vpack.c.bf16 %v114_v47, %v113_v46  ;;  %v115_v53 = vld [vmem:[%s3740_s0 + $0x70] sm:$0xff] }
  0x59   :  { %v116_v54 = vld [vmem:[%s3740_s0 + $0x78] sm:$0xff]  ;;  %v2511_v57 = vld [vmem:[#allocation2 + $0xe4] ss:$8 sps:$4 sm:$0xff]   ;;  %v2513_v58 = vld [vmem:[#allocation2 + $0xe0] ss:$8 sps:$4 sm:$0xff]  }
  0x5a   :  { %2223 = vmatmul.mubr.msk.bf16.gmra.mrb[4].mxu0 %vm161_vm0, %v118_v15  ;;  %558 = vmatpush1.bf16.msra.mxu1 %v2480_v20  ;;  %v124_v55 = vpack.c.bf16 %v116_v54, %v115_v53  ;;  %v2510_v56 = vld [vmem:[#allocation2 + $0xd0] ss:$8 sps:$4 sm:$0xff]   ;;  %v2514_v59 = vld [vmem:[#allocation2 + $0xf4] ss:$8 sps:$4 sm:$0xff]   ;;  %v2517_v61 = vld [vmem:[#allocation5] ss:$8 sps:$4 sm:$0xff]  }
  0x5b   :  { %238 = vmatprep.mubr.bf16.mxu0 %v2865_v0  ;;  %559 = vmatprep.subr.bf16.mxu1 %v2481_v21  ;;  %v2516_v60 = vld [vmem:[#allocation2 + $0xf0] ss:$8 sps:$4 sm:$0xff]   ;;  %v2519_v62 = vld [vmem:[#allocation5 + $0x4] ss:$8 sps:$4 sm:$0xff]   ;;  %v2522_v63 = vld [vmem:[#allocation5 + $0x14] ss:$8 sps:$4 sm:$0xff]  }
  0x5c   :  { %916 = vmatprep.subr.bf16.mxu0 %v2519_v62  ;;  %v2525_v1 = vld [vmem:[#allocation5 + $0x24] ss:$8 sps:$4 sm:$0xff]   ;;  %v2523_v2 = vld [vmem:[#allocation5 + $0x20] ss:$8 sps:$4 sm:$0xff]   ;;  %v2528_v3 = vld [vmem:[#allocation5 + $0x34] ss:$8 sps:$4 sm:$0xff]  }
  0x5d   :  { %917 = vmatpush1.bf16.msra.mxu0 %v2517_v61  ;;  %v2526_v4 = vld [vmem:[#allocation5 + $0x30] ss:$8 sps:$4 sm:$0xff]   ;;  %v2531_v5 = vld [vmem:[#allocation5 + $0x44] ss:$8 sps:$4 sm:$0xff]   ;;  %v2529_v6 = vld [vmem:[#allocation5 + $0x40] ss:$8 sps:$4 sm:$0xff]  }
  0x5e   :  { %560 = vmatpush1.bf16.msra.mxu1 %v2483_v23  ;;  %918 = vmatprep.subr.bf16.mxu0 %v2522_v63  ;;  %v2534_v7 = vld [vmem:[#allocation5 + $0x54] ss:$8 sps:$4 sm:$0xff]   ;;  %v2532_v8 = vld [vmem:[#allocation5 + $0x50] ss:$8 sps:$4 sm:$0xff]   ;;  %v2537_v9 = vld [vmem:[#allocation5 + $0x64] ss:$8 sps:$4 sm:$0xff]  }
  0x5f   :  { %561 = vmatprep.subr.bf16.mxu1 %v2484_v24  ;;  %v2535_v10 = vld [vmem:[#allocation5 + $0x60] ss:$8 sps:$4 sm:$0xff]   ;;  %v2540_v11 = vld [vmem:[#allocation5 + $0x74] ss:$8 sps:$4 sm:$0xff]   ;;  %v2538_v12 = vld [vmem:[#allocation5 + $0x70] ss:$8 sps:$4 sm:$0xff]  }
  0x60   :  { %v2543_v13 = vld [vmem:[#allocation5 + $0x84] ss:$8 sps:$4 sm:$0xff]   ;;  %v2541_v14 = vld [vmem:[#allocation5 + $0x80] ss:$8 sps:$4 sm:$0xff]   ;;  %v2546_v15 = vld [vmem:[#allocation5 + $0x94] ss:$8 sps:$4 sm:$0xff]  }
  0x61   :  { %v2544_v16 = vld [vmem:[#allocation5 + $0x90] ss:$8 sps:$4 sm:$0xff]   ;;  %v2549_v17 = vld [vmem:[#allocation5 + $0xa4] ss:$8 sps:$4 sm:$0xff]   ;;  %v2547_v18 = vld [vmem:[#allocation5 + $0xa0] ss:$8 sps:$4 sm:$0xff]  }
  0x62   :  { %2224 = vmatmul.mubr.msk.bf16.gmra.mrb[8].mxu0 %vm161_vm0, %v119_v22  ;;  %562 = vmatpush1.bf16.msra.mxu1 %v2486_v27  ;;  %v2552_v19 = vld [vmem:[#allocation5 + $0xb4] ss:$8 sps:$4 sm:$0xff]   ;;  %v2550_v20 = vld [vmem:[#allocation5 + $0xb0] ss:$8 sps:$4 sm:$0xff]   ;;  %v2555_v21 = vld [vmem:[#allocation5 + $0xc4] ss:$8 sps:$4 sm:$0xff]   ;;  %v131_v22 = vlaneseq }
  0x63   :  { %248 = vmatprep.mubr.bf16.mxu0 %v2865_v0  ;;  %563 = vmatprep.subr.bf16.mxu1 %v2487_v28  ;;  %v2553_v23 = vld [vmem:[#allocation5 + $0xc0] ss:$8 sps:$4 sm:$0xff]   ;;  %v2558_v24 = vld [vmem:[#allocation5 + $0xd4] ss:$8 sps:$4 sm:$0xff]   ;;  %v2556_v26 = vld [vmem:[#allocation5 + $0xd0] ss:$8 sps:$4 sm:$0xff]  }
  0x64   :  { %v132_v25 = vshrl.u32 %v131_v22, 7  ;;  %v129_v28 = vld [vmem:[%s3742_s2] sm:$0x3] }
  0x66   :  { %564 = vmatpush1.bf16.msra.mxu1 %v2489_v29  ;;  %v3087_v27 = vsub.s32 1, %v132_v25  ;;  %v3092_v29 = vsub.s32 0, %v132_v25 }
  0x67   :  { %565 = vmatprep.subr.bf16.mxu1 %v2490_v31 }
  0x68   :  { %v3098_v31 = vrot.slane %v129_v28, %v3092_v29 }
  0x6a   :  { %2225 = vmatmul.mubr.msk.bf16.gmra.mrb[12].mxu0 %vm161_vm0, %v120_v30  ;;  %566 = vmatpush1.bf16.msra.mxu1 %v2492_v34  ;;  %v3095_v30 = vrot.slane %v129_v28, %v3087_v27 }
  0x6b   :  { %258 = vmatprep.mubr.bf16.mxu0 %v2865_v0  ;;  %567 = vmatprep.subr.bf16.mxu1 %v2493_v35 }
  0x6e   :  { %568 = vmatpush1.bf16.msra.mxu1 %v2495_v36 }
  0x6f   :  { %569 = vmatprep.subr.bf16.mxu1 %v2496_v38 }
  0x72   :  { %2226 = vmatmul.mubr.msk.bf16.gmra.mrb[16].mxu0 %vm161_vm0, %v121_v37  ;;  %570 = vmatpush1.bf16.msra.mxu1 %v2498_v41 }
  0x73   :  { %268 = vmatprep.mubr.bf16.mxu0 %v2865_v0  ;;  %571 = vmatprep.subr.bf16.mxu1 %v2499_v42 }
  0x76   :  { %572 = vmatpush1.bf16.msra.mxu1 %v2501_v43 }
  0x77   :  { %573 = vmatprep.subr.bf16.mxu1 %v2502_v45 }
  0x7a   :  { %2227 = vmatmul.mubr.msk.bf16.gmra.mrb[20].mxu0 %vm161_vm0, %v122_v44  ;;  %574 = vmatpush1.bf16.msra.mxu1 %v2504_v48 }
  0x7b   :  { %278 = vmatprep.mubr.bf16.mxu0 %v2865_v0  ;;  %575 = vmatprep.subr.bf16.mxu1 %v2505_v49 }
  0x7e   :  { %576 = vmatpush1.bf16.msra.mxu1 %v2507_v50 }
  0x7f   :  { %577 = vmatprep.subr.bf16.mxu1 %v2508_v52 }
  0x82   :  { %2228 = vmatmul.mubr.msk.bf16.gmra.mrb[24].mxu0 %vm161_vm0, %v123_v51  ;;  %578 = vmatpush1.bf16.msra.mxu1 %v2510_v56 }
  0x83   :  { %288 = vmatprep.mubr.bf16.mxu0 %v2865_v0  ;;  %579 = vmatprep.subr.bf16.mxu1 %v2511_v57  ;;  %v2520_v0 = vld [vmem:[#allocation5 + $0x10] ss:$8 sps:$4 sm:$0xff]  }
  0x84   :  { %919 = vmatpush1.bf16.msra.mxu0 %v2520_v0 }
  0x85   :  { %920 = vmatprep.subr.bf16.mxu0 %v2525_v1 }
  0x86   :  { %580 = vmatpush1.bf16.msra.mxu1 %v2513_v58 }
  0x87   :  { %581 = vmatprep.subr.bf16.mxu1 %v2514_v59 }
  0x88   :  { %921 = vmatpush1.bf16.msra.mxu0 %v2523_v2 }
  0x89   :  { %922 = vmatprep.subr.bf16.mxu0 %v2528_v3 }
  0x8a   :  { %2229 = vmatmul.mubr.msk.bf16.gmra.mrb[28].mxu0 %vm161_vm0, %v124_v55  ;;  %582 = vmatpush1.bf16.msra.mxu1 %v2516_v60 }
  0x8c   :  { %923 = vmatpush1.bf16.msra.mxu0 %v2526_v4 }
  0x8d   :  { %924 = vmatprep.subr.bf16.mxu0 %v2531_v5 }
  0x90   :  { %925 = vmatpush1.bf16.msra.mxu0 %v2529_v6 }
  0x91   :  { %926 = vmatprep.subr.bf16.mxu0 %v2534_v7 }
  0x94   :  { %927 = vmatpush1.bf16.msra.mxu0 %v2532_v8 }
  0x95   :  { %928 = vmatprep.subr.bf16.mxu0 %v2537_v9 }
  0x98   :  { %929 = vmatpush1.bf16.msra.mxu0 %v2535_v10 }
  0x99   :  { %930 = vmatprep.subr.bf16.mxu0 %v2540_v11 }
  0x9c   :  { %931 = vmatpush1.bf16.msra.mxu0 %v2538_v12 }
  0x9d   :  { %932 = vmatprep.subr.bf16.mxu0 %v2543_v13 }
  0xa0   :  { %933 = vmatpush1.bf16.msra.mxu0 %v2541_v14 }
  0xa1   :  { %934 = vmatprep.subr.bf16.mxu0 %v2546_v15 }
  0xa4   :  { %935 = vmatpush1.bf16.msra.mxu0 %v2544_v16 }
  0xa5   :  { %936 = vmatprep.subr.bf16.mxu0 %v2549_v17 }
  0xa8   :  { %937 = vmatpush1.bf16.msra.mxu0 %v2547_v18 }
  0xa9   :  { %938 = vmatprep.subr.bf16.mxu0 %v2552_v19 }
  0xac   :  { %939 = vmatpush1.bf16.msra.mxu0 %v2550_v20 }
  0xad   :  { %940 = vmatprep.subr.bf16.mxu0 %v2555_v21 }
  0xb0   :  { %941 = vmatpush1.bf16.msra.mxu0 %v2553_v23 }
  0xb1   :  { %942 = vmatprep.subr.bf16.mxu0 %v2558_v24 }
  0xb4   :  { %943 = vmatpush1.bf16.msra.mxu0 %v2556_v26 }
 0x125   :  { %v220_v32 = vpop.f32.mrb[0].mxu0 }
 0x126   :  { %v222_v33 = vpop.f32.mrb[1].mxu0  ;;  %v3104_v36 = vadd.f32 %v220_v32, %v3098_v31 }
 0x127   :  { %v3101_v34 = vadd.f32 %v222_v33, %v3095_v30  ;;  %v224_v35 = vpop.f32.mrb[2].mxu0 }
 0x128   :  { %v3107_v37 = vadd.f32 %v224_v35, %v3098_v31  ;;  %v226_v38 = vpop.f32.mrb[3].mxu0  ;;  %v299_v43 = vmax.f32 %v3104_v36, 0.0 }
 0x129   :  { %v3110_v39 = vadd.f32 %v226_v38, %v3095_v30  ;;  %v300_v41 = vmax.f32 %v3101_v34, 0.0 }
 0x12a   :  { %v301_v40 = vmax.f32 %v3107_v37, 0.0 }
 0x12b   :  { %v302_v42 = vmax.f32 %v3110_v39, 0.0 }
 0x12c   :  { %v331_v46 = vpack.c.bf16 %v301_v40, %v299_v43 }
 0x12d   :  { %v230_v44 = vpop.f32.mrb[4].mxu0  ;;  %v332_v45 = vpack.c.bf16 %v302_v42, %v300_v41 }
 0x12e   :  { %v232_v47 = vpop.f32.mrb[5].mxu0  ;;  %v3128_v50 = vadd.f32 %v230_v44, %v3098_v31 }
 0x12f   :  { %v3125_v48 = vadd.f32 %v232_v47, %v3095_v30  ;;  %v234_v49 = vpop.f32.mrb[6].mxu0  ;;  %583 = vmatprep.mubr.bf16.mxu1 %v332_v45 }
 0x130   :  { %v3131_v51 = vadd.f32 %v234_v49, %v3098_v31  ;;  %v236_v52 = vpop.f32.mrb[7].mxu0  ;;  %584 = vmatmul.mubr.bf16.vlgmr.msra.gmra.mrb[0].mxu1 %v331_v46  ;;  %v303_v57 = vmax.f32 %v3128_v50, 0.0 }
 0x131   :  { %v3134_v53 = vadd.f32 %v236_v52, %v3095_v30  ;;  %v304_v55 = vmax.f32 %v3125_v48, 0.0 }
 0x132   :  { %v305_v54 = vmax.f32 %v3131_v51, 0.0 }
 0x133   :  { %v306_v56 = vmax.f32 %v3134_v53, 0.0 }
 0x134   :  { %v333_v60 = vpack.c.bf16 %v305_v54, %v303_v57 }
 0x135   :  { %v334_v58 = vpack.c.bf16 %v306_v56, %v304_v55  ;;  %v240_v59 = vpop.f32.mrb[8].mxu0 }
 0x136   :  { %v242_v61 = vpop.f32.mrb[9].mxu0  ;;  %v3152_v0 = vadd.f32 %v240_v59, %v3098_v31 }
 0x137   :  { %v3149_v62 = vadd.f32 %v242_v61, %v3095_v30  ;;  %v244_v63 = vpop.f32.mrb[10].mxu0  ;;  %593 = vmatprep.mubr.bf16.mxu1 %v334_v58 }
 0x138   :  { %v3155_v1 = vadd.f32 %v244_v63, %v3098_v31  ;;  %v246_v2 = vpop.f32.mrb[11].mxu0  ;;  %594 = vmatmul.mubr.bf16.gmra.mrb[4].mxu1 %v333_v60  ;;  %v3774_v7 = vmax.f32 %v3152_v0, 0.0 }
 0x139   :  { %v3158_v3 = vadd.f32 %v246_v2, %v3095_v30  ;;  %v3776_v5 = vmax.f32 %v3149_v62, 0.0 }
 0x13a   :  { %v309_v4 = vmax.f32 %v3155_v1, 0.0 }
 0x13b   :  { %v3775_v6 = vmax.f32 %v3158_v3, 0.0 }
 0x13c   :  { %v335_v10 = vpack.c.bf16 %v309_v4, %v3774_v7 }
 0x13d   :  { %v336_v8 = vpack.c.bf16 %v3775_v6, %v3776_v5  ;;  %v250_v9 = vpop.f32.mrb[12].mxu0 }
 0x13e   :  { %v252_v11 = vpop.f32.mrb[13].mxu0  ;;  %v3176_v14 = vadd.f32 %v250_v9, %v3098_v31 }
 0x13f   :  { %v3173_v12 = vadd.f32 %v252_v11, %v3095_v30  ;;  %v254_v13 = vpop.f32.mrb[14].mxu0  ;;  %603 = vmatprep.mubr.bf16.mxu1 %v336_v8 }
 0x140   :  { %v3179_v15 = vadd.f32 %v254_v13, %v3098_v31  ;;  %v256_v16 = vpop.f32.mrb[15].mxu0  ;;  %604 = vmatmul.mubr.bf16.gmra.mrb[8].mxu1 %v335_v10  ;;  %v3770_v21 = vmax.f32 %v3176_v14, 0.0 }
 0x141   :  { %v3182_v17 = vadd.f32 %v256_v16, %v3095_v30  ;;  %v3772_v19 = vmax.f32 %v3173_v12, 0.0 }
 0x142   :  { %v3773_v18 = vmax.f32 %v3179_v15, 0.0 }
 0x143   :  { %v3771_v20 = vmax.f32 %v3182_v17, 0.0 }
 0x144   :  { %v337_v24 = vpack.c.bf16 %v3773_v18, %v3770_v21 }
 0x145   :  { %v338_v22 = vpack.c.bf16 %v3771_v20, %v3772_v19  ;;  %v260_v23 = vpop.f32.mrb[16].mxu0 }
 0x146   :  { %v262_v25 = vpop.f32.mrb[17].mxu0  ;;  %v3200_v32 = vadd.f32 %v260_v23, %v3098_v31 }
 0x147   :  { %v3197_v26 = vadd.f32 %v262_v25, %v3095_v30  ;;  %v264_v28 = vpop.f32.mrb[18].mxu0  ;;  %613 = vmatprep.mubr.bf16.mxu1 %v338_v22 }
 0x148   :  { %v3203_v33 = vadd.f32 %v264_v28, %v3098_v31  ;;  %v266_v35 = vpop.f32.mrb[19].mxu0  ;;  %614 = vmatmul.mubr.bf16.gmra.mrb[12].mxu1 %v337_v24  ;;  %v3758_v47 = vmax.f32 %v3200_v32, 0.0 }
 0x149   :  { %v3206_v38 = vadd.f32 %v266_v35, %v3095_v30  ;;  %v3764_v45 = vmax.f32 %v3197_v26, 0.0 }
 0x14a   :  { %v3769_v44 = vmax.f32 %v3203_v33, 0.0 }
 0x14b   :  { %v3763_v46 = vmax.f32 %v3206_v38, 0.0 }
 0x14c   :  { %v339_v58 = vpack.c.bf16 %v3769_v44, %v3758_v47 }
 0x14d   :  { %v340_v49 = vpack.c.bf16 %v3763_v46, %v3764_v45  ;;  %v270_v52 = vpop.f32.mrb[20].mxu0  ;;  %v2567_v46 = vld [vmem:[#allocation7 + $0x4] ss:$8 sps:$4 sm:$0xff]   ;;  %v2570_v45 = vld [vmem:[#allocation7 + $0x14] ss:$8 sps:$4 sm:$0xff]  }
 0x14e   :  { %v272_v59 = vpop.f32.mrb[21].mxu0  ;;  %v3224_v63 = vadd.f32 %v270_v52, %v3098_v31  ;;  %1313 = vmatprep.subr.bf16.mxu1 %v2567_v46  ;;  %v2585_v46 = vld [vmem:[#allocation7 + $0x64] ss:$8 sps:$4 sm:$0xff]  }
 0x14f   :  { %v3221_v60 = vadd.f32 %v272_v59, %v3095_v30  ;;  %v274_v61 = vpop.f32.mrb[22].mxu0  ;;  %623 = vmatprep.mubr.bf16.mxu1 %v340_v49 }
 0x150   :  { %v3227_v2 = vadd.f32 %v274_v61, %v3098_v31  ;;  %v276_v8 = vpop.f32.mrb[23].mxu0  ;;  %624 = vmatmul.mubr.bf16.gmra.mrb[16].mxu1 %v339_v58  ;;  %v3754_v16 = vmax.f32 %v3224_v63, 0.0 }
 0x151   :  { %v3230_v9 = vadd.f32 %v276_v8, %v3095_v30  ;;  %v3756_v11 = vmax.f32 %v3221_v60, 0.0 }
 0x152   :  { %v3757_v10 = vmax.f32 %v3227_v2, 0.0 }
 0x153   :  { %v3755_v13 = vmax.f32 %v3230_v9, 0.0 }
 0x154   :  { %v341_v24 = vpack.c.bf16 %v3757_v10, %v3754_v16 }
 0x155   :  { %v342_v22 = vpack.c.bf16 %v3755_v13, %v3756_v11  ;;  %v280_v23 = vpop.f32.mrb[24].mxu0 }
 0x156   :  { %v282_v25 = vpop.f32.mrb[25].mxu0  ;;  %v3248_v49 = vadd.f32 %v280_v23, %v3098_v31 }
 0x157   :  { %v3245_v28 = vadd.f32 %v282_v25, %v3095_v30  ;;  %v284_v35 = vpop.f32.mrb[26].mxu0  ;;  %633 = vmatprep.mubr.bf16.mxu1 %v342_v22 }
 0x158   :  { %v3251_v52 = vadd.f32 %v284_v35, %v3098_v31  ;;  %v286_v58 = vpop.f32.mrb[27].mxu0  ;;  %634 = vmatmul.mubr.bf16.gmra.mrb[20].mxu1 %v341_v24  ;;  %v3761_v16 = vmax.f32 %v3248_v49, 0.0 }
 0x159   :  { %v3254_v59 = vadd.f32 %v286_v58, %v3095_v30  ;;  %v3760_v8 = vmax.f32 %v3245_v28, 0.0 }
 0x15a   :  { %v3762_v61 = vmax.f32 %v3251_v52, 0.0 }
 0x15b   :  { %v3759_v25 = vmax.f32 %v3254_v59, 0.0 }
 0x15c   :  { %v343_v24 = vpack.c.bf16 %v3762_v61, %v3761_v16 }
 0x15d   :  { %v344_v22 = vpack.c.bf16 %v3759_v25, %v3760_v8  ;;  %v290_v23 = vpop.f32.mrb[28].mxu0 }
 0x15e   :  { %v292_v35 = vpop.f32.mrb[29].mxu0  ;;  %v3272_v11 = vadd.f32 %v290_v23, %v3098_v31  ;;  %v2562_v23 = vld [vmem:[#allocation5 + $0xf0] ss:$8 sps:$4 sm:$0xff]  }
 0x15f   :  { %v3269_v58 = vadd.f32 %v292_v35, %v3095_v30  ;;  %v294_v13 = vpop.f32.mrb[30].mxu0  ;;  %643 = vmatprep.mubr.bf16.mxu1 %v344_v22 }
 0x160   :  { %v3275_v10 = vadd.f32 %v294_v13, %v3098_v31  ;;  %v296_v47 = vpop.f32.mrb[31].mxu0  ;;  %644 = vmatmul.mubr.bf16.gmra.mrb[24].mxu1 %v343_v24  ;;  %v3767_v61 = vmax.f32 %v3272_v11, 0.0  ;;  %v2564_v13 = vld [vmem:[#allocation5 + $0xf4] ss:$8 sps:$4 sm:$0xff]   ;;  %v2565_v24 = vld [vmem:[#allocation7] ss:$8 sps:$4 sm:$0xff]  }
 0x161   :  { %v3278_v25 = vadd.f32 %v296_v47, %v3095_v30  ;;  %v3766_v16 = vmax.f32 %v3269_v58, 0.0  ;;  %v2561_v30 = vld [vmem:[#allocation5 + $0xe4] ss:$8 sps:$4 sm:$0xff]   ;;  %v2559_v47 = vld [vmem:[#allocation5 + $0xe0] ss:$8 sps:$4 sm:$0xff]   ;;  %1314 = vmatpush1.bf16.msra.mxu1 %v2565_v24 }
 0x162   :  { %v3768_v8 = vmax.f32 %v3275_v10, 0.0  ;;  %944 = vmatprep.subr.bf16.mxu0 %v2561_v30  ;;  %1315 = vmatprep.subr.bf16.mxu1 %v2570_v45  ;;  %v2579_v30 = vld [vmem:[#allocation7 + $0x44] ss:$8 sps:$4 sm:$0xff]   ;;  %v2583_v24 = vld [vmem:[#allocation7 + $0x60] ss:$8 sps:$4 sm:$0xff]  }
 0x163   :  { %v3765_v35 = vmax.f32 %v3278_v25, 0.0  ;;  %945 = vmatpush1.bf16.msra.mxu0 %v2559_v47  ;;  %v2577_v47 = vld [vmem:[#allocation7 + $0x40] ss:$8 sps:$4 sm:$0xff]   ;;  %v2588_v45 = vld [vmem:[#allocation7 + $0x74] ss:$8 sps:$4 sm:$0xff]  }
 0x164   :  { %v345_v31 = vpack.c.bf16 %v3768_v8, %v3767_v61  ;;  %946 = vmatprep.subr.bf16.mxu0 %v2564_v13  ;;  %v2571_v61 = vld [vmem:[#allocation7 + $0x20] ss:$8 sps:$4 sm:$0xff]   ;;  %v2582_v13 = vld [vmem:[#allocation7 + $0x54] ss:$8 sps:$4 sm:$0xff]  }
 0x165   :  { %v346_v22 = vpack.c.bf16 %v3765_v35, %v3766_v16  ;;  %v2568_v35 = vld [vmem:[#allocation7 + $0x10] ss:$8 sps:$4 sm:$0xff]   ;;  %v2573_v16 = vld [vmem:[#allocation7 + $0x24] ss:$8 sps:$4 sm:$0xff]  }
 0x166   :  { %1316 = vmatpush1.bf16.msra.mxu1 %v2568_v35  ;;  %v2586_v35 = vld [vmem:[#allocation7 + $0x70] ss:$8 sps:$4 sm:$0xff]  }
 0x167   :  { %653 = vmatprep.mubr.bf16.mxu1 %v346_v22  ;;  %947 = vmatpush1.bf16.msra.mxu0 %v2562_v23  ;;  %v2576_v22 = vld [vmem:[#allocation7 + $0x34] ss:$8 sps:$4 sm:$0xff]   ;;  %v2580_v23 = vld [vmem:[#allocation7 + $0x50] ss:$8 sps:$4 sm:$0xff]  }
 0x168   :  { %654 = vmatmul.mubr.bf16.gmra.mrb[28].mxu1 %v345_v31  ;;  %1317 = vmatprep.subr.bf16.mxu1 %v2573_v16  ;;  %v2574_v31 = vld [vmem:[#allocation7 + $0x30] ss:$8 sps:$4 sm:$0xff]   ;;  %v2591_v16 = vld [vmem:[#allocation7 + $0x84] ss:$8 sps:$4 sm:$0xff]  }
 0x16a   :  { %1318 = vmatpush1.bf16.msra.mxu1 %v2571_v61  ;;  %v2589_v61 = vld [vmem:[#allocation7 + $0x80] ss:$8 sps:$4 sm:$0xff]  }
 0x16b   :  { %1319 = vmatprep.subr.bf16.mxu1 %v2576_v22  ;;  %v2594_v22 = vld [vmem:[#allocation7 + $0x94] ss:$8 sps:$4 sm:$0xff]  }
 0x16e   :  { %1320 = vmatpush1.bf16.msra.mxu1 %v2574_v31  ;;  %v2592_v31 = vld [vmem:[#allocation7 + $0x90] ss:$8 sps:$4 sm:$0xff]  }
 0x16f   :  { %1321 = vmatprep.subr.bf16.mxu1 %v2579_v30  ;;  %v2597_v30 = vld [vmem:[#allocation7 + $0xa4] ss:$8 sps:$4 sm:$0xff]  }
 0x172   :  { %1322 = vmatpush1.bf16.msra.mxu1 %v2577_v47  ;;  %v2595_v47 = vld [vmem:[#allocation7 + $0xa0] ss:$8 sps:$4 sm:$0xff]  }
 0x173   :  { %1323 = vmatprep.subr.bf16.mxu1 %v2582_v13  ;;  %v2600_v13 = vld [vmem:[#allocation7 + $0xb4] ss:$8 sps:$4 sm:$0xff]  }
 0x176   :  { %1324 = vmatpush1.bf16.msra.mxu1 %v2580_v23  ;;  %v2598_v23 = vld [vmem:[#allocation7 + $0xb0] ss:$8 sps:$4 sm:$0xff]  }
 0x177   :  { %1325 = vmatprep.subr.bf16.mxu1 %v2585_v46  ;;  %v2603_v46 = vld [vmem:[#allocation7 + $0xc4] ss:$8 sps:$4 sm:$0xff]  }
 0x17a   :  { %1326 = vmatpush1.bf16.msra.mxu1 %v2583_v24  ;;  %v2601_v24 = vld [vmem:[#allocation7 + $0xc0] ss:$8 sps:$4 sm:$0xff]  }
 0x17b   :  { %1327 = vmatprep.subr.bf16.mxu1 %v2588_v45  ;;  %v379_v45 = vld [vmem:[%s3744_s4] sm:$0x3] }
 0x17e   :  { %1328 = vmatpush1.bf16.msra.mxu1 %v2586_v35  ;;  %v3296_v35 = vrot.slane %v379_v45, %v3092_v29 }
 0x17f   :  { %1329 = vmatprep.subr.bf16.mxu1 %v2591_v16  ;;  %v3299_v16 = vrot.slane %v379_v45, %v3087_v27 }
 0x182   :  { %1330 = vmatpush1.bf16.msra.mxu1 %v2589_v61 }
 0x183   :  { %1331 = vmatprep.subr.bf16.mxu1 %v2594_v22 }
 0x186   :  { %1332 = vmatpush1.bf16.msra.mxu1 %v2592_v31 }
 0x187   :  { %1333 = vmatprep.subr.bf16.mxu1 %v2597_v30 }
 0x18a   :  { %1334 = vmatpush1.bf16.msra.mxu1 %v2595_v47 }
 0x18b   :  { %1335 = vmatprep.subr.bf16.mxu1 %v2600_v13 }
 0x18e   :  { %1336 = vmatpush1.bf16.msra.mxu1 %v2598_v23 }
 0x18f   :  { %1337 = vmatprep.subr.bf16.mxu1 %v2603_v46 }
 0x192   :  { %1338 = vmatpush1.bf16.msra.mxu1 %v2601_v24 }
 0x203   :  { %v585_v61 = vpop.f32.mrb[0].mxu1 }
 0x204   :  { %v586_v22 = vadd.f32 %v585_v61, %v3296_v35  ;;  %v587_v31 = vpop.f32.mrb[1].mxu1 }
 0x205   :  { %v588_v30 = vadd.f32 %v587_v31, %v3299_v16  ;;  %v589_v47 = vpop.f32.mrb[2].mxu1 }
 0x206   :  { %v590_v13 = vadd.f32 %v589_v47, %v3296_v35  ;;  %v591_v23 = vpop.f32.mrb[3].mxu1  ;;  %v664_v24 = vmax.f32 %v586_v22, 0.0 }
 0x207   :  { %v592_v46 = vadd.f32 %v591_v23, %v3299_v16  ;;  %v665_v44 = vmax.f32 %v588_v30, 0.0 }
 0x208   :  { %v666_v8 = vmax.f32 %v590_v13, 0.0 }
 0x209   :  { %v667_v21 = vmax.f32 %v592_v46, 0.0 }
 0x20a   :  { %v696_v20 = vpack.c.bf16 %v666_v8, %v664_v24 }
 0x20b   :  { %v697_v19 = vpack.c.bf16 %v667_v21, %v665_v44  ;;  %v595_v45 = vpop.f32.mrb[4].mxu1 }
 0x20c   :  { %v596_v18 = vadd.f32 %v595_v45, %v3296_v35  ;;  %v597_v7 = vpop.f32.mrb[5].mxu1 }
 0x20d   :  { %v598_v61 = vadd.f32 %v597_v7, %v3299_v16  ;;  %v599_v6 = vpop.f32.mrb[6].mxu1  ;;  %948 = vmatprep.mubr.bf16.mxu0 %v697_v19 }
 0x20e   :  { %v600_v31 = vadd.f32 %v599_v6, %v3296_v35  ;;  %v601_v47 = vpop.f32.mrb[7].mxu1  ;;  %949 = vmatmul.mubr.bf16.vlgmr.msra.gmra.mrb[32].mxu0 %v696_v20  ;;  %v668_v22 = vmax.f32 %v596_v18, 0.0 }
 0x20f   :  { %v602_v23 = vadd.f32 %v601_v47, %v3299_v16  ;;  %v669_v30 = vmax.f32 %v598_v61, 0.0 }
 0x210   :  { %v670_v13 = vmax.f32 %v600_v31, 0.0 }
 0x211   :  { %v671_v46 = vmax.f32 %v602_v23, 0.0 }
 0x212   :  { %v698_v8 = vpack.c.bf16 %v670_v13, %v668_v22 }
 0x213   :  { %v699_v21 = vpack.c.bf16 %v671_v46, %v669_v30  ;;  %v605_v44 = vpop.f32.mrb[8].mxu1 }
 0x214   :  { %v606_v24 = vadd.f32 %v605_v44, %v3296_v35  ;;  %v607_v45 = vpop.f32.mrb[9].mxu1 }
 0x215   :  { %v608_v7 = vadd.f32 %v607_v45, %v3299_v16  ;;  %v609_v5 = vpop.f32.mrb[10].mxu1  ;;  %958 = vmatprep.mubr.bf16.mxu0 %v699_v21 }
 0x216   :  { %v610_v6 = vadd.f32 %v609_v5, %v3296_v35  ;;  %v611_v19 = vpop.f32.mrb[11].mxu1  ;;  %959 = vmatmul.mubr.bf16.gmra.mrb[36].mxu0 %v698_v8  ;;  %v672_v18 = vmax.f32 %v606_v24, 0.0 }
 0x217   :  { %v612_v20 = vadd.f32 %v611_v19, %v3299_v16  ;;  %v673_v61 = vmax.f32 %v608_v7, 0.0 }
 0x218   :  { %v674_v31 = vmax.f32 %v610_v6, 0.0 }
 0x219   :  { %v675_v47 = vmax.f32 %v612_v20, 0.0 }
 0x21a   :  { %v700_v23 = vpack.c.bf16 %v674_v31, %v672_v18 }
 0x21b   :  { %v701_v22 = vpack.c.bf16 %v675_v47, %v673_v61  ;;  %v615_v13 = vpop.f32.mrb[12].mxu1 }
 0x21c   :  { %v616_v30 = vadd.f32 %v615_v13, %v3296_v35  ;;  %v617_v46 = vpop.f32.mrb[13].mxu1 }
 0x21d   :  { %v618_v44 = vadd.f32 %v617_v46, %v3299_v16  ;;  %v619_v45 = vpop.f32.mrb[14].mxu1  ;;  %968 = vmatprep.mubr.bf16.mxu0 %v701_v22 }
 0x21e   :  { %v620_v5 = vadd.f32 %v619_v45, %v3296_v35  ;;  %v621_v21 = vpop.f32.mrb[15].mxu1  ;;  %969 = vmatmul.mubr.bf16.gmra.mrb[40].mxu0 %v700_v23  ;;  %v676_v24 = vmax.f32 %v616_v30, 0.0 }
 0x21f   :  { %v622_v8 = vadd.f32 %v621_v21, %v3299_v16  ;;  %v677_v7 = vmax.f32 %v618_v44, 0.0 }
 0x220   :  { %v678_v6 = vmax.f32 %v620_v5, 0.0 }
 0x221   :  { %v679_v19 = vmax.f32 %v622_v8, 0.0 }
 0x222   :  { %v702_v20 = vpack.c.bf16 %v678_v6, %v676_v24 }
 0x223   :  { %v703_v18 = vpack.c.bf16 %v679_v19, %v677_v7  ;;  %v625_v31 = vpop.f32.mrb[16].mxu1 }
 0x224   :  { %v626_v61 = vadd.f32 %v625_v31, %v3296_v35  ;;  %v627_v47 = vpop.f32.mrb[17].mxu1 }
 0x225   :  { %v628_v13 = vadd.f32 %v627_v47, %v3299_v16  ;;  %v629_v46 = vpop.f32.mrb[18].mxu1  ;;  %978 = vmatprep.mubr.bf16.mxu0 %v703_v18 }
 0x226   :  { %v630_v22 = vadd.f32 %v629_v46, %v3296_v35  ;;  %v631_v45 = vpop.f32.mrb[19].mxu1  ;;  %979 = vmatmul.mubr.bf16.gmra.mrb[44].mxu0 %v702_v20  ;;  %v680_v30 = vmax.f32 %v626_v61, 0.0 }
 0x227   :  { %v632_v23 = vadd.f32 %v631_v45, %v3299_v16  ;;  %v681_v44 = vmax.f32 %v628_v13, 0.0 }
 0x228   :  { %v682_v5 = vmax.f32 %v630_v22, 0.0 }
 0x229   :  { %v683_v21 = vmax.f32 %v632_v23, 0.0 }
 0x22a   :  { %v704_v8 = vpack.c.bf16 %v682_v5, %v680_v30 }
 0x22b   :  { %v705_v24 = vpack.c.bf16 %v683_v21, %v681_v44  ;;  %v635_v6 = vpop.f32.mrb[20].mxu1 }
 0x22c   :  { %v636_v7 = vadd.f32 %v635_v6, %v3296_v35  ;;  %v637_v19 = vpop.f32.mrb[21].mxu1 }
 0x22d   :  { %v638_v31 = vadd.f32 %v637_v19, %v3299_v16  ;;  %v639_v47 = vpop.f32.mrb[22].mxu1  ;;  %988 = vmatprep.mubr.bf16.mxu0 %v705_v24 }
 0x22e   :  { %v640_v18 = vadd.f32 %v639_v47, %v3296_v35  ;;  %v641_v46 = vpop.f32.mrb[23].mxu1  ;;  %989 = vmatmul.mubr.bf16.gmra.mrb[48].mxu0 %v704_v8  ;;  %v684_v61 = vmax.f32 %v636_v7, 0.0 }
 0x22f   :  { %v642_v20 = vadd.f32 %v641_v46, %v3299_v16  ;;  %v685_v13 = vmax.f32 %v638_v31, 0.0 }
 0x230   :  { %v686_v22 = vmax.f32 %v640_v18, 0.0 }
 0x231   :  { %v687_v45 = vmax.f32 %v642_v20, 0.0 }
 0x232   :  { %v706_v23 = vpack.c.bf16 %v686_v22, %v684_v61 }
 0x233   :  { %v707_v30 = vpack.c.bf16 %v687_v45, %v685_v13  ;;  %v645_v5 = vpop.f32.mrb[24].mxu1 }
 0x234   :  { %v646_v44 = vadd.f32 %v645_v5, %v3296_v35  ;;  %v647_v21 = vpop.f32.mrb[25].mxu1 }
 0x235   :  { %v648_v6 = vadd.f32 %v647_v21, %v3299_v16  ;;  %v649_v19 = vpop.f32.mrb[26].mxu1  ;;  %998 = vmatprep.mubr.bf16.mxu0 %v707_v30 }
 0x236   :  { %v650_v24 = vadd.f32 %v649_v19, %v3296_v35  ;;  %v651_v47 = vpop.f32.mrb[27].mxu1  ;;  %999 = vmatmul.mubr.bf16.gmra.mrb[52].mxu0 %v706_v23  ;;  %v688_v7 = vmax.f32 %v646_v44, 0.0 }
 0x237   :  { %v652_v8 = vadd.f32 %v651_v47, %v3299_v16  ;;  %v689_v31 = vmax.f32 %v648_v6, 0.0 }
 0x238   :  { %v690_v18 = vmax.f32 %v650_v24, 0.0 }
 0x239   :  { %v691_v46 = vmax.f32 %v652_v8, 0.0 }
 0x23a   :  { %v708_v20 = vpack.c.bf16 %v690_v18, %v688_v7  ;;  %v2606_v18 = vld [vmem:[#allocation7 + $0xd4] ss:$8 sps:$4 sm:$0xff]  }
 0x23b   :  { %v709_v61 = vpack.c.bf16 %v691_v46, %v689_v31  ;;  %v655_v22 = vpop.f32.mrb[28].mxu1  ;;  %v2604_v31 = vld [vmem:[#allocation7 + $0xd0] ss:$8 sps:$4 sm:$0xff]   ;;  %1339 = vmatprep.subr.bf16.mxu1 %v2606_v18  ;;  %v2609_v46 = vld [vmem:[#allocation7 + $0xe4] ss:$8 sps:$4 sm:$0xff]  }
 0x23c   :  { %v656_v13 = vadd.f32 %v655_v22, %v3296_v35  ;;  %v657_v45 = vpop.f32.mrb[29].mxu1  ;;  %1340 = vmatpush1.bf16.msra.mxu1 %v2604_v31  ;;  %v2615_v22 = vld [vmem:[#allocation8 + $0x4] ss:$8 sps:$4 sm:$0xff]   ;;  %v2634_v18 = vld [vmem:[#allocation8 + $0x70] ss:$8 sps:$4 sm:$0xff]  }
 0x23d   :  { %v658_v5 = vadd.f32 %v657_v45, %v3299_v16  ;;  %v659_v21 = vpop.f32.mrb[30].mxu1  ;;  %1008 = vmatprep.mubr.bf16.mxu0 %v709_v61  ;;  %v2607_v61 = vld [vmem:[#allocation7 + $0xe0] ss:$8 sps:$4 sm:$0xff]   ;;  %1341 = vmatprep.subr.bf16.mxu1 %v2609_v46  ;;  %v2616_v45 = vld [vmem:[#allocation8 + $0x10] ss:$8 sps:$4 sm:$0xff]  }
 0x23e   :  { %v660_v30 = vadd.f32 %v659_v21, %v3296_v35  ;;  %v661_v19 = vpop.f32.mrb[31].mxu1  ;;  %1009 = vmatmul.mubr.bf16.gmra.mrb[56].mxu0 %v708_v20  ;;  %v692_v44 = vmax.f32 %v656_v13, 0.0  ;;  %v2612_v35 = vld [vmem:[#allocation7 + $0xf4] ss:$8 sps:$4 sm:$0xff]   ;;  %v2610_v20 = vld [vmem:[#allocation7 + $0xf0] ss:$8 sps:$4 sm:$0xff]   ;;  %1678 = vmatprep.subr.bf16.mxu0 %v2615_v22 }
 0x23f   :  { %v662_v23 = vadd.f32 %v661_v19, %v3299_v16  ;;  %v693_v6 = vmax.f32 %v658_v5, 0.0  ;;  %v2613_v16 = vld [vmem:[#allocation8] ss:$8 sps:$4 sm:$0xff]   ;;  %v2618_v13 = vld [vmem:[#allocation8 + $0x14] ss:$8 sps:$4 sm:$0xff]  }
 0x240   :  { %v694_v24 = vmax.f32 %v660_v30, 0.0  ;;  %1342 = vmatpush1.bf16.msra.mxu1 %v2607_v61  ;;  %1679 = vmatpush1.bf16.msra.mxu0 %v2613_v16  ;;  %v2621_v5 = vld [vmem:[#allocation8 + $0x24] ss:$8 sps:$4 sm:$0xff]   ;;  %v2619_v21 = vld [vmem:[#allocation8 + $0x20] ss:$8 sps:$4 sm:$0xff]  }
 0x241   :  { %v695_v47 = vmax.f32 %v662_v23, 0.0  ;;  %1343 = vmatprep.subr.bf16.mxu1 %v2612_v35  ;;  %1680 = vmatprep.subr.bf16.mxu0 %v2618_v13  ;;  %v2624_v30 = vld [vmem:[#allocation8 + $0x34] ss:$8 sps:$4 sm:$0xff]   ;;  %v2622_v19 = vld [vmem:[#allocation8 + $0x30] ss:$8 sps:$4 sm:$0xff]  }
 0x242   :  { %v710_v8 = vpack.c.bf16 %v694_v24, %v692_v44  ;;  %v2627_v23 = vld [vmem:[#allocation8 + $0x44] ss:$8 sps:$4 sm:$0xff]   ;;  %v2625_v44 = vld [vmem:[#allocation8 + $0x40] ss:$8 sps:$4 sm:$0xff]   ;;  %v2630_v24 = vld [vmem:[#allocation8 + $0x54] ss:$8 sps:$4 sm:$0xff]  }
 0x243   :  { %v711_v7 = vpack.c.bf16 %v695_v47, %v693_v6  ;;  %v2628_v6 = vld [vmem:[#allocation8 + $0x50] ss:$8 sps:$4 sm:$0xff]   ;;  %v2633_v47 = vld [vmem:[#allocation8 + $0x64] ss:$8 sps:$4 sm:$0xff]   ;;  %v2637_v46 = vld [vmem:[#allocation8 + $0x80] ss:$8 sps:$4 sm:$0xff]  }
 0x244   :  { %1344 = vmatpush1.bf16.msra.mxu1 %v2610_v20  ;;  %1681 = vmatpush1.bf16.msra.mxu0 %v2616_v45  ;;  %v2639_v31 = vld [vmem:[#allocation8 + $0x84] ss:$8 sps:$4 sm:$0xff]   ;;  %v2642_v61 = vld [vmem:[#allocation8 + $0x94] ss:$8 sps:$4 sm:$0xff]   ;;  %v2640_v35 = vld [vmem:[#allocation8 + $0x90] ss:$8 sps:$4 sm:$0xff]  }
 0x245   :  { %1018 = vmatprep.mubr.bf16.mxu0 %v711_v7  ;;  %1682 = vmatprep.subr.bf16.mxu0 %v2621_v5  ;;  %v2636_v7 = vld [vmem:[#allocation8 + $0x74] ss:$8 sps:$4 sm:$0xff]   ;;  %v2645_v20 = vld [vmem:[#allocation8 + $0xa4] ss:$8 sps:$4 sm:$0xff]   ;;  %v2643_v16 = vld [vmem:[#allocation8 + $0xa0] ss:$8 sps:$4 sm:$0xff]  }
 0x246   :  { %1019 = vmatmul.mubr.bf16.gmra.mrb[60].mxu0 %v710_v8  ;;  %v2631_v8 = vld [vmem:[#allocation8 + $0x60] ss:$8 sps:$4 sm:$0xff]   ;;  %v2648_v22 = vld [vmem:[#allocation8 + $0xb4] ss:$8 sps:$4 sm:$0xff]   ;;  %v2646_v13 = vld [vmem:[#allocation8 + $0xb0] ss:$8 sps:$4 sm:$0xff]  }
 0x247   :  { %v2651_v45 = vld [vmem:[#allocation8 + $0xc4] ss:$8 sps:$4 sm:$0xff]   ;;  %v2649_v5 = vld [vmem:[#allocation8 + $0xc0] ss:$8 sps:$4 sm:$0xff]  }
 0x248   :  { %1683 = vmatpush1.bf16.msra.mxu0 %v2619_v21  ;;  %v2654_v21 = vld [vmem:[#allocation8 + $0xd4] ss:$8 sps:$4 sm:$0xff]  }
 0x249   :  { %1684 = vmatprep.subr.bf16.mxu0 %v2624_v30  ;;  %v2652_v30 = vld [vmem:[#allocation8 + $0xd0] ss:$8 sps:$4 sm:$0xff]  }
 0x24c   :  { %1685 = vmatpush1.bf16.msra.mxu0 %v2622_v19  ;;  %v744_v19 = vld [vmem:[%s3746_s6] sm:$0x3] }
 0x24d   :  { %1686 = vmatprep.subr.bf16.mxu0 %v2627_v23  ;;  %v3337_v23 = vrot.slane %v744_v19, %v3092_v29 }
 0x250   :  { %1687 = vmatpush1.bf16.msra.mxu0 %v2625_v44  ;;  %v3340_v44 = vrot.slane %v744_v19, %v3087_v27 }
 0x251   :  { %1688 = vmatprep.subr.bf16.mxu0 %v2630_v24 }
 0x254   :  { %1689 = vmatpush1.bf16.msra.mxu0 %v2628_v6 }
 0x255   :  { %1690 = vmatprep.subr.bf16.mxu0 %v2633_v47 }
 0x258   :  { %1691 = vmatpush1.bf16.msra.mxu0 %v2631_v8 }
 0x259   :  { %1692 = vmatprep.subr.bf16.mxu0 %v2636_v7 }
 0x25c   :  { %1693 = vmatpush1.bf16.msra.mxu0 %v2634_v18 }
 0x25d   :  { %1694 = vmatprep.subr.bf16.mxu0 %v2639_v31 }
 0x260   :  { %1695 = vmatpush1.bf16.msra.mxu0 %v2637_v46 }
 0x261   :  { %1696 = vmatprep.subr.bf16.mxu0 %v2642_v61 }
 0x264   :  { %1697 = vmatpush1.bf16.msra.mxu0 %v2640_v35 }
 0x265   :  { %1698 = vmatprep.subr.bf16.mxu0 %v2645_v20 }
 0x268   :  { %1699 = vmatpush1.bf16.msra.mxu0 %v2643_v16 }
 0x269   :  { %1700 = vmatprep.subr.bf16.mxu0 %v2648_v22 }
 0x26c   :  { %1701 = vmatpush1.bf16.msra.mxu0 %v2646_v13 }
 0x26d   :  { %1702 = vmatprep.subr.bf16.mxu0 %v2651_v45 }
 0x270   :  { %1703 = vmatpush1.bf16.msra.mxu0 %v2649_v5 }
 0x271   :  { %1704 = vmatprep.subr.bf16.mxu0 %v2654_v21 }
 0x274   :  { %1705 = vmatpush1.bf16.msra.mxu0 %v2652_v30 }
 0x2e1   :  { %v950_v24 = vpop.f32.mrb[32].mxu0 }
 0x2e2   :  { %v951_v6 = vadd.f32 %v950_v24, %v3337_v23  ;;  %v952_v47 = vpop.f32.mrb[33].mxu0 }
 0x2e3   :  { %v953_v8 = vadd.f32 %v952_v47, %v3340_v44  ;;  %v954_v7 = vpop.f32.mrb[34].mxu0 }
 0x2e4   :  { %v955_v18 = vadd.f32 %v954_v7, %v3337_v23  ;;  %v956_v31 = vpop.f32.mrb[35].mxu0  ;;  %v1029_v35 = vmax.f32 %v951_v6, 0.0 }
 0x2e5   :  { %v1030_v46 = vmax.f32 %v953_v8, 0.0  ;;  %v957_v61 = vadd.f32 %v956_v31, %v3340_v44 }
 0x2e6   :  { %v1031_v20 = vmax.f32 %v955_v18, 0.0  ;;  %v3360_v21 = vadd.f32 %v1029_v35, %v299_v43 }
 0x2e7   :  { %v1032_v16 = vmax.f32 %v957_v61, 0.0  ;;  %v3352_v13 = vadd.f32 %v1030_v46, %v300_v41 }
 0x2e8   :  { %v3348_v22 = vadd.f32 %v1031_v20, %v301_v40 }
 0x2e9   :  { %v3356_v45 = vadd.f32 %v1032_v16, %v302_v42  ;;  %v960_v5 = vpop.f32.mrb[36].mxu0 }
 0x2ea   :  { %v961_v30 = vadd.f32 %v960_v5, %v3337_v23  ;;  %v962_v19 = vpop.f32.mrb[37].mxu0  ;;  %v1093_v41 = vpack.c.bf16 %v3348_v22, %v3360_v21 }
 0x2eb   :  { %v963_v37 = vadd.f32 %v962_v19, %v3340_v44  ;;  %v964_v40 = vpop.f32.mrb[38].mxu0  ;;  %v1094_v34 = vpack.c.bf16 %v3356_v45, %v3352_v13  ;;  %v3777_v19 = vmax.f32 %v3149_v62, 0.0 }
 0x2ec   :  { %v965_v39 = vadd.f32 %v964_v40, %v3337_v23  ;;  %v966_v42 = vpop.f32.mrb[39].mxu0  ;;  %v1033_v43 = vmax.f32 %v961_v30, 0.0  ;;  %v3778_v40 = vmax.f32 %v3158_v3, 0.0 }
 0x2ed   :  { %v1034_v24 = vmax.f32 %v963_v37, 0.0  ;;  %v967_v36 = vadd.f32 %v966_v42, %v3340_v44  ;;  %1345 = vmatprep.mubr.bf16.mxu1 %v1094_v34 }
 0x2ee   :  { %v1035_v6 = vmax.f32 %v965_v39, 0.0  ;;  %1346 = vmatmul.mubr.bf16.vlgmr.msra.gmra.mrb[32].mxu1 %v1093_v41  ;;  %v3384_v46 = vadd.f32 %v1033_v43, %v303_v57  ;;  %v3779_v39 = vmax.f32 %v3152_v0, 0.0 }
 0x2ef   :  { %v1036_v47 = vmax.f32 %v967_v36, 0.0  ;;  %v3376_v7 = vadd.f32 %v1034_v24, %v304_v55 }
 0x2f0   :  { %v3372_v8 = vadd.f32 %v1035_v6, %v305_v54 }
 0x2f1   :  { %v3380_v18 = vadd.f32 %v1036_v47, %v306_v56  ;;  %v970_v31 = vpop.f32.mrb[40].mxu0 }
 0x2f2   :  { %v971_v61 = vadd.f32 %v970_v31, %v3337_v23  ;;  %v972_v35 = vpop.f32.mrb[41].mxu0  ;;  %v1095_v53 = vpack.c.bf16 %v3372_v8, %v3384_v46 }
 0x2f3   :  { %v973_v51 = vadd.f32 %v972_v35, %v3340_v44  ;;  %v974_v54 = vpop.f32.mrb[42].mxu0  ;;  %v1096_v48 = vpack.c.bf16 %v3380_v18, %v3376_v7 }
 0x2f4   :  { %v975_v55 = vadd.f32 %v974_v54, %v3337_v23  ;;  %v976_v20 = vpop.f32.mrb[43].mxu0  ;;  %v1037_v57 = vmax.f32 %v971_v61, 0.0 }
 0x2f5   :  { %v1038_v56 = vmax.f32 %v973_v51, 0.0  ;;  %v977_v50 = vadd.f32 %v976_v20, %v3340_v44  ;;  %1355 = vmatprep.mubr.bf16.mxu1 %v1096_v48  ;;  %v3780_v51 = vmax.f32 %v3179_v15, 0.0  ;;  %v3781_v48 = vmax.f32 %v3173_v12, 0.0 }
 0x2f6   :  { %v1039_v16 = vmax.f32 %v975_v55, 0.0  ;;  %1356 = vmatmul.mubr.bf16.gmra.mrb[36].mxu1 %v1095_v53  ;;  %v3408_v42 = vadd.f32 %v1037_v57, %v3779_v39  ;;  %v3782_v20 = vmax.f32 %v3182_v17, 0.0 }
 0x2f7   :  { %v1040_v5 = vmax.f32 %v977_v50, 0.0  ;;  %v3400_v37 = vadd.f32 %v1038_v56, %v3777_v19  ;;  %v3783_v50 = vmax.f32 %v3176_v14, 0.0 }
 0x2f8   :  { %v3396_v30 = vadd.f32 %v1039_v16, %v309_v4 }
 0x2f9   :  { %v3404_v34 = vadd.f32 %v1040_v5, %v3778_v40  ;;  %v980_v41 = vpop.f32.mrb[44].mxu0 }
 0x2fa   :  { %v981_v24 = vadd.f32 %v980_v41, %v3337_v23  ;;  %v982_v36 = vpop.f32.mrb[45].mxu0  ;;  %v1097_v3 = vpack.c.bf16 %v3396_v30, %v3408_v42 }
 0x2fb   :  { %v983_v1 = vadd.f32 %v982_v36, %v3340_v44  ;;  %v984_v4 = vpop.f32.mrb[46].mxu0  ;;  %v1098_v62 = vpack.c.bf16 %v3404_v34, %v3400_v37 }
 0x2fc   :  { %v985_v43 = vadd.f32 %v984_v4, %v3337_v23  ;;  %v986_v6 = vpop.f32.mrb[47].mxu0  ;;  %v1041_v31 = vmax.f32 %v981_v24, 0.0  ;;  %v3784_v4 = vmax.f32 %v3203_v33, 0.0 }
 0x2fd   :  { %v1042_v47 = vmax.f32 %v983_v1, 0.0  ;;  %v987_v0 = vadd.f32 %v986_v6, %v3340_v44  ;;  %1365 = vmatprep.mubr.bf16.mxu1 %v1098_v62 }
 0x2fe   :  { %v1043_v61 = vmax.f32 %v985_v43, 0.0  ;;  %1366 = vmatmul.mubr.bf16.gmra.mrb[40].mxu1 %v1097_v3  ;;  %v3432_v57 = vadd.f32 %v1041_v31, %v3783_v50  ;;  %v3785_v43 = vmax.f32 %v3197_v26, 0.0  ;;  %v3786_v3 = vmax.f32 %v3206_v38, 0.0 }
 0x2ff   :  { %v1044_v35 = vmax.f32 %v987_v0, 0.0  ;;  %v3424_v55 = vadd.f32 %v1042_v47, %v3781_v48  ;;  %v3787_v31 = vmax.f32 %v3200_v32, 0.0 }
 0x300   :  { %v3420_v54 = vadd.f32 %v1043_v61, %v3780_v51 }
 0x301   :  { %v3428_v53 = vadd.f32 %v1044_v35, %v3782_v20  ;;  %v990_v56 = vpop.f32.mrb[48].mxu0 }
 0x302   :  { %v991_v16 = vadd.f32 %v990_v56, %v3337_v23  ;;  %v992_v5 = vpop.f32.mrb[49].mxu0  ;;  %v1099_v17 = vpack.c.bf16 %v3420_v54, %v3432_v57 }
 0x303   :  { %v993_v15 = vadd.f32 %v992_v5, %v3340_v44  ;;  %v994_v19 = vpop.f32.mrb[50].mxu0  ;;  %v1100_v12 = vpack.c.bf16 %v3428_v53, %v3424_v55 }
 0x304   :  { %v995_v40 = vadd.f32 %v994_v19, %v3337_v23  ;;  %v996_v41 = vpop.f32.mrb[51].mxu0  ;;  %v1045_v24 = vmax.f32 %v991_v16, 0.0  ;;  %v3788_v19 = vmax.f32 %v3227_v2, 0.0 }
 0x305   :  { %v1046_v39 = vmax.f32 %v993_v15, 0.0  ;;  %v997_v14 = vadd.f32 %v996_v41, %v3340_v44  ;;  %1375 = vmatprep.mubr.bf16.mxu1 %v1100_v12 }
 0x306   :  { %v1047_v36 = vmax.f32 %v995_v40, 0.0  ;;  %1376 = vmatmul.mubr.bf16.gmra.mrb[44].mxu1 %v1099_v17  ;;  %v3456_v61 = vadd.f32 %v1045_v24, %v3787_v31  ;;  %v3789_v40 = vmax.f32 %v3221_v60, 0.0  ;;  %v3790_v17 = vmax.f32 %v3230_v9, 0.0 }
 0x307   :  { %v1048_v1 = vmax.f32 %v997_v14, 0.0  ;;  %v3448_v6 = vadd.f32 %v1046_v39, %v3785_v43  ;;  %v3791_v24 = vmax.f32 %v3224_v63, 0.0 }
 0x308   :  { %v3444_v62 = vadd.f32 %v1047_v36, %v3784_v4 }
 0x309   :  { %v3452_v47 = vadd.f32 %v1048_v1, %v3786_v3  ;;  %v1000_v0 = vpop.f32.mrb[52].mxu0 }
 0x30a   :  { %v1001_v35 = vadd.f32 %v1000_v0, %v3337_v23  ;;  %v1002_v51 = vpop.f32.mrb[53].mxu0  ;;  %v1101_v38 = vpack.c.bf16 %v3444_v62, %v3456_v61 }
 0x30b   :  { %v1003_v33 = vadd.f32 %v1002_v51, %v3340_v44  ;;  %v1004_v48 = vpop.f32.mrb[54].mxu0  ;;  %v1102_v26 = vpack.c.bf16 %v3452_v47, %v3448_v6 }
 0x30c   :  { %v1005_v20 = vadd.f32 %v1004_v48, %v3337_v23  ;;  %v1006_v56 = vpop.f32.mrb[55].mxu0  ;;  %v1049_v16 = vmax.f32 %v1001_v35, 0.0  ;;  %v3792_v48 = vmax.f32 %v3251_v52, 0.0 }
 0x30d   :  { %v1050_v50 = vmax.f32 %v1003_v33, 0.0  ;;  %v1007_v32 = vadd.f32 %v1006_v56, %v3340_v44  ;;  %1385 = vmatprep.mubr.bf16.mxu1 %v1102_v26 }
 0x30e   :  { %v1051_v5 = vmax.f32 %v1005_v20, 0.0  ;;  %1386 = vmatmul.mubr.bf16.gmra.mrb[48].mxu1 %v1101_v38  ;;  %v3480_v36 = vadd.f32 %v1049_v16, %v3791_v24  ;;  %v3793_v20 = vmax.f32 %v3245_v28, 0.0  ;;  %v3794_v38 = vmax.f32 %v3254_v59, 0.0 }
 0x30f   :  { %v1052_v15 = vmax.f32 %v1007_v32, 0.0  ;;  %v3472_v41 = vadd.f32 %v1050_v50, %v3789_v40  ;;  %v3795_v16 = vmax.f32 %v3248_v49, 0.0 }
 0x310   :  { %v3468_v12 = vadd.f32 %v1051_v5, %v3788_v19 }
 0x311   :  { %v3476_v39 = vadd.f32 %v1052_v15, %v3790_v17  ;;  %v1010_v14 = vpop.f32.mrb[56].mxu0 }
 0x312   :  { %v1011_v1 = vadd.f32 %v1010_v14, %v3337_v23  ;;  %v1012_v4 = vpop.f32.mrb[57].mxu0  ;;  %v1103_v9 = vpack.c.bf16 %v3468_v12, %v3480_v36 }
 0x313   :  { %v1013_v2 = vadd.f32 %v1012_v4, %v3340_v44  ;;  %v1014_v43 = vpop.f32.mrb[58].mxu0  ;;  %v1104_v60 = vpack.c.bf16 %v3476_v39, %v3472_v41 }
 0x314   :  { %v1015_v3 = vadd.f32 %v1014_v43, %v3337_v23  ;;  %v1016_v0 = vpop.f32.mrb[59].mxu0  ;;  %v1053_v35 = vmax.f32 %v1011_v1, 0.0  ;;  %v3796_v43 = vmax.f32 %v3275_v10, 0.0 }
 0x315   :  { %v1054_v31 = vmax.f32 %v1013_v2, 0.0  ;;  %v1017_v63 = vadd.f32 %v1016_v0, %v3340_v44  ;;  %1395 = vmatprep.mubr.bf16.mxu1 %v1104_v60 }
 0x316   :  { %v1055_v51 = vmax.f32 %v1015_v3, 0.0  ;;  %1396 = vmatmul.mubr.bf16.gmra.mrb[52].mxu1 %v1103_v9  ;;  %v3504_v5 = vadd.f32 %v1053_v35, %v3795_v16  ;;  %v3797_v3 = vmax.f32 %v3269_v58, 0.0  ;;  %v2657_v35 = vld [vmem:[#allocation8 + $0xe4] ss:$8 sps:$4 sm:$0xff]   ;;  %v2655_v58 = vld [vmem:[#allocation8 + $0xe0] ss:$8 sps:$4 sm:$0xff]  }
 0x317   :  { %v1056_v33 = vmax.f32 %v1017_v63, 0.0  ;;  %v3496_v56 = vadd.f32 %v1054_v31, %v3793_v20  ;;  %v3799_v31 = vmax.f32 %v3272_v11, 0.0  ;;  %1706 = vmatprep.subr.bf16.mxu0 %v2657_v35  ;;  %v2661_v11 = vld [vmem:[%s3751_s11 + $0x40] sm:$0xff]   ;;  %v2664_v20 = vld [vmem:[%s3751_s11 + $0x8] sm:$0xff]   ;;  %v2667_v16 = vld [vmem:[%s3751_s11 + $0x58] sm:$0xff]  }
 0x318   :  { %v3492_v26 = vadd.f32 %v1055_v51, %v3792_v48  ;;  %1707 = vmatpush1.bf16.msra.mxu0 %v2655_v58  ;;  %v2660_v51 = vld [vmem:[#allocation8 + $0xf4] ss:$8 sps:$4 sm:$0xff]   ;;  %2439 = vmatprep.subr.bf16.mxu1 %v2661_v11  ;;  %v2663_v48 = vld [vmem:[%s3751_s11 + $0x48] sm:$0xff]  }
 0x319   :  { %v3500_v50 = vadd.f32 %v1056_v33, %v3794_v38  ;;  %v1020_v32 = vpop.f32.mrb[60].mxu0  ;;  %1708 = vmatprep.subr.bf16.mxu0 %v2660_v51  ;;  %v2662_v33 = vld [vmem:[%s3751_s11] sm:$0xff]   ;;  %v2665_v38 = vld [vmem:[%s3751_s11 + $0x50] sm:$0xff]  }
 0x31a   :  { %v1021_v15 = vadd.f32 %v1020_v32, %v3337_v23  ;;  %v1022_v19 = vpop.f32.mrb[61].mxu0  ;;  %v1105_v59 = vpack.c.bf16 %v3492_v26, %v3504_v5  ;;  %2447 = vmatpush3.bf16.msra.mxu1 %v2662_v33  ;;  %v2666_v32 = vld [vmem:[%s3751_s11 + $0x10] sm:$0xff]  }
 0x31b   :  { %v1023_v52 = vadd.f32 %v1022_v19, %v3340_v44  ;;  %v1024_v40 = vpop.f32.mrb[62].mxu0  ;;  %v1106_v28 = vpack.c.bf16 %v3500_v50, %v3496_v56  ;;  %2440 = vmatprep.subr.bf16.mxu1 %v2663_v48  ;;  %v3561_v19 = vld [vmem:[%s3751_s11 + $0x60] sm:$0xff]  }
 0x31c   :  { %v1025_v17 = vadd.f32 %v1024_v40, %v3337_v23  ;;  %v1026_v14 = vpop.f32.mrb[63].mxu0  ;;  %v1057_v1 = vmax.f32 %v1021_v15, 0.0  ;;  %v3798_v23 = vmax.f32 %v3278_v25, 0.0  ;;  %v2658_v25 = vld [vmem:[#allocation8 + $0xf0] ss:$8 sps:$4 sm:$0xff]  }
 0x31d   :  { %v1058_v24 = vmax.f32 %v1023_v52, 0.0  ;;  %v1027_v49 = vadd.f32 %v1026_v14, %v3340_v44  ;;  %1405 = vmatprep.mubr.bf16.mxu1 %v1106_v28  ;;  %1709 = vmatpush1.bf16.msra.mxu0 %v2658_v25  ;;  %v2668_v15 = vld [vmem:[%s3751_s11 + $0x18] sm:$0xff]   ;;  %v3567_v52 = vld [vmem:[%s3751_s11 + $0x20] sm:$0xff]  }
 0x31e   :  { %v1059_v4 = vmax.f32 %v1025_v17, 0.0  ;;  %1406 = vmatmul.mubr.bf16.gmra.mrb[56].mxu1 %v1105_v59  ;;  %v3528_v44 = vadd.f32 %v1057_v1, %v3799_v31  ;;  %2375 = vmatprep.subr.bf16.mxu0 %v2661_v11  ;;  %v1141_v40 = vld [vmem:[%s3748_s8] sm:$0x3] }
 0x31f   :  { %v1060_v2 = vmax.f32 %v1027_v49, 0.0  ;;  %v3520_v0 = vadd.f32 %v1058_v24, %v3797_v3  ;;  %2448 = vmatpush3.bf16.msra.mxu1 %v2664_v20  ;;  %v3574_v28 = vrot.slane %v1141_v40, %v3092_v29  ;;  %v3577_v17 = vrot.slane %v1141_v40, %v3087_v27 }
 0x320   :  { %v3516_v60 = vadd.f32 %v1059_v4, %v3796_v43  ;;  %2441 = vmatprep.subr.bf16.mxu1 %v2665_v38 }
 0x321   :  { %v3524_v9 = vadd.f32 %v1060_v2, %v3798_v23 }
 0x322   :  { %v1107_v10 = vpack.c.bf16 %v3516_v60, %v3528_v44 }
 0x323   :  { %v1108_v63 = vpack.c.bf16 %v3524_v9, %v3520_v0  ;;  %2449 = vmatpush3.bf16.msra.mxu1 %v2666_v32 }
 0x324   :  { %2442 = vmatprep.subr.bf16.mxu1 %v2667_v16 }
 0x325   :  { %1415 = vmatprep.mubr.bf16.mxu1 %v1108_v63 }
 0x326   :  { %1416 = vmatmul.mubr.bf16.gmra.mrb[60].mxu1 %v1107_v10 }
 0x327   :  { %2450 = vmatpush3.bf16.msra.mxu1 %v2668_v15 }
 0x328   :  { %2443 = vmatprep.subr.bf16.mxu1 %v3561_v19 }
 0x32b   :  { %2451 = vmatpush3.bf16.msra.mxu1 %v3567_v52 }
 0x3c1   :  { %v1347_v14 = vpop.f32.mrb[32].mxu1 }
 0x3c2   :  { %v1348_v59 = vadd.f32 %v1347_v14, %v3574_v28  ;;  %v1349_v24 = vpop.f32.mrb[33].mxu1 }
 0x3c3   :  { %v1350_v49 = vadd.f32 %v1349_v24, %v3577_v17  ;;  %v1351_v1 = vpop.f32.mrb[34].mxu1 }
 0x3c4   :  { %v1352_v4 = vadd.f32 %v1351_v1, %v3574_v28  ;;  %v1353_v2 = vpop.f32.mrb[35].mxu1  ;;  %v1426_v3 = vmax.f32 %v1348_v59, 0.0 }
 0x3c5   :  { %v1354_v43 = vadd.f32 %v1353_v2, %v3577_v17  ;;  %v1427_v31 = vmax.f32 %v1350_v49, 0.0 }
 0x3c6   :  { %v1428_v23 = vmax.f32 %v1352_v4, 0.0 }
 0x3c7   :  { %v1429_v63 = vmax.f32 %v1354_v43, 0.0 }
 0x3c8   :  { %v1458_v10 = vpack.c.bf16 %v1428_v23, %v1426_v3 }
 0x3c9   :  { %v1459_v35 = vpack.c.bf16 %v1429_v63, %v1427_v31  ;;  %v1357_v58 = vpop.f32.mrb[36].mxu1 }
 0x3ca   :  { %v1358_v51 = vadd.f32 %v1357_v58, %v3574_v28  ;;  %v1359_v25 = vpop.f32.mrb[37].mxu1 }
 0x3cb   :  { %v1360_v11 = vadd.f32 %v1359_v25, %v3577_v17  ;;  %v1361_v40 = vpop.f32.mrb[38].mxu1  ;;  %1710 = vmatprep.mubr.bf16.mxu0 %v1459_v35 }
 0x3cc   :  { %v1362_v14 = vadd.f32 %v1361_v40, %v3574_v28  ;;  %v1363_v24 = vpop.f32.mrb[39].mxu1  ;;  %1711 = vmatmul.mubr.bf16.vlgmr.msra.gmra.mrb[64].mxu0 %v1458_v10  ;;  %v1430_v59 = vmax.f32 %v1358_v51, 0.0 }
 0x3cd   :  { %v1364_v1 = vadd.f32 %v1363_v24, %v3577_v17  ;;  %2376 = vmatpush3.bf16.msra.mxu0 %v2662_v33  ;;  %v1431_v4 = vmax.f32 %v1360_v11, 0.0 }
 0x3ce   :  { %v1432_v49 = vmax.f32 %v1362_v14, 0.0  ;;  %2377 = vmatprep.subr.bf16.mxu0 %v2663_v48 }
 0x3cf   :  { %v1433_v2 = vmax.f32 %v1364_v1, 0.0 }
 0x3d0   :  { %v1460_v43 = vpack.c.bf16 %v1432_v49, %v1430_v59 }
 0x3d1   :  { %v1461_v3 = vpack.c.bf16 %v1433_v2, %v1431_v4  ;;  %v1367_v23 = vpop.f32.mrb[40].mxu1  ;;  %2378 = vmatpush3.bf16.msra.mxu0 %v2664_v20 }
 0x3d2   :  { %v1368_v31 = vadd.f32 %v1367_v23, %v3574_v28  ;;  %v1369_v63 = vpop.f32.mrb[41].mxu1  ;;  %2379 = vmatprep.subr.bf16.mxu0 %v2665_v38 }
 0x3d3   :  { %v1370_v35 = vadd.f32 %v1369_v63, %v3577_v17  ;;  %v1371_v58 = vpop.f32.mrb[42].mxu1  ;;  %1720 = vmatprep.mubr.bf16.mxu0 %v1461_v3 }
 0x3d4   :  { %v1372_v10 = vadd.f32 %v1371_v58, %v3574_v28  ;;  %v1373_v33 = vpop.f32.mrb[43].mxu1  ;;  %1721 = vmatmul.mubr.bf16.gmra.mrb[68].mxu0 %v1460_v43  ;;  %v1434_v51 = vmax.f32 %v1368_v31, 0.0 }
 0x3d5   :  { %v1374_v48 = vadd.f32 %v1373_v33, %v3577_v17  ;;  %2380 = vmatpush3.bf16.msra.mxu0 %v2666_v32  ;;  %v1435_v11 = vmax.f32 %v1370_v35, 0.0 }
 0x3d6   :  { %v1436_v25 = vmax.f32 %v1372_v10, 0.0  ;;  %2381 = vmatprep.subr.bf16.mxu0 %v2667_v16 }
 0x3d7   :  { %v1437_v20 = vmax.f32 %v1374_v48, 0.0 }
 0x3d8   :  { %v1462_v40 = vpack.c.bf16 %v1436_v25, %v1434_v51 }
 0x3d9   :  { %v1463_v14 = vpack.c.bf16 %v1437_v20, %v1435_v11  ;;  %v1377_v24 = vpop.f32.mrb[44].mxu1  ;;  %2382 = vmatpush3.bf16.msra.mxu0 %v2668_v15 }
 0x3da   :  { %v1378_v38 = vadd.f32 %v1377_v24, %v3574_v28  ;;  %v1379_v1 = vpop.f32.mrb[45].mxu1  ;;  %2383 = vmatprep.subr.bf16.mxu0 %v3561_v19 }
 0x3db   :  { %v1380_v59 = vadd.f32 %v1379_v1, %v3577_v17  ;;  %v1381_v49 = vpop.f32.mrb[46].mxu1  ;;  %1730 = vmatprep.mubr.bf16.mxu0 %v1463_v14 }
 0x3dc   :  { %v1382_v32 = vadd.f32 %v1381_v49, %v3574_v28  ;;  %v1383_v4 = vpop.f32.mrb[47].mxu1  ;;  %1731 = vmatmul.mubr.bf16.gmra.mrb[72].mxu0 %v1462_v40  ;;  %v1438_v2 = vmax.f32 %v1378_v38, 0.0 }
 0x3dd   :  { %v1384_v16 = vadd.f32 %v1383_v4, %v3577_v17  ;;  %2384 = vmatpush3.bf16.msra.mxu0 %v3567_v52  ;;  %v1439_v15 = vmax.f32 %v1380_v59, 0.0 }
 0x3de   :  { %v1440_v43 = vmax.f32 %v1382_v32, 0.0 }
 0x3df   :  { %v1441_v3 = vmax.f32 %v1384_v16, 0.0 }
 0x3e0   :  { %v1464_v23 = vpack.c.bf16 %v1440_v43, %v1438_v2 }
 0x3e1   :  { %v1465_v31 = vpack.c.bf16 %v1441_v3, %v1439_v15  ;;  %v1387_v63 = vpop.f32.mrb[48].mxu1 }
 0x3e2   :  { %v1388_v19 = vadd.f32 %v1387_v63, %v3574_v28  ;;  %v1389_v35 = vpop.f32.mrb[49].mxu1 }
 0x3e3   :  { %v1390_v58 = vadd.f32 %v1389_v35, %v3577_v17  ;;  %v1391_v10 = vpop.f32.mrb[50].mxu1  ;;  %1740 = vmatprep.mubr.bf16.mxu0 %v1465_v31 }
 0x3e4   :  { %v1392_v33 = vadd.f32 %v1391_v10, %v3574_v28  ;;  %v1393_v48 = vpop.f32.mrb[51].mxu1  ;;  %1741 = vmatmul.mubr.bf16.gmra.mrb[76].mxu0 %v1464_v23  ;;  %v1442_v51 = vmax.f32 %v1388_v19, 0.0 }
 0x3e5   :  { %v1394_v52 = vadd.f32 %v1393_v48, %v3577_v17  ;;  %v1443_v11 = vmax.f32 %v1390_v58, 0.0 }
 0x3e6   :  { %v1444_v25 = vmax.f32 %v1392_v33, 0.0 }
 0x3e7   :  { %v1445_v20 = vmax.f32 %v1394_v52, 0.0 }
 0x3e8   :  { %v1466_v40 = vpack.c.bf16 %v1444_v25, %v1442_v51 }
 0x3e9   :  { %v1467_v14 = vpack.c.bf16 %v1445_v20, %v1443_v11  ;;  %v1397_v24 = vpop.f32.mrb[52].mxu1 }
 0x3ea   :  { %v1398_v38 = vadd.f32 %v1397_v24, %v3574_v28  ;;  %v1399_v1 = vpop.f32.mrb[53].mxu1 }
 0x3eb   :  { %v1400_v59 = vadd.f32 %v1399_v1, %v3577_v17  ;;  %v1401_v49 = vpop.f32.mrb[54].mxu1  ;;  %1750 = vmatprep.mubr.bf16.mxu0 %v1467_v14 }
 0x3ec   :  { %v1402_v32 = vadd.f32 %v1401_v49, %v3574_v28  ;;  %v1403_v4 = vpop.f32.mrb[55].mxu1  ;;  %1751 = vmatmul.mubr.bf16.gmra.mrb[80].mxu0 %v1466_v40  ;;  %v1446_v2 = vmax.f32 %v1398_v38, 0.0 }
 0x3ed   :  { %v1404_v16 = vadd.f32 %v1403_v4, %v3577_v17  ;;  %v1447_v15 = vmax.f32 %v1400_v59, 0.0 }
 0x3ee   :  { %v1448_v43 = vmax.f32 %v1402_v32, 0.0 }
 0x3ef   :  { %v1449_v3 = vmax.f32 %v1404_v16, 0.0 }
 0x3f0   :  { %v1468_v23 = vpack.c.bf16 %v1448_v43, %v1446_v2 }
 0x3f1   :  { %v1469_v31 = vpack.c.bf16 %v1449_v3, %v1447_v15  ;;  %v1407_v63 = vpop.f32.mrb[56].mxu1 }
 0x3f2   :  { %v1408_v19 = vadd.f32 %v1407_v63, %v3574_v28  ;;  %v1409_v35 = vpop.f32.mrb[57].mxu1  ;;  %v2671_v63 = vld [vmem:[%s3751_s11 + $0x68] sm:$0xff]  }
 0x3f3   :  { %v1410_v58 = vadd.f32 %v1409_v35, %v3577_v17  ;;  %v1411_v10 = vpop.f32.mrb[58].mxu1  ;;  %1760 = vmatprep.mubr.bf16.mxu0 %v1469_v31  ;;  %2385 = vmatprep.subr.bf16.mxu0 %v2671_v63  ;;  %v2675_v35 = vld [vmem:[%s3751_s11 + $0x78] sm:$0xff]  }
 0x3f4   :  { %v1412_v33 = vadd.f32 %v1411_v10, %v3574_v28  ;;  %v1413_v48 = vpop.f32.mrb[59].mxu1  ;;  %1761 = vmatmul.mubr.bf16.gmra.mrb[84].mxu0 %v1468_v23  ;;  %v1450_v51 = vmax.f32 %v1408_v19, 0.0  ;;  %2444 = vmatprep.subr.bf16.mxu1 %v2671_v63  ;;  %v2674_v19 = vld [vmem:[%s3751_s11 + $0x30] sm:$0xff]   ;;  %v1506_v10 = vld [vmem:[%s3750_s10] sm:$0x3] }
 0x3f5   :  { %v1414_v52 = vadd.f32 %v1413_v48, %v3577_v17  ;;  %v1451_v11 = vmax.f32 %v1410_v58, 0.0  ;;  %v2676_v58 = vld [vmem:[%s3751_s11 + $0x38] sm:$0xff]   ;;  %v3638_v48 = vrot.slane %v1506_v10, %v3087_v27 }
 0x3f6   :  { %v1452_v25 = vmax.f32 %v1412_v33, 0.0  ;;  %v3635_v33 = vrot.slane %v1506_v10, %v3092_v29 }
 0x3f7   :  { %v1453_v20 = vmax.f32 %v1414_v52, 0.0 }
 0x3f8   :  { %v1470_v40 = vpack.c.bf16 %v1452_v25, %v1450_v51 }
 0x3f9   :  { %v1471_v14 = vpack.c.bf16 %v1453_v20, %v1451_v11  ;;  %v1417_v24 = vpop.f32.mrb[60].mxu1 }
 0x3fa   :  { %v1418_v38 = vadd.f32 %v1417_v24, %v3574_v28  ;;  %v1419_v1 = vpop.f32.mrb[61].mxu1 }
 0x3fb   :  { %v1420_v59 = vadd.f32 %v1419_v1, %v3577_v17  ;;  %v1421_v49 = vpop.f32.mrb[62].mxu1  ;;  %1770 = vmatprep.mubr.bf16.mxu0 %v1471_v14 }
 0x3fc   :  { %v1422_v32 = vadd.f32 %v1421_v49, %v3574_v28  ;;  %v1423_v4 = vpop.f32.mrb[63].mxu1  ;;  %1771 = vmatmul.mubr.bf16.gmra.mrb[88].mxu0 %v1470_v40  ;;  %v1454_v2 = vmax.f32 %v1418_v38, 0.0  ;;  %v2672_v28 = vld [vmem:[%s3751_s11 + $0x28] sm:$0xff]  }
 0x3fd   :  { %v1424_v16 = vadd.f32 %v1423_v4, %v3577_v17  ;;  %v1455_v15 = vmax.f32 %v1420_v59, 0.0  ;;  %2386 = vmatpush3.bf16.msra.mxu0 %v2672_v28  ;;  %2452 = vmatpush3.bf16.msra.mxu1 %v2672_v28  ;;  %v2673_v17 = vld [vmem:[%s3751_s11 + $0x70] sm:$0xff]  }
 0x3fe   :  { %v1456_v43 = vmax.f32 %v1422_v32, 0.0  ;;  %2387 = vmatprep.subr.bf16.mxu0 %v2673_v17  ;;  %2445 = vmatprep.subr.bf16.mxu1 %v2673_v17 }
 0x3ff   :  { %v1457_v3 = vmax.f32 %v1424_v16, 0.0 }
 0x400   :  { %v1472_v23 = vpack.c.bf16 %v1456_v43, %v1454_v2 }
 0x401   :  { %v1473_v31 = vpack.c.bf16 %v1457_v3, %v1455_v15  ;;  %2388 = vmatpush3.bf16.msra.mxu0 %v2674_v19  ;;  %2453 = vmatpush3.bf16.msra.mxu1 %v2674_v19 }
 0x402   :  { %2389 = vmatprep.subr.bf16.mxu0 %v2675_v35  ;;  %2446 = vmatprep.subr.bf16.mxu1 %v2675_v35 }
 0x403   :  { %1780 = vmatprep.mubr.bf16.mxu0 %v1473_v31 }
 0x404   :  { %1781 = vmatmul.mubr.bf16.gmra.mrb[92].mxu0 %v1472_v23 }
 0x405   :  { %2390 = vmatpush3.bf16.msra.mxu0 %v2676_v58  ;;  %2454 = vmatpush3.bf16.msra.mxu1 %v2676_v58 }
 0x49f   :  { %v1712_v52 = vpop.f32.mrb[64].mxu0 }
 0x4a0   :  { %v1713_v51 = vadd.f32 %v1712_v52, %v3635_v33  ;;  %v1714_v25 = vpop.f32.mrb[65].mxu0 }
 0x4a1   :  { %v1715_v11 = vadd.f32 %v1714_v25, %v3638_v48  ;;  %v1716_v20 = vpop.f32.mrb[66].mxu0 }
 0x4a2   :  { %v1791_v40 = vmax.f32 %v1713_v51, 0.0  ;;  %v1717_v14 = vadd.f32 %v1716_v20, %v3635_v33  ;;  %v1718_v24 = vpop.f32.mrb[67].mxu0 }
 0x4a3   :  { %v1792_v38 = vmax.f32 %v1715_v11, 0.0  ;;  %v1719_v1 = vadd.f32 %v1718_v24, %v3638_v48 }
 0x4a4   :  { %v1793_v59 = vmax.f32 %v1717_v14, 0.0  ;;  %v1823_v49 = vadd.f32 %v1791_v40, %v3360_v21 }
 0x4a5   :  { %v1794_v29 = vmax.f32 %v1719_v1, 0.0  ;;  %v1824_v32 = vadd.f32 %v1792_v38, %v3352_v13 }
 0x4a6   :  { %v1825_v27 = vadd.f32 %v1793_v59, %v3348_v22 }
 0x4a7   :  { %v1826_v4 = vadd.f32 %v1794_v29, %v3356_v45  ;;  %v1722_v16 = vpop.f32.mrb[68].mxu0 }
 0x4a8   :  { %v1855_v2 = vpack.c.bf16 %v1825_v27, %v1823_v49  ;;  %v1723_v43 = vadd.f32 %v1722_v16, %v3635_v33  ;;  %v1724_v15 = vpop.f32.mrb[69].mxu0 }
 0x4a9   :  { %v1725_v3 = vadd.f32 %v1724_v15, %v3638_v48  ;;  %v1726_v23 = vpop.f32.mrb[70].mxu0  ;;  %v1856_v31 = vpack.c.bf16 %v1826_v4, %v1824_v32 }
 0x4aa   :  { %v1795_v63 = vmax.f32 %v1723_v43, 0.0  ;;  %v1727_v28 = vadd.f32 %v1726_v23, %v3635_v33  ;;  %v1728_v17 = vpop.f32.mrb[71].mxu0 }
 0x4ab   :  { %v1796_v21 = vmax.f32 %v1725_v3, 0.0  ;;  %v1729_v22 = vadd.f32 %v1728_v17, %v3638_v48  ;;  %2038 = vmatprep.mubr.bf16.mxu0 %v1856_v31 }
 0x4ac   :  { %v1797_v13 = vmax.f32 %v1727_v28, 0.0  ;;  %2039 = vmatmul.mubr.bf16.vlgmr.msra.gmra.mrb[96].mxu0 %v1855_v2  ;;  %v1827_v19 = vadd.f32 %v1795_v63, %v3384_v46 }
 0x4ad   :  { %v1798_v45 = vmax.f32 %v1729_v22, 0.0  ;;  %v1828_v58 = vadd.f32 %v1796_v21, %v3376_v7 }
 0x4ae   :  { %v1829_v35 = vadd.f32 %v1797_v13, %v3372_v8 }
 0x4af   :  { %v1830_v10 = vadd.f32 %v1798_v45, %v3380_v18  ;;  %v1732_v52 = vpop.f32.mrb[72].mxu0 }
 0x4b0   :  { %v1733_v51 = vadd.f32 %v1732_v52, %v3635_v33  ;;  %v1734_v25 = vpop.f32.mrb[73].mxu0  ;;  %v1857_v11 = vpack.c.bf16 %v1829_v35, %v1827_v19 }
 0x4b1   :  { %v1735_v20 = vadd.f32 %v1734_v25, %v3638_v48  ;;  %v1736_v40 = vpop.f32.mrb[74].mxu0  ;;  %v1858_v14 = vpack.c.bf16 %v1830_v10, %v1828_v58 }
 0x4b2   :  { %v1799_v24 = vmax.f32 %v1733_v51, 0.0  ;;  %v1737_v38 = vadd.f32 %v1736_v40, %v3635_v33  ;;  %v1738_v1 = vpop.f32.mrb[75].mxu0 }
 0x4b3   :  { %v1800_v46 = vmax.f32 %v1735_v20, 0.0  ;;  %v1739_v8 = vadd.f32 %v1738_v1, %v3638_v48  ;;  %2046 = vmatprep.mubr.bf16.mxu0 %v1858_v14 }
 0x4b4   :  { %v1801_v7 = vmax.f32 %v1737_v38, 0.0  ;;  %2047 = vmatmul.mubr.bf16.gmra.mrb[100].mxu0 %v1857_v11  ;;  %v1831_v59 = vadd.f32 %v1799_v24, %v3408_v42 }
 0x4b5   :  { %v1802_v18 = vmax.f32 %v1739_v8, 0.0  ;;  %v1832_v49 = vadd.f32 %v1800_v46, %v3400_v37 }
 0x4b6   :  { %v1833_v29 = vadd.f32 %v1801_v7, %v3396_v30 }
 0x4b7   :  { %v1834_v27 = vadd.f32 %v1802_v18, %v3404_v34  ;;  %v1742_v32 = vpop.f32.mrb[76].mxu0 }
 0x4b8   :  { %v1743_v4 = vadd.f32 %v1742_v32, %v3635_v33  ;;  %v1744_v16 = vpop.f32.mrb[77].mxu0  ;;  %v1859_v2 = vpack.c.bf16 %v1833_v29, %v1831_v59 }
 0x4b9   :  { %v1745_v43 = vadd.f32 %v1744_v16, %v3638_v48  ;;  %v1746_v15 = vpop.f32.mrb[78].mxu0  ;;  %v1860_v3 = vpack.c.bf16 %v1834_v27, %v1832_v49 }
 0x4ba   :  { %v1803_v23 = vmax.f32 %v1743_v4, 0.0  ;;  %v1747_v31 = vadd.f32 %v1746_v15, %v3635_v33  ;;  %v1748_v63 = vpop.f32.mrb[79].mxu0 }
 0x4bb   :  { %v1804_v42 = vmax.f32 %v1745_v43, 0.0  ;;  %v1749_v30 = vadd.f32 %v1748_v63, %v3638_v48  ;;  %2054 = vmatprep.mubr.bf16.mxu0 %v1860_v3 }
 0x4bc   :  { %v1805_v37 = vmax.f32 %v1747_v31, 0.0  ;;  %2055 = vmatmul.mubr.bf16.gmra.mrb[104].mxu0 %v1859_v2  ;;  %v1835_v28 = vadd.f32 %v1803_v23, %v3432_v57 }
 0x4bd   :  { %v1806_v34 = vmax.f32 %v1749_v30, 0.0  ;;  %v1836_v21 = vadd.f32 %v1804_v42, %v3424_v55 }
 0x4be   :  { %v1837_v17 = vadd.f32 %v1805_v37, %v3420_v54 }
 0x4bf   :  { %v1838_v22 = vadd.f32 %v1806_v34, %v3428_v53  ;;  %v1752_v13 = vpop.f32.mrb[80].mxu0 }
 0x4c0   :  { %v1861_v45 = vpack.c.bf16 %v1837_v17, %v1835_v28  ;;  %v1753_v19 = vadd.f32 %v1752_v13, %v3635_v33  ;;  %v1754_v35 = vpop.f32.mrb[81].mxu0 }
 0x4c1   :  { %v1755_v58 = vadd.f32 %v1754_v35, %v3638_v48  ;;  %v1756_v10 = vpop.f32.mrb[82].mxu0  ;;  %v1862_v52 = vpack.c.bf16 %v1838_v22, %v1836_v21 }
 0x4c2   :  { %v1807_v51 = vmax.f32 %v1753_v19, 0.0  ;;  %v1757_v25 = vadd.f32 %v1756_v10, %v3635_v33  ;;  %v1758_v11 = vpop.f32.mrb[83].mxu0 }
 0x4c3   :  { %v1808_v57 = vmax.f32 %v1755_v58, 0.0  ;;  %v1759_v54 = vadd.f32 %v1758_v11, %v3638_v48  ;;  %2062 = vmatprep.mubr.bf16.mxu1 %v1862_v52 }
 0x4c4   :  { %v1809_v55 = vmax.f32 %v1757_v25, 0.0  ;;  %2063 = vmatmul.mubr.bf16.vlgmr.msra.gmra.mrb[64].mxu1 %v1861_v45  ;;  %v1839_v20 = vadd.f32 %v1807_v51, %v3456_v61 }
 0x4c5   :  { %v1810_v53 = vmax.f32 %v1759_v54, 0.0  ;;  %v1840_v14 = vadd.f32 %v1808_v57, %v3448_v6 }
 0x4c6   :  { %v1841_v40 = vadd.f32 %v1809_v55, %v3444_v62 }
 0x4c7   :  { %v1842_v24 = vadd.f32 %v1810_v53, %v3452_v47  ;;  %v1762_v38 = vpop.f32.mrb[84].mxu0 }
 0x4c8   :  { %v1763_v1 = vadd.f32 %v1762_v38, %v3635_v33  ;;  %v1764_v46 = vpop.f32.mrb[85].mxu0  ;;  %v1863_v8 = vpack.c.bf16 %v1841_v40, %v1839_v20 }
 0x4c9   :  { %v1765_v7 = vadd.f32 %v1764_v46, %v3638_v48  ;;  %v1766_v18 = vpop.f32.mrb[86].mxu0  ;;  %v1864_v59 = vpack.c.bf16 %v1842_v24, %v1840_v14 }
 0x4ca   :  { %v1811_v29 = vmax.f32 %v1763_v1, 0.0  ;;  %v1767_v49 = vadd.f32 %v1766_v18, %v3635_v33  ;;  %v1768_v27 = vpop.f32.mrb[87].mxu0 }
 0x4cb   :  { %v1812_v61 = vmax.f32 %v1765_v7, 0.0  ;;  %v1769_v62 = vadd.f32 %v1768_v27, %v3638_v48  ;;  %2070 = vmatprep.mubr.bf16.mxu1 %v1864_v59 }
 0x4cc   :  { %v1813_v6 = vmax.f32 %v1767_v49, 0.0  ;;  %2071 = vmatmul.mubr.bf16.gmra.mrb[68].mxu1 %v1863_v8  ;;  %v1843_v32 = vadd.f32 %v1811_v29, %v3480_v36 }
 0x4cd   :  { %v1814_v47 = vmax.f32 %v1769_v62, 0.0  ;;  %v1844_v16 = vadd.f32 %v1812_v61, %v3472_v41 }
 0x4ce   :  { %v1845_v4 = vadd.f32 %v1813_v6, %v3468_v12 }
 0x4cf   :  { %v1846_v2 = vadd.f32 %v1814_v47, %v3476_v39  ;;  %v1772_v43 = vpop.f32.mrb[88].mxu0 }
 0x4d0   :  { %v1773_v15 = vadd.f32 %v1772_v43, %v3635_v33  ;;  %v1774_v3 = vpop.f32.mrb[89].mxu0  ;;  %v1865_v23 = vpack.c.bf16 %v1845_v4, %v1843_v32 }
 0x4d1   :  { %v1775_v31 = vadd.f32 %v1774_v3, %v3638_v48  ;;  %v1776_v63 = vpop.f32.mrb[90].mxu0  ;;  %v1866_v42 = vpack.c.bf16 %v1846_v2, %v1844_v16 }
 0x4d2   :  { %v1815_v30 = vmax.f32 %v1773_v15, 0.0  ;;  %v1777_v37 = vadd.f32 %v1776_v63, %v3635_v33  ;;  %v1778_v34 = vpop.f32.mrb[91].mxu0 }
 0x4d3   :  { %v1816_v36 = vmax.f32 %v1775_v31, 0.0  ;;  %v1779_v12 = vadd.f32 %v1778_v34, %v3638_v48  ;;  %2078 = vmatprep.mubr.bf16.mxu1 %v1866_v42 }
 0x4d4   :  { %v1817_v41 = vmax.f32 %v1777_v37, 0.0  ;;  %2079 = vmatmul.mubr.bf16.gmra.mrb[72].mxu1 %v1865_v23  ;;  %v1847_v28 = vadd.f32 %v1815_v30, %v3504_v5 }
 0x4d5   :  { %v1818_v39 = vmax.f32 %v1779_v12, 0.0  ;;  %v1848_v21 = vadd.f32 %v1816_v36, %v3496_v56 }
 0x4d6   :  { %v1849_v17 = vadd.f32 %v1817_v41, %v3492_v26 }
 0x4d7   :  { %v1850_v22 = vadd.f32 %v1818_v39, %v3500_v50  ;;  %v1782_v13 = vpop.f32.mrb[92].mxu0 }
 0x4d8   :  { %v1783_v45 = vadd.f32 %v1782_v13, %v3635_v33  ;;  %v1784_v19 = vpop.f32.mrb[93].mxu0  ;;  %v1867_v35 = vpack.c.bf16 %v1849_v17, %v1847_v28 }
 0x4d9   :  { %v1785_v58 = vadd.f32 %v1784_v19, %v3638_v48  ;;  %v1786_v10 = vpop.f32.mrb[94].mxu0  ;;  %v1868_v52 = vpack.c.bf16 %v1850_v22, %v1848_v21 }
 0x4da   :  { %v1819_v51 = vmax.f32 %v1783_v45, 0.0  ;;  %v1787_v25 = vadd.f32 %v1786_v10, %v3635_v33  ;;  %v1788_v11 = vpop.f32.mrb[95].mxu0 }
 0x4db   :  { %v1820_v5 = vmax.f32 %v1785_v58, 0.0  ;;  %v1789_v26 = vadd.f32 %v1788_v11, %v3638_v48  ;;  %2086 = vmatprep.mubr.bf16.mxu1 %v1868_v52  ;;  %v3707_v48 = vld [vmem:[%s3752_s12] ss:$0 sm:$0xff]  ;;  %s2866_s12 = smov [#allocation10]  }
 0x4dc   :  { %v1821_v56 = vmax.f32 %v1787_v25, 0.0  ;;  %2087 = vmatmul.mubr.bf16.gmra.mrb[76].mxu1 %v1867_v35  ;;  %v1851_v57 = vadd.f32 %v1819_v51, %v3528_v44  ;;  %s2204_s19 = sshll.u32 %s2866_s12, 4  ;;  %s2205_s19 = int_to_ptr.vmem [resolvable:$true] %s2204_s19 }
 0x4dd   :  { %v1822_v50 = vmax.f32 %v1789_v26, 0.0  ;;  %v1852_v55 = vadd.f32 %v1820_v5, %v3520_v0  ;;  %s2829_s1 = scalar_lea.vmem %s2205_s19, 2048  ;;  %p2834_p5 = scmp.lt.s32.totalorder %s2205_s19, %s2205_s19 }
 0x4de   :  { %v1853_v54 = vadd.f32 %v1821_v56, %v3516_v60  ;;  %p2830_p4 = scmp.ne.s32.totalorder %s2205_s19, %s2829_s1  ;;  %p2835_p6 = scmp.lt.s32.totalorder %s2829_s1, %s2829_s1 }
 0x4df   :  { %v1854_v53 = vadd.f32 %v1822_v50, %v3524_v9 }
 0x4e0   :  { %v1869_v20 = vpack.c.bf16 %v1853_v54, %v1851_v57  ;;  %p2836_p7 = por %p2835_p6, %p2834_p5 }
 0x4e1   :  { %v1870_v40 = vpack.c.bf16 %v1854_v53, %v1852_v55 }
 0x4e2   :  { %p2837_p8 = pnand %p2836_p7, %p2830_p4 }
 0x4e3   :  { %2094 = vmatprep.mubr.bf16.mxu1 %v1870_v40 }
 0x4e4   :  { %2095 = vmatmul.mubr.bf16.gmra.mrb[80].mxu1 %v1869_v20 }
 0x57f   :  { %v2391_v33 = vpop.f32.mrb[96].mxu0 }
 0x580   :  { %v2392_v14 = vpop.f32.mrb[97].mxu0 }
 0x581   :  { %v2393_v24 = vadd.f32 %v2392_v14, %v2391_v33  ;;  %v2394_v38 = vpop.f32.mrb[98].mxu0 }
 0x582   :  { %v2395_v44 = vpop.f32.mrb[99].mxu0 }
 0x583   :  { %v2041_v60 = vadd.f32 %v2393_v24, %v3707_v48  ;;  %v2396_v1 = vadd.f32 %v2395_v44, %v2394_v38 }
 0x585   :  { %v2103_v0 = vsub.f32 0.0, %v2041_v60  ;;  %v2044_v9 = vadd.f32 %v2396_v1, %v3707_v48 }
 0x587   :  { %v2119_v46 = vmul.f32 1.442695, %v2103_v0  ;;  %v2104_v8 = vsub.f32 0.0, %v2044_v9  ;;  %v2397_v7 = vpop.f32.mrb[100].mxu0 }
 0x588   :  { %v2398_v18 = vpop.f32.mrb[101].mxu0 }
 0x589   :  { %2677 = vpow2.f32 %v2119_v46  ;;  %v2121_v59 = vmul.f32 1.442695, %v2104_v8  ;;  %v2399_v29 = vadd.f32 %v2398_v18, %v2397_v7  ;;  %v2400_v49 = vpop.f32.mrb[102].mxu0 }
 0x58a   :  { %v2401_v27 = vpop.f32.mrb[103].mxu0 }
 0x58b   :  { %2679 = vpow2.f32 %v2121_v59  ;;  %v2049_v61 = vadd.f32 %v2399_v29, %v3707_v48  ;;  %v2402_v62 = vadd.f32 %v2401_v27, %v2400_v49 }
 0x58d   :  { %v2105_v6 = vsub.f32 0.0, %v2049_v61  ;;  %v2052_v47 = vadd.f32 %v2402_v62, %v3707_v48 }
 0x58f   :  { %v2123_v32 = vmul.f32 1.442695, %v2105_v6  ;;  %v2106_v4 = vsub.f32 0.0, %v2052_v47  ;;  %v2403_v16 = vpop.f32.mrb[104].mxu0 }
 0x590   :  { %v2404_v2 = vpop.f32.mrb[105].mxu0 }
 0x591   :  { %2681 = vpow2.f32 %v2123_v32  ;;  %v2125_v43 = vmul.f32 1.442695, %v2106_v4  ;;  %v2405_v15 = vadd.f32 %v2404_v2, %v2403_v16  ;;  %v2406_v3 = vpop.f32.mrb[106].mxu0 }
 0x592   :  { %v2407_v23 = vpop.f32.mrb[107].mxu0 }
 0x593   :  { %v2678_v31 = vpop.eup %2677  ;;  %2683 = vpow2.f32 %v2125_v43  ;;  %v2057_v63 = vadd.f32 %v2405_v15, %v3707_v48  ;;  %v2408_v42 = vadd.f32 %v2407_v23, %v2406_v3 }
 0x594   :  { %v2151_v30 = vadd.f32 1.0, %v2678_v31 }
 0x595   :  { %v2680_v37 = vpop.eup %2679  ;;  %v2107_v34 = vsub.f32 0.0, %v2057_v63  ;;  %v2060_v36 = vadd.f32 %v2408_v42, %v3707_v48 }
 0x596   :  { %2685 = vrcp.f32 %v2151_v30  ;;  %v2152_v12 = vadd.f32 1.0, %v2680_v37 }
 0x597   :  { %v2127_v41 = vmul.f32 1.442695, %v2107_v34  ;;  %v2108_v39 = vsub.f32 0.0, %v2060_v36  ;;  %v2409_v28 = vpop.f32.mrb[64].mxu1 }
 0x598   :  { %2687 = vrcp.f32 %v2152_v12  ;;  %v2410_v17 = vpop.f32.mrb[65].mxu1 }
 0x599   :  { %2689 = vpow2.f32 %v2127_v41  ;;  %v2129_v21 = vmul.f32 1.442695, %v2108_v39  ;;  %v2411_v22 = vadd.f32 %v2410_v17, %v2409_v28  ;;  %v2412_v13 = vpop.f32.mrb[66].mxu1 }
 0x59a   :  { %v2413_v45 = vpop.f32.mrb[67].mxu1 }
 0x59b   :  { %v2682_v19 = vpop.eup %2681  ;;  %2691 = vpow2.f32 %v2129_v21  ;;  %v2065_v35 = vadd.f32 %v2411_v22, %v3707_v48  ;;  %v2414_v58 = vadd.f32 %v2413_v45, %v2412_v13 }
 0x59c   :  { %v2153_v10 = vadd.f32 1.0, %v2682_v19 }
 0x59d   :  { %v2684_v52 = vpop.eup %2683  ;;  %v2109_v51 = vsub.f32 0.0, %v2065_v35  ;;  %v2068_v25 = vadd.f32 %v2414_v58, %v3707_v48 }
 0x59e   :  { %2693 = vrcp.f32 %v2153_v10  ;;  %v2154_v11 = vadd.f32 1.0, %v2684_v52 }
 0x59f   :  { %v2131_v5 = vmul.f32 1.442695, %v2109_v51  ;;  %v2110_v26 = vsub.f32 0.0, %v2068_v25  ;;  %v2415_v56 = vpop.f32.mrb[68].mxu1 }
 0x5a0   :  { %v2686_v50 = vpop.eup %2685  ;;  %2695 = vrcp.f32 %v2154_v11  ;;  %v2416_v57 = vpop.f32.mrb[69].mxu1 }
 0x5a1   :  { %2183 = vst [vmem:[#allocation10] sm:$0xff] %v2686_v50  ;;  %2697 = vpow2.f32 %v2131_v5  ;;  %v2133_v54 = vmul.f32 1.442695, %v2110_v26  ;;  %v2417_v55 = vadd.f32 %v2416_v57, %v2415_v56  ;;  %v2418_v53 = vpop.f32.mrb[70].mxu1 }
 0x5a2   :  { %v2688_v20 = vpop.eup %2687  ;;  %v2419_v40 = vpop.f32.mrb[71].mxu1 }
 0x5a3   :  { %v2690_v33 = vpop.eup %2689  ;;  %2184 = vst [vmem:[#allocation10 + $0x8] sm:$0xff] %v2688_v20  ;;  %2699 = vpow2.f32 %v2133_v54  ;;  %v2073_v14 = vadd.f32 %v2417_v55, %v3707_v48  ;;  %v2420_v24 = vadd.f32 %v2419_v40, %v2418_v53 }
 0x5a4   :  { %v2155_v38 = vadd.f32 1.0, %v2690_v33 }
 0x5a5   :  { %v2692_v44 = vpop.eup %2691  ;;  %v2111_v60 = vsub.f32 0.0, %v2073_v14  ;;  %v2076_v1 = vadd.f32 %v2420_v24, %v3707_v48 }
 0x5a6   :  { %2701 = vrcp.f32 %v2155_v38  ;;  %v2156_v0 = vadd.f32 1.0, %v2692_v44 }
 0x5a7   :  { %v2135_v9 = vmul.f32 1.442695, %v2111_v60  ;;  %v2112_v46 = vsub.f32 0.0, %v2076_v1  ;;  %v2421_v8 = vpop.f32.mrb[72].mxu1 }
 0x5a8   :  { %v2694_v7 = vpop.eup %2693  ;;  %2703 = vrcp.f32 %v2156_v0  ;;  %v2422_v18 = vpop.f32.mrb[73].mxu1 }
 0x5a9   :  { %2185 = vst [vmem:[#allocation10 + $0x10] sm:$0xff] %v2694_v7  ;;  %2705 = vpow2.f32 %v2135_v9  ;;  %v2137_v59 = vmul.f32 1.442695, %v2112_v46  ;;  %v2423_v29 = vadd.f32 %v2422_v18, %v2421_v8  ;;  %v2424_v49 = vpop.f32.mrb[74].mxu1 }
 0x5aa   :  { %v2696_v27 = vpop.eup %2695  ;;  %v2425_v61 = vpop.f32.mrb[75].mxu1 }
 0x5ab   :  { %v2698_v62 = vpop.eup %2697  ;;  %2186 = vst [vmem:[#allocation10 + $0x18] sm:$0xff] %v2696_v27  ;;  %2707 = vpow2.f32 %v2137_v59  ;;  %v2081_v6 = vadd.f32 %v2423_v29, %v3707_v48  ;;  %v2426_v47 = vadd.f32 %v2425_v61, %v2424_v49 }
 0x5ac   :  { %v2157_v32 = vadd.f32 1.0, %v2698_v62 }
 0x5ad   :  { %v2700_v4 = vpop.eup %2699  ;;  %v2113_v16 = vsub.f32 0.0, %v2081_v6  ;;  %v2084_v2 = vadd.f32 %v2426_v47, %v3707_v48 }
 0x5ae   :  { %2709 = vrcp.f32 %v2157_v32  ;;  %v2158_v43 = vadd.f32 1.0, %v2700_v4 }
 0x5af   :  { %v2139_v15 = vmul.f32 1.442695, %v2113_v16  ;;  %v2114_v3 = vsub.f32 0.0, %v2084_v2  ;;  %v2427_v23 = vpop.f32.mrb[76].mxu1 }
 0x5b0   :  { %v2702_v31 = vpop.eup %2701  ;;  %2711 = vrcp.f32 %v2158_v43  ;;  %v2428_v63 = vpop.f32.mrb[77].mxu1 }
 0x5b1   :  { %2187 = vst [vmem:[#allocation10 + $0x20] sm:$0xff] %v2702_v31  ;;  %2713 = vpow2.f32 %v2139_v15  ;;  %v2141_v42 = vmul.f32 1.442695, %v2114_v3  ;;  %v2429_v30 = vadd.f32 %v2428_v63, %v2427_v23  ;;  %v2430_v37 = vpop.f32.mrb[78].mxu1 }
 0x5b2   :  { %v2704_v34 = vpop.eup %2703  ;;  %v2431_v36 = vpop.f32.mrb[79].mxu1 }
 0x5b3   :  { %v2706_v12 = vpop.eup %2705  ;;  %2188 = vst [vmem:[#allocation10 + $0x28] sm:$0xff] %v2704_v34  ;;  %2715 = vpow2.f32 %v2141_v42  ;;  %v2089_v41 = vadd.f32 %v2429_v30, %v3707_v48  ;;  %v2432_v39 = vadd.f32 %v2431_v36, %v2430_v37 }
 0x5b4   :  { %v2159_v28 = vadd.f32 1.0, %v2706_v12 }
 0x5b5   :  { %v2708_v17 = vpop.eup %2707  ;;  %v2115_v21 = vsub.f32 0.0, %v2089_v41  ;;  %v2092_v22 = vadd.f32 %v2432_v39, %v3707_v48 }
 0x5b6   :  { %2717 = vrcp.f32 %v2159_v28  ;;  %v2160_v13 = vadd.f32 1.0, %v2708_v17 }
 0x5b7   :  { %v2143_v45 = vmul.f32 1.442695, %v2115_v21  ;;  %v2116_v19 = vsub.f32 0.0, %v2092_v22  ;;  %v2433_v35 = vpop.f32.mrb[80].mxu1 }
 0x5b8   :  { %v2710_v58 = vpop.eup %2709  ;;  %2719 = vrcp.f32 %v2160_v13  ;;  %v2434_v10 = vpop.f32.mrb[81].mxu1 }
 0x5b9   :  { %2189 = vst [vmem:[#allocation10 + $0x30] sm:$0xff] %v2710_v58  ;;  %2721 = vpow2.f32 %v2143_v45  ;;  %v2145_v52 = vmul.f32 1.442695, %v2116_v19  ;;  %v2435_v51 = vadd.f32 %v2434_v10, %v2433_v35  ;;  %v2436_v25 = vpop.f32.mrb[82].mxu1 }
 0x5ba   :  { %v2712_v11 = vpop.eup %2711  ;;  %v2437_v5 = vpop.f32.mrb[83].mxu1 }
 0x5bb   :  { %v2714_v26 = vpop.eup %2713  ;;  %2190 = vst [vmem:[#allocation10 + $0x38] sm:$0xff] %v2712_v11  ;;  %2723 = vpow2.f32 %v2145_v52  ;;  %v2097_v56 = vadd.f32 %v2435_v51, %v3707_v48  ;;  %v2438_v50 = vadd.f32 %v2437_v5, %v2436_v25 }
 0x5bc   :  { %v2161_v57 = vadd.f32 1.0, %v2714_v26 }
 0x5bd   :  { %v2716_v54 = vpop.eup %2715  ;;  %v2117_v55 = vsub.f32 0.0, %v2097_v56  ;;  %v2100_v53 = vadd.f32 %v2438_v50, %v3707_v48 }
 0x5be   :  { %2725 = vrcp.f32 %v2161_v57  ;;  %v2162_v20 = vadd.f32 1.0, %v2716_v54 }
 0x5bf   :  { %v2147_v40 = vmul.f32 1.442695, %v2117_v55  ;;  %v2118_v33 = vsub.f32 0.0, %v2100_v53 }
 0x5c0   :  { %v2718_v14 = vpop.eup %2717  ;;  %2727 = vrcp.f32 %v2162_v20 }
 0x5c1   :  { %2191 = vst [vmem:[#allocation10 + $0x40] sm:$0xff] %v2718_v14  ;;  %2729 = vpow2.f32 %v2147_v40  ;;  %v2149_v24 = vmul.f32 1.442695, %v2118_v33 }
 0x5c2   :  { %v2720_v38 = vpop.eup %2719 }
 0x5c3   :  { %v2722_v44 = vpop.eup %2721  ;;  %2192 = vst [vmem:[#allocation10 + $0x48] sm:$0xff] %v2720_v38  ;;  %2731 = vpow2.f32 %v2149_v24 }
 0x5c4   :  { %v2163_v60 = vadd.f32 1.0, %v2722_v44 }
 0x5c5   :  { %v2724_v1 = vpop.eup %2723 }
 0x5c6   :  { %2733 = vrcp.f32 %v2163_v60  ;;  %v2164_v0 = vadd.f32 1.0, %v2724_v1 }
 0x5c8   :  { %v2726_v9 = vpop.eup %2725  ;;  %2735 = vrcp.f32 %v2164_v0 }
 0x5c9   :  { %2193 = vst [vmem:[#allocation10 + $0x50] sm:$0xff] %v2726_v9 }
 0x5ca   :  { %v2728_v48 = vpop.eup %2727 }
 0x5cb   :  { %v2730_v46 = vpop.eup %2729  ;;  %2194 = vst [vmem:[#allocation10 + $0x58] sm:$0xff] %v2728_v48 }
 0x5cc   :  { %v2165_v8 = vadd.f32 1.0, %v2730_v46 }
 0x5cd   :  { %v2732_v7 = vpop.eup %2731 }
 0x5ce   :  { %2737 = vrcp.f32 %v2165_v8  ;;  %v2166_v18 = vadd.f32 1.0, %v2732_v7 }
 0x5d0   :  { %v2734_v59 = vpop.eup %2733  ;;  %2739 = vrcp.f32 %v2166_v18 }
 0x5d1   :  { %2195 = vst [vmem:[#allocation10 + $0x60] sm:$0xff] %v2734_v59 }
 0x5d2   :  { %v2736_v29 = vpop.eup %2735 }
 0x5d3   :  { %2196 = vst [vmem:[#allocation10 + $0x68] sm:$0xff] %v2736_v29 }
 0x5d8   :  { %v2738_v49 = vpop.eup %2737 }
 0x5d9   :  { %2197 = vst [vmem:[#allocation10 + $0x70] sm:$0xff] %v2738_v49 }
 0x5da   :  { %v2740_v27 = vpop.eup %2739 }
 0x5db   :  { %2198 = vst [vmem:[#allocation10 + $0x78] sm:$0xff] %v2740_v27 }
 0x5dc   :  { %2840 = shalt.err (!%p2837_p8)
}
 0x5dd   :  { %s2841_s25 = scalar_lea.hbm %s3753_s13, 2048 }
 0x5de   :  { %p2842_p9 = scmp.ne.s32.totalorder %s3753_s13, %s2841_s25  ;;  %p2845_p10 = scmp.lt.u32.totalorder %s2841_s25, %s3753_s13 }
 0x5e0   :  { %p2847_p11 = pnand %p2845_p10, %p2842_p9 }
 0x5e2   :  { %2850 = shalt.err (!%p2847_p11)
}
 0x5e3   :  { %2210 = dma.vmem_to_hbm [thread:$0]  %s2205_s19, 2048, %s3753_s13, [#allocation4], %s2861_s20, %s2861_s20, %s2862_s21  }
 0x5e4   :  { %2857 = dma.done.wait [#allocation4], 2048  }
 0x5e5   :  { %2858 = vsyncadd [#allocation4], 4294965248 }
 0x5e6   :  { %2214 = vsyncpa [#allocation3], 1 }
 0x5e7   :  { %2215 = vsyncpa [#allocation6], 1 }
 0x5e8   :  { %2216 = vsyncpa [#allocation9], 1 }
 0x5e9   :  { %2217 = vsyncpa [#allocation4], 1 }

// kernel: tpu_custom_call.1
= control target key start
LH: loop header
LB: loop body
LE: loop exit
PB: predicated region body
PF: predicated region fallthrough
CT: control target
= control target key end

     0   :  { %18 = vsyncpa [#allocation3], 0  ;;  %s3740_s0 = inlined_call_operand.vmem [shape: f32[128,32], index: 0, kind: input, shape index: {}]   ;;  %s3741_s1 = inlined_call_operand.vmem [shape: bf16[32,256], index: 1, kind: input, shape index: {}]   ;;  %s3742_s2 = inlined_call_operand.vmem [shape: f32[1,256], index: 2, kind: input, shape index: {}]   ;;  %s3743_s3 = inlined_call_operand.hbm [shape: bf16[256,256], index: 3, kind: input, shape index: {}]   ;;  %s3744_s4 = inlined_call_operand.vmem [shape: f32[1,256], index: 4, kind: input, shape index: {}]   ;;  %s3745_s5 = inlined_call_operand.hbm [shape: bf16[256,256], index: 5, kind: input, shape index: {}]   ;;  %s3746_s6 = inlined_call_operand.vmem [shape: f32[1,256], index: 6, kind: input, shape index: {}]   ;;  %s3747_s7 = inlined_call_operand.hbm [shape: bf16[256,256], index: 7, kind: input, shape index: {}]   ;;  %s3748_s8 = inlined_call_operand.vmem [shape: f32[1,256], index: 8, kind: input, shape index: {}]   ;;  %s3749_s9 = inlined_call_operand.hbm [shape: bf16[256,256], index: 9, kind: input, shape index: {}]   ;;  %s3750_s10 = inlined_call_operand.vmem [shape: f32[1,256], index: 10, kind: input, shape index: {}]   ;;  %s3751_s11 = inlined_call_operand.vmem [shape: bf16[256,128], index: 11, kind: input, shape index: {}]   ;;  %s3752_s12 = inlined_call_operand.vmem [shape: f32[1,128], index: 12, kind: input, shape index: {}]   ;;  %s3753_s13 = inlined_call_operand.hbm [shape: f32[128,128], index: 13, kind: output, shape index: {}]  }
   0x1   :  { %19 = vsyncpa [#allocation6], 0 }
   0x2   :  { %20 = vsyncpa [#allocation9], 0 }
   0x3   :  { %21 = vsyncpa [#allocation4], 0  ;;  %s2859_s25 = smov [#allocation5]   ;;  %s2860_s27 = smov [#allocation2]  }
   0x4   :  { %s47_s26 = sshll.u32 %s2859_s25, 4  ;;  %s33_s28 = sshll.u32 %s2860_s27, 4  ;;  %s48_s26 = int_to_ptr.vmem [resolvable:$true] %s47_s26  ;;  %s2937_s28 = int_to_ptr.vmem [resolvable:$true] %s33_s28 }
   0x5   :  { %s2741_s14 = scalar_lea.hbm %s3745_s5, 4096 }
   0x6   :  { %p2742_p0 = scmp.ne.s32.totalorder %s3745_s5, %s2741_s14  ;;  %p2745_p1 = scmp.lt.u32.totalorder %s2741_s14, %s3745_s5 }
   0x8   :  { %p2747_p2 = pnand %p2745_p1, %p2742_p0 }
   0xa   :  { %2750 = shalt.err (!%p2747_p2)
}
   0xb   :  { %s2751_s19 = scalar_lea.vmem %s48_s26, 4096  ;;  %p2756_p4 = scmp.lt.s32.totalorder %s48_s26, %s48_s26 }
   0xc   :  { %p2752_p3 = scmp.ne.s32.totalorder %s48_s26, %s2751_s19  ;;  %p2757_p5 = scmp.lt.s32.totalorder %s2751_s19, %s2751_s19 }
   0xe   :  { %p2758_p6 = por %p2757_p5, %p2756_p4 }
  0x10   :  { %p2759_p7 = pnand %p2758_p6, %p2752_p3 }
  0x12   :  { %2762 = shalt.err (!%p2759_p7)
}
  0x13   :  { %s2861_s20 = smov 128   ;;  %s2862_s21 = smov 8  }
  0x14   :  { %53 = dma.hbm_to_vmem [thread:$0]  %s3745_s5, 4096, %s48_s26, [#allocation6], %s2861_s20, %s2861_s20, %s2862_s21  }
  0x15   :  { %s2763_s27 = scalar_lea.hbm %s3743_s3, 4096 }
  0x16   :  { %p2764_p8 = scmp.ne.s32.totalorder %s3743_s3, %s2763_s27  ;;  %p2767_p9 = scmp.lt.u32.totalorder %s2763_s27, %s3743_s3 }
  0x18   :  { %p2769_p10 = pnand %p2767_p9, %p2764_p8 }
  0x1a   :  { %2772 = shalt.err (!%p2769_p10)
}
  0x1b   :  { %s2773_s16 = scalar_lea.vmem %s2937_s28, 4096  ;;  %p2778_p12 = scmp.lt.s32.totalorder %s2937_s28, %s2937_s28 }
  0x1c   :  { %p2774_p11 = scmp.ne.s32.totalorder %s2937_s28, %s2773_s16  ;;  %p2779_p13 = scmp.lt.s32.totalorder %s2773_s16, %s2773_s16 }
  0x1e   :  { %p2780_p0 = por %p2779_p13, %p2778_p12 }
  0x20   :  { %p2781_p1 = pnand %p2780_p0, %p2774_p11 }
  0x22   :  { %2784 = shalt.err (!%p2781_p1)
}
  0x23   :  { %39 = dma.hbm_to_vmem [thread:$0]  %s3743_s3, 4096, %s2937_s28, [#allocation3], %s2861_s20, %s2861_s20, %s2862_s21  }
  0x24   :  { %s2863_s17 = smov [#allocation7]   ;;  %s2864_s19 = smov [#allocation8]  }
  0x25   :  { %s61_s18 = sshll.u32 %s2863_s17, 4  ;;  %s75_s22 = sshll.u32 %s2864_s19, 4  ;;  %s62_s18 = int_to_ptr.vmem [resolvable:$true] %s61_s18  ;;  %s2974_s22 = int_to_ptr.vmem [resolvable:$true] %s75_s22 }
  0x26   :  { %s2785_s25 = scalar_lea.hbm %s3747_s7, 4096 }
  0x27   :  { %p2786_p2 = scmp.ne.s32.totalorder %s3747_s7, %s2785_s25  ;;  %p2789_p3 = scmp.lt.u32.totalorder %s2785_s25, %s3747_s7 }
  0x29   :  { %p2791_p4 = pnand %p2789_p3, %p2786_p2 }
  0x2b   :  { %2794 = shalt.err (!%p2791_p4)
}
  0x2c   :  { %s2795_s3 = scalar_lea.vmem %s62_s18, 4096  ;;  %p2800_p6 = scmp.lt.s32.totalorder %s62_s18, %s62_s18 }
  0x2d   :  { %p2796_p5 = scmp.ne.s32.totalorder %s62_s18, %s2795_s3  ;;  %p2801_p7 = scmp.lt.s32.totalorder %s2795_s3, %s2795_s3 }
  0x2f   :  { %p2802_p8 = por %p2801_p7, %p2800_p6 }
  0x31   :  { %p2803_p9 = pnand %p2802_p8, %p2796_p5 }
  0x33   :  { %2806 = shalt.err (!%p2803_p9)
}
  0x34   :  { %67 = dma.hbm_to_vmem [thread:$0]  %s3747_s7, 4096, %s62_s18, [#allocation6], %s2861_s20, %s2861_s20, %s2862_s21  }
  0x35   :  { %s2807_s26 = scalar_lea.hbm %s3749_s9, 4096 }
  0x36   :  { %p2808_p10 = scmp.ne.s32.totalorder %s3749_s9, %s2807_s26  ;;  %p2811_p11 = scmp.lt.u32.totalorder %s2807_s26, %s3749_s9 }
  0x38   :  { %p2813_p12 = pnand %p2811_p11, %p2808_p10 }
  0x3a   :  { %2816 = shalt.err (!%p2813_p12)
}
  0x3b   :  { %s2817_s25 = scalar_lea.vmem %s2974_s22, 4096  ;;  %p2822_p0 = scmp.lt.s32.totalorder %s2974_s22, %s2974_s22 }
  0x3c   :  { %p2818_p13 = scmp.ne.s32.totalorder %s2974_s22, %s2817_s25  ;;  %p2823_p1 = scmp.lt.s32.totalorder %s2817_s25, %s2817_s25 }
  0x3e   :  { %p2824_p2 = por %p2823_p1, %p2822_p0 }
  0x40   :  { %p2825_p3 = pnand %p2824_p2, %p2818_p13 }
  0x42   :  { %2828 = shalt.err (!%p2825_p3)
}
  0x43   :  { %81 = dma.hbm_to_vmem [thread:$0]  %s3749_s9, 4096, %s2974_s22, [#allocation9], %s2861_s20, %s2861_s20, %s2862_s21  }
  0x44   :  { %2851 = dma.done.wait [#allocation3], 4096  }
  0x45   :  { %2852 = vsyncadd [#allocation3], 4294963200 }
  0x46   :  { %2853 = dma.done.wait [#allocation6], 8192  }
  0x47   :  { %2854 = vsyncadd [#allocation6], 4294959104 }
  0x48   :  { %2855 = dma.done.wait [#allocation9], 4096  }
  0x49   :  { %2856 = vsyncadd [#allocation9], 4294963200  ;;  %v2865_v0 = vmov 0   ;;  %v2463_v1 = vld [vmem:[%s3741_s1 + $0x4] ss:$8 sps:$4 sm:$0xff]   ;;  %vm161_vm0 = vcmask 261120  }
  0x4a   :  { %218 = vmatprep.mubr.bf16.mxu0 %v2865_v0  ;;  %v2465_v2 = vld [vmem:[%s3741_s1] ss:$8 sps:$4 sm:$0xff]   ;;  %186 = vmatprep.subr.bf16.mxu0 %v2463_v1  ;;  %v2466_v3 = vld [vmem:[%s3741_s1 + $0x14] ss:$8 sps:$4 sm:$0xff]   ;;  %v2468_v4 = vld [vmem:[%s3741_s1 + $0x10] ss:$8 sps:$4 sm:$0xff]  }
  0x4b   :  { %187 = vmatpush1.bf16.msra.mxu0 %v2465_v2  ;;  %v101_v5 = vld [vmem:[%s3740_s0] sm:$0xff]  ;;  %v102_v6 = vld [vmem:[%s3740_s0 + $0x8] sm:$0xff]  ;;  %v103_v10 = vld [vmem:[%s3740_s0 + $0x10] sm:$0xff] }
  0x4c   :  { %188 = vmatprep.subr.bf16.mxu0 %v2466_v3  ;;  %v117_v7 = vpack.c.bf16 %v102_v6, %v101_v5  ;;  %v2469_v8 = vld [vmem:[#allocation2 + $0x4] ss:$8 sps:$4 sm:$0xff]   ;;  %v2471_v9 = vld [vmem:[#allocation2] ss:$8 sps:$4 sm:$0xff]   ;;  %v2472_v11 = vld [vmem:[#allocation2 + $0x14] ss:$8 sps:$4 sm:$0xff]  }
  0x4d   :  { %551 = vmatprep.subr.bf16.mxu1 %v2469_v8  ;;  %v104_v12 = vld [vmem:[%s3740_s0 + $0x18] sm:$0xff]  ;;  %v2475_v14 = vld [vmem:[#allocation2 + $0x24] ss:$8 sps:$4 sm:$0xff]   ;;  %v2477_v16 = vld [vmem:[#allocation2 + $0x20] ss:$8 sps:$4 sm:$0xff]  }
  0x4e   :  { %552 = vmatpush1.bf16.msra.mxu1 %v2471_v9  ;;  %v2474_v13 = vld [vmem:[#allocation2 + $0x10] ss:$8 sps:$4 sm:$0xff]   ;;  %v118_v15 = vpack.c.bf16 %v104_v12, %v103_v10  ;;  %v2478_v17 = vld [vmem:[#allocation2 + $0x34] ss:$8 sps:$4 sm:$0xff]   ;;  %v105_v18 = vld [vmem:[%s3740_s0 + $0x20] sm:$0xff] }
  0x4f   :  { %189 = vmatpush1.bf16.msra.mxu0 %v2468_v4  ;;  %553 = vmatprep.subr.bf16.mxu1 %v2472_v11  ;;  %v106_v19 = vld [vmem:[%s3740_s0 + $0x28] sm:$0xff]  ;;  %v2480_v20 = vld [vmem:[#allocation2 + $0x30] ss:$8 sps:$4 sm:$0xff]   ;;  %v2484_v24 = vld [vmem:[#allocation2 + $0x54] ss:$8 sps:$4 sm:$0xff]  }
  0x50   :  { %v2481_v21 = vld [vmem:[#allocation2 + $0x44] ss:$8 sps:$4 sm:$0xff]   ;;  %v119_v22 = vpack.c.bf16 %v106_v19, %v105_v18  ;;  %v2483_v23 = vld [vmem:[#allocation2 + $0x40] ss:$8 sps:$4 sm:$0xff]   ;;  %v107_v25 = vld [vmem:[%s3740_s0 + $0x30] sm:$0xff] }
  0x51   :  { %v108_v26 = vld [vmem:[%s3740_s0 + $0x38] sm:$0xff]  ;;  %v2487_v28 = vld [vmem:[#allocation2 + $0x64] ss:$8 sps:$4 sm:$0xff]   ;;  %v2489_v29 = vld [vmem:[#allocation2 + $0x60] ss:$8 sps:$4 sm:$0xff]  }
  0x52   :  { %2222 = vmatmul.mubr.msk.bf16.vlgmr.msra.gmra.mrb[0].mxu0 %vm161_vm0, %v117_v7  ;;  %554 = vmatpush1.bf16.msra.mxu1 %v2474_v13  ;;  %v2486_v27 = vld [vmem:[#allocation2 + $0x50] ss:$8 sps:$4 sm:$0xff]   ;;  %v120_v30 = vpack.c.bf16 %v108_v26, %v107_v25  ;;  %v2490_v31 = vld [vmem:[#allocation2 + $0x74] ss:$8 sps:$4 sm:$0xff]   ;;  %v109_v32 = vld [vmem:[%s3740_s0 + $0x40] sm:$0xff] }
  0x53   :  { %228 = vmatprep.mubr.bf16.mxu0 %v2865_v0  ;;  %555 = vmatprep.subr.bf16.mxu1 %v2475_v14  ;;  %v110_v33 = vld [vmem:[%s3740_s0 + $0x48] sm:$0xff]  ;;  %v2492_v34 = vld [vmem:[#allocation2 + $0x70] ss:$8 sps:$4 sm:$0xff]   ;;  %v2496_v38 = vld [vmem:[#allocation2 + $0x94] ss:$8 sps:$4 sm:$0xff]  }
  0x54   :  { %v2493_v35 = vld [vmem:[#allocation2 + $0x84] ss:$8 sps:$4 sm:$0xff]   ;;  %v2495_v36 = vld [vmem:[#allocation2 + $0x80] ss:$8 sps:$4 sm:$0xff]   ;;  %v121_v37 = vpack.c.bf16 %v110_v33, %v109_v32  ;;  %v111_v39 = vld [vmem:[%s3740_s0 + $0x50] sm:$0xff] }
  0x55   :  { %v112_v40 = vld [vmem:[%s3740_s0 + $0x58] sm:$0xff]  ;;  %v2499_v42 = vld [vmem:[#allocation2 + $0xa4] ss:$8 sps:$4 sm:$0xff]   ;;  %v2501_v43 = vld [vmem:[#allocation2 + $0xa0] ss:$8 sps:$4 sm:$0xff]  }
  0x56   :  { %556 = vmatpush1.bf16.msra.mxu1 %v2477_v16  ;;  %v2498_v41 = vld [vmem:[#allocation2 + $0x90] ss:$8 sps:$4 sm:$0xff]   ;;  %v122_v44 = vpack.c.bf16 %v112_v40, %v111_v39  ;;  %v2502_v45 = vld [vmem:[#allocation2 + $0xb4] ss:$8 sps:$4 sm:$0xff]   ;;  %v113_v46 = vld [vmem:[%s3740_s0 + $0x60] sm:$0xff] }
  0x57   :  { %557 = vmatprep.subr.bf16.mxu1 %v2478_v17  ;;  %v114_v47 = vld [vmem:[%s3740_s0 + $0x68] sm:$0xff]  ;;  %v2504_v48 = vld [vmem:[#allocation2 + $0xb0] ss:$8 sps:$4 sm:$0xff]   ;;  %v2508_v52 = vld [vmem:[#allocation2 + $0xd4] ss:$8 sps:$4 sm:$0xff]  }
  0x58   :  { %v2505_v49 = vld [vmem:[#allocation2 + $0xc4] ss:$8 sps:$4 sm:$0xff]   ;;  %v2507_v50 = vld [vmem:[#allocation2 + $0xc0] ss:$8 sps:$4 sm:$0xff]   ;;  %v123_v51 = vpack.c.bf16 %v114_v47, %v113_v46  ;;  %v115_v53 = vld [vmem:[%s3740_s0 + $0x70] sm:$0xff] }
  0x59   :  { %v116_v54 = vld [vmem:[%s3740_s0 + $0x78] sm:$0xff]  ;;  %v2511_v57 = vld [vmem:[#allocation2 + $0xe4] ss:$8 sps:$4 sm:$0xff]   ;;  %v2513_v58 = vld [vmem:[#allocation2 + $0xe0] ss:$8 sps:$4 sm:$0xff]  }
  0x5a   :  { %2223 = vmatmul.mubr.msk.bf16.gmra.mrb[4].mxu0 %vm161_vm0, %v118_v15  ;;  %558 = vmatpush1.bf16.msra.mxu1 %v2480_v20  ;;  %v124_v55 = vpack.c.bf16 %v116_v54, %v115_v53  ;;  %v2510_v56 = vld [vmem:[#allocation2 + $0xd0] ss:$8 sps:$4 sm:$0xff]   ;;  %v2514_v59 = vld [vmem:[#allocation2 + $0xf4] ss:$8 sps:$4 sm:$0xff]   ;;  %v2517_v61 = vld [vmem:[#allocation5] ss:$8 sps:$4 sm:$0xff]  }
  0x5b   :  { %238 = vmatprep.mubr.bf16.mxu0 %v2865_v0  ;;  %559 = vmatprep.subr.bf16.mxu1 %v2481_v21  ;;  %v2516_v60 = vld [vmem:[#allocation2 + $0xf0] ss:$8 sps:$4 sm:$0xff]   ;;  %v2519_v62 = vld [vmem:[#allocation5 + $0x4] ss:$8 sps:$4 sm:$0xff]   ;;  %v2522_v63 = vld [vmem:[#allocation5 + $0x14] ss:$8 sps:$4 sm:$0xff]  }
  0x5c   :  { %916 = vmatprep.subr.bf16.mxu0 %v2519_v62  ;;  %v2525_v1 = vld [vmem:[#allocation5 + $0x24] ss:$8 sps:$4 sm:$0xff]   ;;  %v2523_v2 = vld [vmem:[#allocation5 + $0x20] ss:$8 sps:$4 sm:$0xff]   ;;  %v2528_v3 = vld [vmem:[#allocation5 + $0x34] ss:$8 sps:$4 sm:$0xff]  }
  0x5d   :  { %917 = vmatpush1.bf16.msra.mxu0 %v2517_v61  ;;  %v2526_v4 = vld [vmem:[#allocation5 + $0x30] ss:$8 sps:$4 sm:$0xff]   ;;  %v2531_v5 = vld [vmem:[#allocation5 + $0x44] ss:$8 sps:$4 sm:$0xff]   ;;  %v2529_v6 = vld [vmem:[#allocation5 + $0x40] ss:$8 sps:$4 sm:$0xff]  }
  0x5e   :  { %560 = vmatpush1.bf16.msra.mxu1 %v2483_v23  ;;  %918 = vmatprep.subr.bf16.mxu0 %v2522_v63  ;;  %v2534_v7 = vld [vmem:[#allocation5 + $0x54] ss:$8 sps:$4 sm:$0xff]   ;;  %v2532_v8 = vld [vmem:[#allocation5 + $0x50] ss:$8 sps:$4 sm:$0xff]   ;;  %v2537_v9 = vld [vmem:[#allocation5 + $0x64] ss:$8 sps:$4 sm:$0xff]  }
  0x5f   :  { %561 = vmatprep.subr.bf16.mxu1 %v2484_v24  ;;  %v2535_v10 = vld [vmem:[#allocation5 + $0x60] ss:$8 sps:$4 sm:$0xff]   ;;  %v2540_v11 = vld [vmem:[#allocation5 + $0x74] ss:$8 sps:$4 sm:$0xff]   ;;  %v2538_v12 = vld [vmem:[#allocation5 + $0x70] ss:$8 sps:$4 sm:$0xff]  }
  0x60   :  { %v2543_v13 = vld [vmem:[#allocation5 + $0x84] ss:$8 sps:$4 sm:$0xff]   ;;  %v2541_v14 = vld [vmem:[#allocation5 + $0x80] ss:$8 sps:$4 sm:$0xff]   ;;  %v2546_v15 = vld [vmem:[#allocation5 + $0x94] ss:$8 sps:$4 sm:$0xff]  }
  0x61   :  { %v2544_v16 = vld [vmem:[#allocation5 + $0x90] ss:$8 sps:$4 sm:$0xff]   ;;  %v2549_v17 = vld [vmem:[#allocation5 + $0xa4] ss:$8 sps:$4 sm:$0xff]   ;;  %v2547_v18 = vld [vmem:[#allocation5 + $0xa0] ss:$8 sps:$4 sm:$0xff]  }
  0x62   :  { %2224 = vmatmul.mubr.msk.bf16.gmra.mrb[8].mxu0 %vm161_vm0, %v119_v22  ;;  %562 = vmatpush1.bf16.msra.mxu1 %v2486_v27  ;;  %v2552_v19 = vld [vmem:[#allocation5 + $0xb4] ss:$8 sps:$4 sm:$0xff]   ;;  %v2550_v20 = vld [vmem:[#allocation5 + $0xb0] ss:$8 sps:$4 sm:$0xff]   ;;  %v2555_v21 = vld [vmem:[#allocation5 + $0xc4] ss:$8 sps:$4 sm:$0xff]   ;;  %v131_v22 = vlaneseq }
  0x63   :  { %248 = vmatprep.mubr.bf16.mxu0 %v2865_v0  ;;  %563 = vmatprep.subr.bf16.mxu1 %v2487_v28  ;;  %v2553_v23 = vld [vmem:[#allocation5 + $0xc0] ss:$8 sps:$4 sm:$0xff]   ;;  %v2558_v24 = vld [vmem:[#allocation5 + $0xd4] ss:$8 sps:$4 sm:$0xff]   ;;  %v2556_v26 = vld [vmem:[#allocation5 + $0xd0] ss:$8 sps:$4 sm:$0xff]  }
  0x64   :  { %v132_v25 = vshrl.u32 %v131_v22, 7  ;;  %v129_v28 = vld [vmem:[%s3742_s2] sm:$0x3] }
  0x66   :  { %564 = vmatpush1.bf16.msra.mxu1 %v2489_v29  ;;  %v3087_v27 = vsub.s32 1, %v132_v25  ;;  %v3092_v29 = vsub.s32 0, %v132_v25 }
  0x67   :  { %565 = vmatprep.subr.bf16.mxu1 %v2490_v31 }
  0x68   :  { %v3098_v31 = vrot.slane %v129_v28, %v3092_v29 }
  0x6a   :  { %2225 = vmatmul.mubr.msk.bf16.gmra.mrb[12].mxu0 %vm161_vm0, %v120_v30  ;;  %566 = vmatpush1.bf16.msra.mxu1 %v2492_v34  ;;  %v3095_v30 = vrot.slane %v129_v28, %v3087_v27 }
  0x6b   :  { %258 = vmatprep.mubr.bf16.mxu0 %v2865_v0  ;;  %567 = vmatprep.subr.bf16.mxu1 %v2493_v35 }
  0x6e   :  { %568 = vmatpush1.bf16.msra.mxu1 %v2495_v36 }
  0x6f   :  { %569 = vmatprep.subr.bf16.mxu1 %v2496_v38 }
  0x72   :  { %2226 = vmatmul.mubr.msk.bf16.gmra.mrb[16].mxu0 %vm161_vm0, %v121_v37  ;;  %570 = vmatpush1.bf16.msra.mxu1 %v2498_v41 }
  0x73   :  { %268 = vmatprep.mubr.bf16.mxu0 %v2865_v0  ;;  %571 = vmatprep.subr.bf16.mxu1 %v2499_v42 }
  0x76   :  { %572 = vmatpush1.bf16.msra.mxu1 %v2501_v43 }
  0x77   :  { %573 = vmatprep.subr.bf16.mxu1 %v2502_v45 }
  0x7a   :  { %2227 = vmatmul.mubr.msk.bf16.gmra.mrb[20].mxu0 %vm161_vm0, %v122_v44  ;;  %574 = vmatpush1.bf16.msra.mxu1 %v2504_v48 }
  0x7b   :  { %278 = vmatprep.mubr.bf16.mxu0 %v2865_v0  ;;  %575 = vmatprep.subr.bf16.mxu1 %v2505_v49 }
  0x7e   :  { %576 = vmatpush1.bf16.msra.mxu1 %v2507_v50 }
  0x7f   :  { %577 = vmatprep.subr.bf16.mxu1 %v2508_v52 }
  0x82   :  { %2228 = vmatmul.mubr.msk.bf16.gmra.mrb[24].mxu0 %vm161_vm0, %v123_v51  ;;  %578 = vmatpush1.bf16.msra.mxu1 %v2510_v56 }
  0x83   :  { %288 = vmatprep.mubr.bf16.mxu0 %v2865_v0  ;;  %579 = vmatprep.subr.bf16.mxu1 %v2511_v57  ;;  %v2520_v0 = vld [vmem:[#allocation5 + $0x10] ss:$8 sps:$4 sm:$0xff]  }
  0x84   :  { %919 = vmatpush1.bf16.msra.mxu0 %v2520_v0 }
  0x85   :  { %920 = vmatprep.subr.bf16.mxu0 %v2525_v1 }
  0x86   :  { %580 = vmatpush1.bf16.msra.mxu1 %v2513_v58 }
  0x87   :  { %581 = vmatprep.subr.bf16.mxu1 %v2514_v59 }
  0x88   :  { %921 = vmatpush1.bf16.msra.mxu0 %v2523_v2 }
  0x89   :  { %922 = vmatprep.subr.bf16.mxu0 %v2528_v3 }
  0x8a   :  { %2229 = vmatmul.mubr.msk.bf16.gmra.mrb[28].mxu0 %vm161_vm0, %v124_v55  ;;  %582 = vmatpush1.bf16.msra.mxu1 %v2516_v60 }
  0x8c   :  { %923 = vmatpush1.bf16.msra.mxu0 %v2526_v4 }
  0x8d   :  { %924 = vmatprep.subr.bf16.mxu0 %v2531_v5 }
  0x90   :  { %925 = vmatpush1.bf16.msra.mxu0 %v2529_v6 }
  0x91   :  { %926 = vmatprep.subr.bf16.mxu0 %v2534_v7 }
  0x94   :  { %927 = vmatpush1.bf16.msra.mxu0 %v2532_v8 }
  0x95   :  { %928 = vmatprep.subr.bf16.mxu0 %v2537_v9 }
  0x98   :  { %929 = vmatpush1.bf16.msra.mxu0 %v2535_v10 }
  0x99   :  { %930 = vmatprep.subr.bf16.mxu0 %v2540_v11 }
  0x9c   :  { %931 = vmatpush1.bf16.msra.mxu0 %v2538_v12 }
  0x9d   :  { %932 = vmatprep.subr.bf16.mxu0 %v2543_v13 }
  0xa0   :  { %933 = vmatpush1.bf16.msra.mxu0 %v2541_v14 }
  0xa1   :  { %934 = vmatprep.subr.bf16.mxu0 %v2546_v15 }
  0xa4   :  { %935 = vmatpush1.bf16.msra.mxu0 %v2544_v16 }
  0xa5   :  { %936 = vmatprep.subr.bf16.mxu0 %v2549_v17 }
  0xa8   :  { %937 = vmatpush1.bf16.msra.mxu0 %v2547_v18 }
  0xa9   :  { %938 = vmatprep.subr.bf16.mxu0 %v2552_v19 }
  0xac   :  { %939 = vmatpush1.bf16.msra.mxu0 %v2550_v20 }
  0xad   :  { %940 = vmatprep.subr.bf16.mxu0 %v2555_v21 }
  0xb0   :  { %941 = vmatpush1.bf16.msra.mxu0 %v2553_v23 }
  0xb1   :  { %942 = vmatprep.subr.bf16.mxu0 %v2558_v24 }
  0xb4   :  { %943 = vmatpush1.bf16.msra.mxu0 %v2556_v26 }
 0x125   :  { %v220_v32 = vpop.f32.mrb[0].mxu0 }
 0x126   :  { %v222_v33 = vpop.f32.mrb[1].mxu0  ;;  %v3104_v36 = vadd.f32 %v220_v32, %v3098_v31 }
 0x127   :  { %v3101_v34 = vadd.f32 %v222_v33, %v3095_v30  ;;  %v224_v35 = vpop.f32.mrb[2].mxu0 }
 0x128   :  { %v3107_v37 = vadd.f32 %v224_v35, %v3098_v31  ;;  %v226_v38 = vpop.f32.mrb[3].mxu0  ;;  %v299_v43 = vmax.f32 %v3104_v36, 0.0 }
 0x129   :  { %v3110_v39 = vadd.f32 %v226_v38, %v3095_v30  ;;  %v300_v41 = vmax.f32 %v3101_v34, 0.0 }
 0x12a   :  { %v301_v40 = vmax.f32 %v3107_v37, 0.0 }
 0x12b   :  { %v302_v42 = vmax.f32 %v3110_v39, 0.0 }
 0x12c   :  { %v331_v46 = vpack.c.bf16 %v301_v40, %v299_v43 }
 0x12d   :  { %v230_v44 = vpop.f32.mrb[4].mxu0  ;;  %v332_v45 = vpack.c.bf16 %v302_v42, %v300_v41 }
 0x12e   :  { %v232_v47 = vpop.f32.mrb[5].mxu0  ;;  %v3128_v50 = vadd.f32 %v230_v44, %v3098_v31 }
 0x12f   :  { %v3125_v48 = vadd.f32 %v232_v47, %v3095_v30  ;;  %v234_v49 = vpop.f32.mrb[6].mxu0  ;;  %583 = vmatprep.mubr.bf16.mxu1 %v332_v45 }
 0x130   :  { %v3131_v51 = vadd.f32 %v234_v49, %v3098_v31  ;;  %v236_v52 = vpop.f32.mrb[7].mxu0  ;;  %584 = vmatmul.mubr.bf16.vlgmr.msra.gmra.mrb[0].mxu1 %v331_v46  ;;  %v303_v57 = vmax.f32 %v3128_v50, 0.0 }
 0x131   :  { %v3134_v53 = vadd.f32 %v236_v52, %v3095_v30  ;;  %v304_v55 = vmax.f32 %v3125_v48, 0.0 }
 0x132   :  { %v305_v54 = vmax.f32 %v3131_v51, 0.0 }
 0x133   :  { %v306_v56 = vmax.f32 %v3134_v53, 0.0 }
 0x134   :  { %v333_v60 = vpack.c.bf16 %v305_v54, %v303_v57 }
 0x135   :  { %v334_v58 = vpack.c.bf16 %v306_v56, %v304_v55  ;;  %v240_v59 = vpop.f32.mrb[8].mxu0 }
 0x136   :  { %v242_v61 = vpop.f32.mrb[9].mxu0  ;;  %v3152_v0 = vadd.f32 %v240_v59, %v3098_v31 }
 0x137   :  { %v3149_v62 = vadd.f32 %v242_v61, %v3095_v30  ;;  %v244_v63 = vpop.f32.mrb[10].mxu0  ;;  %593 = vmatprep.mubr.bf16.mxu1 %v334_v58 }
 0x138   :  { %v3155_v1 = vadd.f32 %v244_v63, %v3098_v31  ;;  %v246_v2 = vpop.f32.mrb[11].mxu0  ;;  %594 = vmatmul.mubr.bf16.gmra.mrb[4].mxu1 %v333_v60  ;;  %v3774_v7 = vmax.f32 %v3152_v0, 0.0 }
 0x139   :  { %v3158_v3 = vadd.f32 %v246_v2, %v3095_v30  ;;  %v3776_v5 = vmax.f32 %v3149_v62, 0.0 }
 0x13a   :  { %v309_v4 = vmax.f32 %v3155_v1, 0.0 }
 0x13b   :  { %v3775_v6 = vmax.f32 %v3158_v3, 0.0 }
 0x13c   :  { %v335_v10 = vpack.c.bf16 %v309_v4, %v3774_v7 }
 0x13d   :  { %v336_v8 = vpack.c.bf16 %v3775_v6, %v3776_v5  ;;  %v250_v9 = vpop.f32.mrb[12].mxu0 }
 0x13e   :  { %v252_v11 = vpop.f32.mrb[13].mxu0  ;;  %v3176_v14 = vadd.f32 %v250_v9, %v3098_v31 }
 0x13f   :  { %v3173_v12 = vadd.f32 %v252_v11, %v3095_v30  ;;  %v254_v13 = vpop.f32.mrb[14].mxu0  ;;  %603 = vmatprep.mubr.bf16.mxu1 %v336_v8 }
 0x140   :  { %v3179_v15 = vadd.f32 %v254_v13, %v3098_v31  ;;  %v256_v16 = vpop.f32.mrb[15].mxu0  ;;  %604 = vmatmul.mubr.bf16.gmra.mrb[8].mxu1 %v335_v10  ;;  %v3770_v21 = vmax.f32 %v3176_v14, 0.0 }
 0x141   :  { %v3182_v17 = vadd.f32 %v256_v16, %v3095_v30  ;;  %v3772_v19 = vmax.f32 %v3173_v12, 0.0 }
 0x142   :  { %v3773_v18 = vmax.f32 %v3179_v15, 0.0 }
 0x143   :  { %v3771_v20 = vmax.f32 %v3182_v17, 0.0 }
 0x144   :  { %v337_v24 = vpack.c.bf16 %v3773_v18, %v3770_v21 }
 0x145   :  { %v338_v22 = vpack.c.bf16 %v3771_v20, %v3772_v19  ;;  %v260_v23 = vpop.f32.mrb[16].mxu0 }
 0x146   :  { %v262_v25 = vpop.f32.mrb[17].mxu0  ;;  %v3200_v32 = vadd.f32 %v260_v23, %v3098_v31 }
 0x147   :  { %v3197_v26 = vadd.f32 %v262_v25, %v3095_v30  ;;  %v264_v28 = vpop.f32.mrb[18].mxu0  ;;  %613 = vmatprep.mubr.bf16.mxu1 %v338_v22 }
 0x148   :  { %v3203_v33 = vadd.f32 %v264_v28, %v3098_v31  ;;  %v266_v35 = vpop.f32.mrb[19].mxu0  ;;  %614 = vmatmul.mubr.bf16.gmra.mrb[12].mxu1 %v337_v24  ;;  %v3758_v47 = vmax.f32 %v3200_v32, 0.0 }
 0x149   :  { %v3206_v38 = vadd.f32 %v266_v35, %v3095_v30  ;;  %v3764_v45 = vmax.f32 %v3197_v26, 0.0 }
 0x14a   :  { %v3769_v44 = vmax.f32 %v3203_v33, 0.0 }
 0x14b   :  { %v3763_v46 = vmax.f32 %v3206_v38, 0.0 }
 0x14c   :  { %v339_v58 = vpack.c.bf16 %v3769_v44, %v3758_v47 }
 0x14d   :  { %v340_v49 = vpack.c.bf16 %v3763_v46, %v3764_v45  ;;  %v270_v52 = vpop.f32.mrb[20].mxu0  ;;  %v2567_v46 = vld [vmem:[#allocation7 + $0x4] ss:$8 sps:$4 sm:$0xff]   ;;  %v2570_v45 = vld [vmem:[#allocation7 + $0x14] ss:$8 sps:$4 sm:$0xff]  }
 0x14e   :  { %v272_v59 = vpop.f32.mrb[21].mxu0  ;;  %v3224_v63 = vadd.f32 %v270_v52, %v3098_v31  ;;  %1313 = vmatprep.subr.bf16.mxu1 %v2567_v46  ;;  %v2585_v46 = vld [vmem:[#allocation7 + $0x64] ss:$8 sps:$4 sm:$0xff]  }
 0x14f   :  { %v3221_v60 = vadd.f32 %v272_v59, %v3095_v30  ;;  %v274_v61 = vpop.f32.mrb[22].mxu0  ;;  %623 = vmatprep.mubr.bf16.mxu1 %v340_v49 }
 0x150   :  { %v3227_v2 = vadd.f32 %v274_v61, %v3098_v31  ;;  %v276_v8 = vpop.f32.mrb[23].mxu0  ;;  %624 = vmatmul.mubr.bf16.gmra.mrb[16].mxu1 %v339_v58  ;;  %v3754_v16 = vmax.f32 %v3224_v63, 0.0 }
 0x151   :  { %v3230_v9 = vadd.f32 %v276_v8, %v3095_v30  ;;  %v3756_v11 = vmax.f32 %v3221_v60, 0.0 }
 0x152   :  { %v3757_v10 = vmax.f32 %v3227_v2, 0.0 }
 0x153   :  { %v3755_v13 = vmax.f32 %v3230_v9, 0.0 }
 0x154   :  { %v341_v24 = vpack.c.bf16 %v3757_v10, %v3754_v16 }
 0x155   :  { %v342_v22 = vpack.c.bf16 %v3755_v13, %v3756_v11  ;;  %v280_v23 = vpop.f32.mrb[24].mxu0 }
 0x156   :  { %v282_v25 = vpop.f32.mrb[25].mxu0  ;;  %v3248_v49 = vadd.f32 %v280_v23, %v3098_v31 }
 0x157   :  { %v3245_v28 = vadd.f32 %v282_v25, %v3095_v30  ;;  %v284_v35 = vpop.f32.mrb[26].mxu0  ;;  %633 = vmatprep.mubr.bf16.mxu1 %v342_v22 }
 0x158   :  { %v3251_v52 = vadd.f32 %v284_v35, %v3098_v31  ;;  %v286_v58 = vpop.f32.mrb[27].mxu0  ;;  %634 = vmatmul.mubr.bf16.gmra.mrb[20].mxu1 %v341_v24  ;;  %v3761_v16 = vmax.f32 %v3248_v49, 0.0 }
 0x159   :  { %v3254_v59 = vadd.f32 %v286_v58, %v3095_v30  ;;  %v3760_v8 = vmax.f32 %v3245_v28, 0.0 }
 0x15a   :  { %v3762_v61 = vmax.f32 %v3251_v52, 0.0 }
 0x15b   :  { %v3759_v25 = vmax.f32 %v3254_v59, 0.0 }
 0x15c   :  { %v343_v24 = vpack.c.bf16 %v3762_v61, %v3761_v16 }
 0x15d   :  { %v344_v22 = vpack.c.bf16 %v3759_v25, %v3760_v8  ;;  %v290_v23 = vpop.f32.mrb[28].mxu0 }
 0x15e   :  { %v292_v35 = vpop.f32.mrb[29].mxu0  ;;  %v3272_v11 = vadd.f32 %v290_v23, %v3098_v31  ;;  %v2562_v23 = vld [vmem:[#allocation5 + $0xf0] ss:$8 sps:$4 sm:$0xff]  }
 0x15f   :  { %v3269_v58 = vadd.f32 %v292_v35, %v3095_v30  ;;  %v294_v13 = vpop.f32.mrb[30].mxu0  ;;  %643 = vmatprep.mubr.bf16.mxu1 %v344_v22 }
 0x160   :  { %v3275_v10 = vadd.f32 %v294_v13, %v3098_v31  ;;  %v296_v47 = vpop.f32.mrb[31].mxu0  ;;  %644 = vmatmul.mubr.bf16.gmra.mrb[24].mxu1 %v343_v24  ;;  %v3767_v61 = vmax.f32 %v3272_v11, 0.0  ;;  %v2564_v13 = vld [vmem:[#allocation5 + $0xf4] ss:$8 sps:$4 sm:$0xff]   ;;  %v2565_v24 = vld [vmem:[#allocation7] ss:$8 sps:$4 sm:$0xff]  }
 0x161   :  { %v3278_v25 = vadd.f32 %v296_v47, %v3095_v30  ;;  %v3766_v16 = vmax.f32 %v3269_v58, 0.0  ;;  %v2561_v30 = vld [vmem:[#allocation5 + $0xe4] ss:$8 sps:$4 sm:$0xff]   ;;  %v2559_v47 = vld [vmem:[#allocation5 + $0xe0] ss:$8 sps:$4 sm:$0xff]   ;;  %1314 = vmatpush1.bf16.msra.mxu1 %v2565_v24 }
 0x162   :  { %v3768_v8 = vmax.f32 %v3275_v10, 0.0  ;;  %944 = vmatprep.subr.bf16.mxu0 %v2561_v30  ;;  %1315 = vmatprep.subr.bf16.mxu1 %v2570_v45  ;;  %v2579_v30 = vld [vmem:[#allocation7 + $0x44] ss:$8 sps:$4 sm:$0xff]   ;;  %v2583_v24 = vld [vmem:[#allocation7 + $0x60] ss:$8 sps:$4 sm:$0xff]  }
 0x163   :  { %v3765_v35 = vmax.f32 %v3278_v25, 0.0  ;;  %945 = vmatpush1.bf16.msra.mxu0 %v2559_v47  ;;  %v2577_v47 = vld [vmem:[#allocation7 + $0x40] ss:$8 sps:$4 sm:$0xff]   ;;  %v2588_v45 = vld [vmem:[#allocation7 + $0x74] ss:$8 sps:$4 sm:$0xff]  }
 0x164   :  { %v345_v31 = vpack.c.bf16 %v3768_v8, %v3767_v61  ;;  %946 = vmatprep.subr.bf16.mxu0 %v2564_v13  ;;  %v2571_v61 = vld [vmem:[#allocation7 + $0x20] ss:$8 sps:$4 sm:$0xff]   ;;  %v2582_v13 = vld [vmem:[#allocation7 + $0x54] ss:$8 sps:$4 sm:$0xff]  }
 0x165   :  { %v346_v22 = vpack.c.bf16 %v3765_v35, %v3766_v16  ;;  %v2568_v35 = vld [vmem:[#allocation7 + $0x10] ss:$8 sps:$4 sm:$0xff]   ;;  %v2573_v16 = vld [vmem:[#allocation7 + $0x24] ss:$8 sps:$4 sm:$0xff]  }
 0x166   :  { %1316 = vmatpush1.bf16.msra.mxu1 %v2568_v35  ;;  %v2586_v35 = vld [vmem:[#allocation7 + $0x70] ss:$8 sps:$4 sm:$0xff]  }
 0x167   :  { %653 = vmatprep.mubr.bf16.mxu1 %v346_v22  ;;  %947 = vmatpush1.bf16.msra.mxu0 %v2562_v23  ;;  %v2576_v22 = vld [vmem:[#allocation7 + $0x34] ss:$8 sps:$4 sm:$0xff]   ;;  %v2580_v23 = vld [vmem:[#allocation7 + $0x50] ss:$8 sps:$4 sm:$0xff]  }
 0x168   :  { %654 = vmatmul.mubr.bf16.gmra.mrb[28].mxu1 %v345_v31  ;;  %1317 = vmatprep.subr.bf16.mxu1 %v2573_v16  ;;  %v2574_v31 = vld [vmem:[#allocation7 + $0x30] ss:$8 sps:$4 sm:$0xff]   ;;  %v2591_v16 = vld [vmem:[#allocation7 + $0x84] ss:$8 sps:$4 sm:$0xff]  }
 0x16a   :  { %1318 = vmatpush1.bf16.msra.mxu1 %v2571_v61  ;;  %v2589_v61 = vld [vmem:[#allocation7 + $0x80] ss:$8 sps:$4 sm:$0xff]  }
 0x16b   :  { %1319 = vmatprep.subr.bf16.mxu1 %v2576_v22  ;;  %v2594_v22 = vld [vmem:[#allocation7 + $0x94] ss:$8 sps:$4 sm:$0xff]  }
 0x16e   :  { %1320 = vmatpush1.bf16.msra.mxu1 %v2574_v31  ;;  %v2592_v31 = vld [vmem:[#allocation7 + $0x90] ss:$8 sps:$4 sm:$0xff]  }
 0x16f   :  { %1321 = vmatprep.subr.bf16.mxu1 %v2579_v30  ;;  %v2597_v30 = vld [vmem:[#allocation7 + $0xa4] ss:$8 sps:$4 sm:$0xff]  }
 0x172   :  { %1322 = vmatpush1.bf16.msra.mxu1 %v2577_v47  ;;  %v2595_v47 = vld [vmem:[#allocation7 + $0xa0] ss:$8 sps:$4 sm:$0xff]  }
 0x173   :  { %1323 = vmatprep.subr.bf16.mxu1 %v2582_v13  ;;  %v2600_v13 = vld [vmem:[#allocation7 + $0xb4] ss:$8 sps:$4 sm:$0xff]  }
 0x176   :  { %1324 = vmatpush1.bf16.msra.mxu1 %v2580_v23  ;;  %v2598_v23 = vld [vmem:[#allocation7 + $0xb0] ss:$8 sps:$4 sm:$0xff]  }
 0x177   :  { %1325 = vmatprep.subr.bf16.mxu1 %v2585_v46  ;;  %v2603_v46 = vld [vmem:[#allocation7 + $0xc4] ss:$8 sps:$4 sm:$0xff]  }
 0x17a   :  { %1326 = vmatpush1.bf16.msra.mxu1 %v2583_v24  ;;  %v2601_v24 = vld [vmem:[#allocation7 + $0xc0] ss:$8 sps:$4 sm:$0xff]  }
 0x17b   :  { %1327 = vmatprep.subr.bf16.mxu1 %v2588_v45  ;;  %v379_v45 = vld [vmem:[%s3744_s4] sm:$0x3] }
 0x17e   :  { %1328 = vmatpush1.bf16.msra.mxu1 %v2586_v35  ;;  %v3296_v35 = vrot.slane %v379_v45, %v3092_v29 }
 0x17f   :  { %1329 = vmatprep.subr.bf16.mxu1 %v2591_v16  ;;  %v3299_v16 = vrot.slane %v379_v45, %v3087_v27 }
 0x182   :  { %1330 = vmatpush1.bf16.msra.mxu1 %v2589_v61 }
 0x183   :  { %1331 = vmatprep.subr.bf16.mxu1 %v2594_v22 }
 0x186   :  { %1332 = vmatpush1.bf16.msra.mxu1 %v2592_v31 }
 0x187   :  { %1333 = vmatprep.subr.bf16.mxu1 %v2597_v30 }
 0x18a   :  { %1334 = vmatpush1.bf16.msra.mxu1 %v2595_v47 }
 0x18b   :  { %1335 = vmatprep.subr.bf16.mxu1 %v2600_v13 }
 0x18e   :  { %1336 = vmatpush1.bf16.msra.mxu1 %v2598_v23 }
 0x18f   :  { %1337 = vmatprep.subr.bf16.mxu1 %v2603_v46 }
 0x192   :  { %1338 = vmatpush1.bf16.msra.mxu1 %v2601_v24 }
 0x203   :  { %v585_v61 = vpop.f32.mrb[0].mxu1 }
 0x204   :  { %v586_v22 = vadd.f32 %v585_v61, %v3296_v35  ;;  %v587_v31 = vpop.f32.mrb[1].mxu1 }
 0x205   :  { %v588_v30 = vadd.f32 %v587_v31, %v3299_v16  ;;  %v589_v47 = vpop.f32.mrb[2].mxu1 }
 0x206   :  { %v590_v13 = vadd.f32 %v589_v47, %v3296_v35  ;;  %v591_v23 = vpop.f32.mrb[3].mxu1  ;;  %v664_v24 = vmax.f32 %v586_v22, 0.0 }
 0x207   :  { %v592_v46 = vadd.f32 %v591_v23, %v3299_v16  ;;  %v665_v44 = vmax.f32 %v588_v30, 0.0 }
 0x208   :  { %v666_v8 = vmax.f32 %v590_v13, 0.0 }
 0x209   :  { %v667_v21 = vmax.f32 %v592_v46, 0.0 }
 0x20a   :  { %v696_v20 = vpack.c.bf16 %v666_v8, %v664_v24 }
 0x20b   :  { %v697_v19 = vpack.c.bf16 %v667_v21, %v665_v44  ;;  %v595_v45 = vpop.f32.mrb[4].mxu1 }
 0x20c   :  { %v596_v18 = vadd.f32 %v595_v45, %v3296_v35  ;;  %v597_v7 = vpop.f32.mrb[5].mxu1 }
 0x20d   :  { %v598_v61 = vadd.f32 %v597_v7, %v3299_v16  ;;  %v599_v6 = vpop.f32.mrb[6].mxu1  ;;  %948 = vmatprep.mubr.bf16.mxu0 %v697_v19 }
 0x20e   :  { %v600_v31 = vadd.f32 %v599_v6, %v3296_v35  ;;  %v601_v47 = vpop.f32.mrb[7].mxu1  ;;  %949 = vmatmul.mubr.bf16.vlgmr.msra.gmra.mrb[32].mxu0 %v696_v20  ;;  %v668_v22 = vmax.f32 %v596_v18, 0.0 }
 0x20f   :  { %v602_v23 = vadd.f32 %v601_v47, %v3299_v16  ;;  %v669_v30 = vmax.f32 %v598_v61, 0.0 }
 0x210   :  { %v670_v13 = vmax.f32 %v600_v31, 0.0 }
 0x211   :  { %v671_v46 = vmax.f32 %v602_v23, 0.0 }
 0x212   :  { %v698_v8 = vpack.c.bf16 %v670_v13, %v668_v22 }
 0x213   :  { %v699_v21 = vpack.c.bf16 %v671_v46, %v669_v30  ;;  %v605_v44 = vpop.f32.mrb[8].mxu1 }
 0x214   :  { %v606_v24 = vadd.f32 %v605_v44, %v3296_v35  ;;  %v607_v45 = vpop.f32.mrb[9].mxu1 }
 0x215   :  { %v608_v7 = vadd.f32 %v607_v45, %v3299_v16  ;;  %v609_v5 = vpop.f32.mrb[10].mxu1  ;;  %958 = vmatprep.mubr.bf16.mxu0 %v699_v21 }
 0x216   :  { %v610_v6 = vadd.f32 %v609_v5, %v3296_v35  ;;  %v611_v19 = vpop.f32.mrb[11].mxu1  ;;  %959 = vmatmul.mubr.bf16.gmra.mrb[36].mxu0 %v698_v8  ;;  %v672_v18 = vmax.f32 %v606_v24, 0.0 }
 0x217   :  { %v612_v20 = vadd.f32 %v611_v19, %v3299_v16  ;;  %v673_v61 = vmax.f32 %v608_v7, 0.0 }
 0x218   :  { %v674_v31 = vmax.f32 %v610_v6, 0.0 }
 0x219   :  { %v675_v47 = vmax.f32 %v612_v20, 0.0 }
 0x21a   :  { %v700_v23 = vpack.c.bf16 %v674_v31, %v672_v18 }
 0x21b   :  { %v701_v22 = vpack.c.bf16 %v675_v47, %v673_v61  ;;  %v615_v13 = vpop.f32.mrb[12].mxu1 }
 0x21c   :  { %v616_v30 = vadd.f32 %v615_v13, %v3296_v35  ;;  %v617_v46 = vpop.f32.mrb[13].mxu1 }
 0x21d   :  { %v618_v44 = vadd.f32 %v617_v46, %v3299_v16  ;;  %v619_v45 = vpop.f32.mrb[14].mxu1  ;;  %968 = vmatprep.mubr.bf16.mxu0 %v701_v22 }
 0x21e   :  { %v620_v5 = vadd.f32 %v619_v45, %v3296_v35  ;;  %v621_v21 = vpop.f32.mrb[15].mxu1  ;;  %969 = vmatmul.mubr.bf16.gmra.mrb[40].mxu0 %v700_v23  ;;  %v676_v24 = vmax.f32 %v616_v30, 0.0 }
 0x21f   :  { %v622_v8 = vadd.f32 %v621_v21, %v3299_v16  ;;  %v677_v7 = vmax.f32 %v618_v44, 0.0 }
 0x220   :  { %v678_v6 = vmax.f32 %v620_v5, 0.0 }
 0x221   :  { %v679_v19 = vmax.f32 %v622_v8, 0.0 }
 0x222   :  { %v702_v20 = vpack.c.bf16 %v678_v6, %v676_v24 }
 0x223   :  { %v703_v18 = vpack.c.bf16 %v679_v19, %v677_v7  ;;  %v625_v31 = vpop.f32.mrb[16].mxu1 }
 0x224   :  { %v626_v61 = vadd.f32 %v625_v31, %v3296_v35  ;;  %v627_v47 = vpop.f32.mrb[17].mxu1 }
 0x225   :  { %v628_v13 = vadd.f32 %v627_v47, %v3299_v16  ;;  %v629_v46 = vpop.f32.mrb[18].mxu1  ;;  %978 = vmatprep.mubr.bf16.mxu0 %v703_v18 }
 0x226   :  { %v630_v22 = vadd.f32 %v629_v46, %v3296_v35  ;;  %v631_v45 = vpop.f32.mrb[19].mxu1  ;;  %979 = vmatmul.mubr.bf16.gmra.mrb[44].mxu0 %v702_v20  ;;  %v680_v30 = vmax.f32 %v626_v61, 0.0 }
 0x227   :  { %v632_v23 = vadd.f32 %v631_v45, %v3299_v16  ;;  %v681_v44 = vmax.f32 %v628_v13, 0.0 }
 0x228   :  { %v682_v5 = vmax.f32 %v630_v22, 0.0 }
 0x229   :  { %v683_v21 = vmax.f32 %v632_v23, 0.0 }
 0x22a   :  { %v704_v8 = vpack.c.bf16 %v682_v5, %v680_v30 }
 0x22b   :  { %v705_v24 = vpack.c.bf16 %v683_v21, %v681_v44  ;;  %v635_v6 = vpop.f32.mrb[20].mxu1 }
 0x22c   :  { %v636_v7 = vadd.f32 %v635_v6, %v3296_v35  ;;  %v637_v19 = vpop.f32.mrb[21].mxu1 }
 0x22d   :  { %v638_v31 = vadd.f32 %v637_v19, %v3299_v16  ;;  %v639_v47 = vpop.f32.mrb[22].mxu1  ;;  %988 = vmatprep.mubr.bf16.mxu0 %v705_v24 }
 0x22e   :  { %v640_v18 = vadd.f32 %v639_v47, %v3296_v35  ;;  %v641_v46 = vpop.f32.mrb[23].mxu1  ;;  %989 = vmatmul.mubr.bf16.gmra.mrb[48].mxu0 %v704_v8  ;;  %v684_v61 = vmax.f32 %v636_v7, 0.0 }
 0x22f   :  { %v642_v20 = vadd.f32 %v641_v46, %v3299_v16  ;;  %v685_v13 = vmax.f32 %v638_v31, 0.0 }
 0x230   :  { %v686_v22 = vmax.f32 %v640_v18, 0.0 }
 0x231   :  { %v687_v45 = vmax.f32 %v642_v20, 0.0 }
 0x232   :  { %v706_v23 = vpack.c.bf16 %v686_v22, %v684_v61 }
 0x233   :  { %v707_v30 = vpack.c.bf16 %v687_v45, %v685_v13  ;;  %v645_v5 = vpop.f32.mrb[24].mxu1 }
 0x234   :  { %v646_v44 = vadd.f32 %v645_v5, %v3296_v35  ;;  %v647_v21 = vpop.f32.mrb[25].mxu1 }
 0x235   :  { %v648_v6 = vadd.f32 %v647_v21, %v3299_v16  ;;  %v649_v19 = vpop.f32.mrb[26].mxu1  ;;  %998 = vmatprep.mubr.bf16.mxu0 %v707_v30 }
 0x236   :  { %v650_v24 = vadd.f32 %v649_v19, %v3296_v35  ;;  %v651_v47 = vpop.f32.mrb[27].mxu1  ;;  %999 = vmatmul.mubr.bf16.gmra.mrb[52].mxu0 %v706_v23  ;;  %v688_v7 = vmax.f32 %v646_v44, 0.0 }
 0x237   :  { %v652_v8 = vadd.f32 %v651_v47, %v3299_v16  ;;  %v689_v31 = vmax.f32 %v648_v6, 0.0 }
 0x238   :  { %v690_v18 = vmax.f32 %v650_v24, 0.0 }
 0x239   :  { %v691_v46 = vmax.f32 %v652_v8, 0.0 }
 0x23a   :  { %v708_v20 = vpack.c.bf16 %v690_v18, %v688_v7  ;;  %v2606_v18 = vld [vmem:[#allocation7 + $0xd4] ss:$8 sps:$4 sm:$0xff]  }
 0x23b   :  { %v709_v61 = vpack.c.bf16 %v691_v46, %v689_v31  ;;  %v655_v22 = vpop.f32.mrb[28].mxu1  ;;  %v2604_v31 = vld [vmem:[#allocation7 + $0xd0] ss:$8 sps:$4 sm:$0xff]   ;;  %1339 = vmatprep.subr.bf16.mxu1 %v2606_v18  ;;  %v2609_v46 = vld [vmem:[#allocation7 + $0xe4] ss:$8 sps:$4 sm:$0xff]  }
 0x23c   :  { %v656_v13 = vadd.f32 %v655_v22, %v3296_v35  ;;  %v657_v45 = vpop.f32.mrb[29].mxu1  ;;  %1340 = vmatpush1.bf16.msra.mxu1 %v2604_v31  ;;  %v2615_v22 = vld [vmem:[#allocation8 + $0x4] ss:$8 sps:$4 sm:$0xff]   ;;  %v2634_v18 = vld [vmem:[#allocation8 + $0x70] ss:$8 sps:$4 sm:$0xff]  }
 0x23d   :  { %v658_v5 = vadd.f32 %v657_v45, %v3299_v16  ;;  %v659_v21 = vpop.f32.mrb[30].mxu1  ;;  %1008 = vmatprep.mubr.bf16.mxu0 %v709_v61  ;;  %v2607_v61 = vld [vmem:[#allocation7 + $0xe0] ss:$8 sps:$4 sm:$0xff]   ;;  %1341 = vmatprep.subr.bf16.mxu1 %v2609_v46  ;;  %v2616_v45 = vld [vmem:[#allocation8 + $0x10] ss:$8 sps:$4 sm:$0xff]  }
 0x23e   :  { %v660_v30 = vadd.f32 %v659_v21, %v3296_v35  ;;  %v661_v19 = vpop.f32.mrb[31].mxu1  ;;  %1009 = vmatmul.mubr.bf16.gmra.mrb[56].mxu0 %v708_v20  ;;  %v692_v44 = vmax.f32 %v656_v13, 0.0  ;;  %v2612_v35 = vld [vmem:[#allocation7 + $0xf4] ss:$8 sps:$4 sm:$0xff]   ;;  %v2610_v20 = vld [vmem:[#allocation7 + $0xf0] ss:$8 sps:$4 sm:$0xff]   ;;  %1678 = vmatprep.subr.bf16.mxu0 %v2615_v22 }
 0x23f   :  { %v662_v23 = vadd.f32 %v661_v19, %v3299_v16  ;;  %v693_v6 = vmax.f32 %v658_v5, 0.0  ;;  %v2613_v16 = vld [vmem:[#allocation8] ss:$8 sps:$4 sm:$0xff]   ;;  %v2618_v13 = vld [vmem:[#allocation8 + $0x14] ss:$8 sps:$4 sm:$0xff]  }
 0x240   :  { %v694_v24 = vmax.f32 %v660_v30, 0.0  ;;  %1342 = vmatpush1.bf16.msra.mxu1 %v2607_v61  ;;  %1679 = vmatpush1.bf16.msra.mxu0 %v2613_v16  ;;  %v2621_v5 = vld [vmem:[#allocation8 + $0x24] ss:$8 sps:$4 sm:$0xff]   ;;  %v2619_v21 = vld [vmem:[#allocation8 + $0x20] ss:$8 sps:$4 sm:$0xff]  }
 0x241   :  { %v695_v47 = vmax.f32 %v662_v23, 0.0  ;;  %1343 = vmatprep.subr.bf16.mxu1 %v2612_v35  ;;  %1680 = vmatprep.subr.bf16.mxu0 %v2618_v13  ;;  %v2624_v30 = vld [vmem:[#allocation8 + $0x34] ss:$8 sps:$4 sm:$0xff]   ;;  %v2622_v19 = vld [vmem:[#allocation8 + $0x30] ss:$8 sps:$4 sm:$0xff]  }
 0x242   :  { %v710_v8 = vpack.c.bf16 %v694_v24, %v692_v44  ;;  %v2627_v23 = vld [vmem:[#allocation8 + $0x44] ss:$8 sps:$4 sm:$0xff]   ;;  %v2625_v44 = vld [vmem:[#allocation8 + $0x40] ss:$8 sps:$4 sm:$0xff]   ;;  %v2630_v24 = vld [vmem:[#allocation8 + $0x54] ss:$8 sps:$4 sm:$0xff]  }
 0x243   :  { %v711_v7 = vpack.c.bf16 %v695_v47, %v693_v6  ;;  %v2628_v6 = vld [vmem:[#allocation8 + $0x50] ss:$8 sps:$4 sm:$0xff]   ;;  %v2633_v47 = vld [vmem:[#allocation8 + $0x64] ss:$8 sps:$4 sm:$0xff]   ;;  %v2637_v46 = vld [vmem:[#allocation8 + $0x80] ss:$8 sps:$4 sm:$0xff]  }
 0x244   :  { %1344 = vmatpush1.bf16.msra.mxu1 %v2610_v20  ;;  %1681 = vmatpush1.bf16.msra.mxu0 %v2616_v45  ;;  %v2639_v31 = vld [vmem:[#allocation8 + $0x84] ss:$8 sps:$4 sm:$0xff]   ;;  %v2642_v61 = vld [vmem:[#allocation8 + $0x94] ss:$8 sps:$4 sm:$0xff]   ;;  %v2640_v35 = vld [vmem:[#allocation8 + $0x90] ss:$8 sps:$4 sm:$0xff]  }
 0x245   :  { %1018 = vmatprep.mubr.bf16.mxu0 %v711_v7  ;;  %1682 = vmatprep.subr.bf16.mxu0 %v2621_v5  ;;  %v2636_v7 = vld [vmem:[#allocation8 + $0x74] ss:$8 sps:$4 sm:$0xff]   ;;  %v2645_v20 = vld [vmem:[#allocation8 + $0xa4] ss:$8 sps:$4 sm:$0xff]   ;;  %v2643_v16 = vld [vmem:[#allocation8 + $0xa0] ss:$8 sps:$4 sm:$0xff]  }
 0x246   :  { %1019 = vmatmul.mubr.bf16.gmra.mrb[60].mxu0 %v710_v8  ;;  %v2631_v8 = vld [vmem:[#allocation8 + $0x60] ss:$8 sps:$4 sm:$0xff]   ;;  %v2648_v22 = vld [vmem:[#allocation8 + $0xb4] ss:$8 sps:$4 sm:$0xff]   ;;  %v2646_v13 = vld [vmem:[#allocation8 + $0xb0] ss:$8 sps:$4 sm:$0xff]  }
 0x247   :  { %v2651_v45 = vld [vmem:[#allocation8 + $0xc4] ss:$8 sps:$4 sm:$0xff]   ;;  %v2649_v5 = vld [vmem:[#allocation8 + $0xc0] ss:$8 sps:$4 sm:$0xff]  }
 0x248   :  { %1683 = vmatpush1.bf16.msra.mxu0 %v2619_v21  ;;  %v2654_v21 = vld [vmem:[#allocation8 + $0xd4] ss:$8 sps:$4 sm:$0xff]  }
 0x249   :  { %1684 = vmatprep.subr.bf16.mxu0 %v2624_v30  ;;  %v2652_v30 = vld [vmem:[#allocation8 + $0xd0] ss:$8 sps:$4 sm:$0xff]  }
 0x24c   :  { %1685 = vmatpush1.bf16.msra.mxu0 %v2622_v19  ;;  %v744_v19 = vld [vmem:[%s3746_s6] sm:$0x3] }
 0x24d   :  { %1686 = vmatprep.subr.bf16.mxu0 %v2627_v23  ;;  %v3337_v23 = vrot.slane %v744_v19, %v3092_v29 }
 0x250   :  { %1687 = vmatpush1.bf16.msra.mxu0 %v2625_v44  ;;  %v3340_v44 = vrot.slane %v744_v19, %v3087_v27 }
 0x251   :  { %1688 = vmatprep.subr.bf16.mxu0 %v2630_v24 }
 0x254   :  { %1689 = vmatpush1.bf16.msra.mxu0 %v2628_v6 }
 0x255   :  { %1690 = vmatprep.subr.bf16.mxu0 %v2633_v47 }
 0x258   :  { %1691 = vmatpush1.bf16.msra.mxu0 %v2631_v8 }
 0x259   :  { %1692 = vmatprep.subr.bf16.mxu0 %v2636_v7 }
 0x25c   :  { %1693 = vmatpush1.bf16.msra.mxu0 %v2634_v18 }
 0x25d   :  { %1694 = vmatprep.subr.bf16.mxu0 %v2639_v31 }
 0x260   :  { %1695 = vmatpush1.bf16.msra.mxu0 %v2637_v46 }
 0x261   :  { %1696 = vmatprep.subr.bf16.mxu0 %v2642_v61 }
 0x264   :  { %1697 = vmatpush1.bf16.msra.mxu0 %v2640_v35 }
 0x265   :  { %1698 = vmatprep.subr.bf16.mxu0 %v2645_v20 }
 0x268   :  { %1699 = vmatpush1.bf16.msra.mxu0 %v2643_v16 }
 0x269   :  { %1700 = vmatprep.subr.bf16.mxu0 %v2648_v22 }
 0x26c   :  { %1701 = vmatpush1.bf16.msra.mxu0 %v2646_v13 }
 0x26d   :  { %1702 = vmatprep.subr.bf16.mxu0 %v2651_v45 }
 0x270   :  { %1703 = vmatpush1.bf16.msra.mxu0 %v2649_v5 }
 0x271   :  { %1704 = vmatprep.subr.bf16.mxu0 %v2654_v21 }
 0x274   :  { %1705 = vmatpush1.bf16.msra.mxu0 %v2652_v30 }
 0x2e1   :  { %v950_v24 = vpop.f32.mrb[32].mxu0 }
 0x2e2   :  { %v951_v6 = vadd.f32 %v950_v24, %v3337_v23  ;;  %v952_v47 = vpop.f32.mrb[33].mxu0 }
 0x2e3   :  { %v953_v8 = vadd.f32 %v952_v47, %v3340_v44  ;;  %v954_v7 = vpop.f32.mrb[34].mxu0 }
 0x2e4   :  { %v955_v18 = vadd.f32 %v954_v7, %v3337_v23  ;;  %v956_v31 = vpop.f32.mrb[35].mxu0  ;;  %v1029_v35 = vmax.f32 %v951_v6, 0.0 }
 0x2e5   :  { %v1030_v46 = vmax.f32 %v953_v8, 0.0  ;;  %v957_v61 = vadd.f32 %v956_v31, %v3340_v44 }
 0x2e6   :  { %v1031_v20 = vmax.f32 %v955_v18, 0.0  ;;  %v3360_v21 = vadd.f32 %v1029_v35, %v299_v43 }
 0x2e7   :  { %v1032_v16 = vmax.f32 %v957_v61, 0.0  ;;  %v3352_v13 = vadd.f32 %v1030_v46, %v300_v41 }
 0x2e8   :  { %v3348_v22 = vadd.f32 %v1031_v20, %v301_v40 }
 0x2e9   :  { %v3356_v45 = vadd.f32 %v1032_v16, %v302_v42  ;;  %v960_v5 = vpop.f32.mrb[36].mxu0 }
 0x2ea   :  { %v961_v30 = vadd.f32 %v960_v5, %v3337_v23  ;;  %v962_v19 = vpop.f32.mrb[37].mxu0  ;;  %v1093_v41 = vpack.c.bf16 %v3348_v22, %v3360_v21 }
 0x2eb   :  { %v963_v37 = vadd.f32 %v962_v19, %v3340_v44  ;;  %v964_v40 = vpop.f32.mrb[38].mxu0  ;;  %v1094_v34 = vpack.c.bf16 %v3356_v45, %v3352_v13  ;;  %v3777_v19 = vmax.f32 %v3149_v62, 0.0 }
 0x2ec   :  { %v965_v39 = vadd.f32 %v964_v40, %v3337_v23  ;;  %v966_v42 = vpop.f32.mrb[39].mxu0  ;;  %v1033_v43 = vmax.f32 %v961_v30, 0.0  ;;  %v3778_v40 = vmax.f32 %v3158_v3, 0.0 }
 0x2ed   :  { %v1034_v24 = vmax.f32 %v963_v37, 0.0  ;;  %v967_v36 = vadd.f32 %v966_v42, %v3340_v44  ;;  %1345 = vmatprep.mubr.bf16.mxu1 %v1094_v34 }
 0x2ee   :  { %v1035_v6 = vmax.f32 %v965_v39, 0.0  ;;  %1346 = vmatmul.mubr.bf16.vlgmr.msra.gmra.mrb[32].mxu1 %v1093_v41  ;;  %v3384_v46 = vadd.f32 %v1033_v43, %v303_v57  ;;  %v3779_v39 = vmax.f32 %v3152_v0, 0.0 }
 0x2ef   :  { %v1036_v47 = vmax.f32 %v967_v36, 0.0  ;;  %v3376_v7 = vadd.f32 %v1034_v24, %v304_v55 }
 0x2f0   :  { %v3372_v8 = vadd.f32 %v1035_v6, %v305_v54 }
 0x2f1   :  { %v3380_v18 = vadd.f32 %v1036_v47, %v306_v56  ;;  %v970_v31 = vpop.f32.mrb[40].mxu0 }
 0x2f2   :  { %v971_v61 = vadd.f32 %v970_v31, %v3337_v23  ;;  %v972_v35 = vpop.f32.mrb[41].mxu0  ;;  %v1095_v53 = vpack.c.bf16 %v3372_v8, %v3384_v46 }
 0x2f3   :  { %v973_v51 = vadd.f32 %v972_v35, %v3340_v44  ;;  %v974_v54 = vpop.f32.mrb[42].mxu0  ;;  %v1096_v48 = vpack.c.bf16 %v3380_v18, %v3376_v7 }
 0x2f4   :  { %v975_v55 = vadd.f32 %v974_v54, %v3337_v23  ;;  %v976_v20 = vpop.f32.mrb[43].mxu0  ;;  %v1037_v57 = vmax.f32 %v971_v61, 0.0 }
 0x2f5   :  { %v1038_v56 = vmax.f32 %v973_v51, 0.0  ;;  %v977_v50 = vadd.f32 %v976_v20, %v3340_v44  ;;  %1355 = vmatprep.mubr.bf16.mxu1 %v1096_v48  ;;  %v3780_v51 = vmax.f32 %v3179_v15, 0.0  ;;  %v3781_v48 = vmax.f32 %v3173_v12, 0.0 }
 0x2f6   :  { %v1039_v16 = vmax.f32 %v975_v55, 0.0  ;;  %1356 = vmatmul.mubr.bf16.gmra.mrb[36].mxu1 %v1095_v53  ;;  %v3408_v42 = vadd.f32 %v1037_v57, %v3779_v39  ;;  %v3782_v20 = vmax.f32 %v3182_v17, 0.0 }
 0x2f7   :  { %v1040_v5 = vmax.f32 %v977_v50, 0.0  ;;  %v3400_v37 = vadd.f32 %v1038_v56, %v3777_v19  ;;  %v3783_v50 = vmax.f32 %v3176_v14, 0.0 }
 0x2f8   :  { %v3396_v30 = vadd.f32 %v1039_v16, %v309_v4 }
 0x2f9   :  { %v3404_v34 = vadd.f32 %v1040_v5, %v3778_v40  ;;  %v980_v41 = vpop.f32.mrb[44].mxu0 }
 0x2fa   :  { %v981_v24 = vadd.f32 %v980_v41, %v3337_v23  ;;  %v982_v36 = vpop.f32.mrb[45].mxu0  ;;  %v1097_v3 = vpack.c.bf16 %v3396_v30, %v3408_v42 }
 0x2fb   :  { %v983_v1 = vadd.f32 %v982_v36, %v3340_v44  ;;  %v984_v4 = vpop.f32.mrb[46].mxu0  ;;  %v1098_v62 = vpack.c.bf16 %v3404_v34, %v3400_v37 }
 0x2fc   :  { %v985_v43 = vadd.f32 %v984_v4, %v3337_v23  ;;  %v986_v6 = vpop.f32.mrb[47].mxu0  ;;  %v1041_v31 = vmax.f32 %v981_v24, 0.0  ;;  %v3784_v4 = vmax.f32 %v3203_v33, 0.0 }
 0x2fd   :  { %v1042_v47 = vmax.f32 %v983_v1, 0.0  ;;  %v987_v0 = vadd.f32 %v986_v6, %v3340_v44  ;;  %1365 = vmatprep.mubr.bf16.mxu1 %v1098_v62 }
 0x2fe   :  { %v1043_v61 = vmax.f32 %v985_v43, 0.0  ;;  %1366 = vmatmul.mubr.bf16.gmra.mrb[40].mxu1 %v1097_v3  ;;  %v3432_v57 = vadd.f32 %v1041_v31, %v3783_v50  ;;  %v3785_v43 = vmax.f32 %v3197_v26, 0.0  ;;  %v3786_v3 = vmax.f32 %v3206_v38, 0.0 }
 0x2ff   :  { %v1044_v35 = vmax.f32 %v987_v0, 0.0  ;;  %v3424_v55 = vadd.f32 %v1042_v47, %v3781_v48  ;;  %v3787_v31 = vmax.f32 %v3200_v32, 0.0 }
 0x300   :  { %v3420_v54 = vadd.f32 %v1043_v61, %v3780_v51 }
 0x301   :  { %v3428_v53 = vadd.f32 %v1044_v35, %v3782_v20  ;;  %v990_v56 = vpop.f32.mrb[48].mxu0 }
 0x302   :  { %v991_v16 = vadd.f32 %v990_v56, %v3337_v23  ;;  %v992_v5 = vpop.f32.mrb[49].mxu0  ;;  %v1099_v17 = vpack.c.bf16 %v3420_v54, %v3432_v57 }
 0x303   :  { %v993_v15 = vadd.f32 %v992_v5, %v3340_v44  ;;  %v994_v19 = vpop.f32.mrb[50].mxu0  ;;  %v1100_v12 = vpack.c.bf16 %v3428_v53, %v3424_v55 }
 0x304   :  { %v995_v40 = vadd.f32 %v994_v19, %v3337_v23  ;;  %v996_v41 = vpop.f32.mrb[51].mxu0  ;;  %v1045_v24 = vmax.f32 %v991_v16, 0.0  ;;  %v3788_v19 = vmax.f32 %v3227_v2, 0.0 }
 0x305   :  { %v1046_v39 = vmax.f32 %v993_v15, 0.0  ;;  %v997_v14 = vadd.f32 %v996_v41, %v3340_v44  ;;  %1375 = vmatprep.mubr.bf16.mxu1 %v1100_v12 }
 0x306   :  { %v1047_v36 = vmax.f32 %v995_v40, 0.0  ;;  %1376 = vmatmul.mubr.bf16.gmra.mrb[44].mxu1 %v1099_v17  ;;  %v3456_v61 = vadd.f32 %v1045_v24, %v3787_v31  ;;  %v3789_v40 = vmax.f32 %v3221_v60, 0.0  ;;  %v3790_v17 = vmax.f32 %v3230_v9, 0.0 }
 0x307   :  { %v1048_v1 = vmax.f32 %v997_v14, 0.0  ;;  %v3448_v6 = vadd.f32 %v1046_v39, %v3785_v43  ;;  %v3791_v24 = vmax.f32 %v3224_v63, 0.0 }
 0x308   :  { %v3444_v62 = vadd.f32 %v1047_v36, %v3784_v4 }
 0x309   :  { %v3452_v47 = vadd.f32 %v1048_v1, %v3786_v3  ;;  %v1000_v0 = vpop.f32.mrb[52].mxu0 }
 0x30a   :  { %v1001_v35 = vadd.f32 %v1000_v0, %v3337_v23  ;;  %v1002_v51 = vpop.f32.mrb[53].mxu0  ;;  %v1101_v38 = vpack.c.bf16 %v3444_v62, %v3456_v61 }
 0x30b   :  { %v1003_v33 = vadd.f32 %v1002_v51, %v3340_v44  ;;  %v1004_v48 = vpop.f32.mrb[54].mxu0  ;;  %v1102_v26 = vpack.c.bf16 %v3452_v47, %v3448_v6 }
 0x30c   :  { %v1005_v20 = vadd.f32 %v1004_v48, %v3337_v23  ;;  %v1006_v56 = vpop.f32.mrb[55].mxu0  ;;  %v1049_v16 = vmax.f32 %v1001_v35, 0.0  ;;  %v3792_v48 = vmax.f32 %v3251_v52, 0.0 }
 0x30d   :  { %v1050_v50 = vmax.f32 %v1003_v33, 0.0  ;;  %v1007_v32 = vadd.f32 %v1006_v56, %v3340_v44  ;;  %1385 = vmatprep.mubr.bf16.mxu1 %v1102_v26 }
 0x30e   :  { %v1051_v5 = vmax.f32 %v1005_v20, 0.0  ;;  %1386 = vmatmul.mubr.bf16.gmra.mrb[48].mxu1 %v1101_v38  ;;  %v3480_v36 = vadd.f32 %v1049_v16, %v3791_v24  ;;  %v3793_v20 = vmax.f32 %v3245_v28, 0.0  ;;  %v3794_v38 = vmax.f32 %v3254_v59, 0.0 }
 0x30f   :  { %v1052_v15 = vmax.f32 %v1007_v32, 0.0  ;;  %v3472_v41 = vadd.f32 %v1050_v50, %v3789_v40  ;;  %v3795_v16 = vmax.f32 %v3248_v49, 0.0 }
 0x310   :  { %v3468_v12 = vadd.f32 %v1051_v5, %v3788_v19 }
 0x311   :  { %v3476_v39 = vadd.f32 %v1052_v15, %v3790_v17  ;;  %v1010_v14 = vpop.f32.mrb[56].mxu0 }
 0x312   :  { %v1011_v1 = vadd.f32 %v1010_v14, %v3337_v23  ;;  %v1012_v4 = vpop.f32.mrb[57].mxu0  ;;  %v1103_v9 = vpack.c.bf16 %v3468_v12, %v3480_v36 }
 0x313   :  { %v1013_v2 = vadd.f32 %v1012_v4, %v3340_v44  ;;  %v1014_v43 = vpop.f32.mrb[58].mxu0  ;;  %v1104_v60 = vpack.c.bf16 %v3476_v39, %v3472_v41 }
 0x314   :  { %v1015_v3 = vadd.f32 %v1014_v43, %v3337_v23  ;;  %v1016_v0 = vpop.f32.mrb[59].mxu0  ;;  %v1053_v35 = vmax.f32 %v1011_v1, 0.0  ;;  %v3796_v43 = vmax.f32 %v3275_v10, 0.0 }
 0x315   :  { %v1054_v31 = vmax.f32 %v1013_v2, 0.0  ;;  %v1017_v63 = vadd.f32 %v1016_v0, %v3340_v44  ;;  %1395 = vmatprep.mubr.bf16.mxu1 %v1104_v60 }
 0x316   :  { %v1055_v51 = vmax.f32 %v1015_v3, 0.0  ;;  %1396 = vmatmul.mubr.bf16.gmra.mrb[52].mxu1 %v1103_v9  ;;  %v3504_v5 = vadd.f32 %v1053_v35, %v3795_v16  ;;  %v3797_v3 = vmax.f32 %v3269_v58, 0.0  ;;  %v2657_v35 = vld [vmem:[#allocation8 + $0xe4] ss:$8 sps:$4 sm:$0xff]   ;;  %v2655_v58 = vld [vmem:[#allocation8 + $0xe0] ss:$8 sps:$4 sm:$0xff]  }
 0x317   :  { %v1056_v33 = vmax.f32 %v1017_v63, 0.0  ;;  %v3496_v56 = vadd.f32 %v1054_v31, %v3793_v20  ;;  %v3799_v31 = vmax.f32 %v3272_v11, 0.0  ;;  %1706 = vmatprep.subr.bf16.mxu0 %v2657_v35  ;;  %v2661_v11 = vld [vmem:[%s3751_s11 + $0x40] sm:$0xff]   ;;  %v2664_v20 = vld [vmem:[%s3751_s11 + $0x8] sm:$0xff]   ;;  %v2667_v16 = vld [vmem:[%s3751_s11 + $0x58] sm:$0xff]  }
 0x318   :  { %v3492_v26 = vadd.f32 %v1055_v51, %v3792_v48  ;;  %1707 = vmatpush1.bf16.msra.mxu0 %v2655_v58  ;;  %v2660_v51 = vld [vmem:[#allocation8 + $0xf4] ss:$8 sps:$4 sm:$0xff]   ;;  %2439 = vmatprep.subr.bf16.mxu1 %v2661_v11  ;;  %v2663_v48 = vld [vmem:[%s3751_s11 + $0x48] sm:$0xff]  }
 0x319   :  { %v3500_v50 = vadd.f32 %v1056_v33, %v3794_v38  ;;  %v1020_v32 = vpop.f32.mrb[60].mxu0  ;;  %1708 = vmatprep.subr.bf16.mxu0 %v2660_v51  ;;  %v2662_v33 = vld [vmem:[%s3751_s11] sm:$0xff]   ;;  %v2665_v38 = vld [vmem:[%s3751_s11 + $0x50] sm:$0xff]  }
 0x31a   :  { %v1021_v15 = vadd.f32 %v1020_v32, %v3337_v23  ;;  %v1022_v19 = vpop.f32.mrb[61].mxu0  ;;  %v1105_v59 = vpack.c.bf16 %v3492_v26, %v3504_v5  ;;  %2447 = vmatpush3.bf16.msra.mxu1 %v2662_v33  ;;  %v2666_v32 = vld [vmem:[%s3751_s11 + $0x10] sm:$0xff]  }
 0x31b   :  { %v1023_v52 = vadd.f32 %v1022_v19, %v3340_v44  ;;  %v1024_v40 = vpop.f32.mrb[62].mxu0  ;;  %v1106_v28 = vpack.c.bf16 %v3500_v50, %v3496_v56  ;;  %2440 = vmatprep.subr.bf16.mxu1 %v2663_v48  ;;  %v3561_v19 = vld [vmem:[%s3751_s11 + $0x60] sm:$0xff]  }
 0x31c   :  { %v1025_v17 = vadd.f32 %v1024_v40, %v3337_v23  ;;  %v1026_v14 = vpop.f32.mrb[63].mxu0  ;;  %v1057_v1 = vmax.f32 %v1021_v15, 0.0  ;;  %v3798_v23 = vmax.f32 %v3278_v25, 0.0  ;;  %v2658_v25 = vld [vmem:[#allocation8 + $0xf0] ss:$8 sps:$4 sm:$0xff]  }
 0x31d   :  { %v1058_v24 = vmax.f32 %v1023_v52, 0.0  ;;  %v1027_v49 = vadd.f32 %v1026_v14, %v3340_v44  ;;  %1405 = vmatprep.mubr.bf16.mxu1 %v1106_v28  ;;  %1709 = vmatpush1.bf16.msra.mxu0 %v2658_v25  ;;  %v2668_v15 = vld [vmem:[%s3751_s11 + $0x18] sm:$0xff]   ;;  %v3567_v52 = vld [vmem:[%s3751_s11 + $0x20] sm:$0xff]  }
 0x31e   :  { %v1059_v4 = vmax.f32 %v1025_v17, 0.0  ;;  %1406 = vmatmul.mubr.bf16.gmra.mrb[56].mxu1 %v1105_v59  ;;  %v3528_v44 = vadd.f32 %v1057_v1, %v3799_v31  ;;  %2375 = vmatprep.subr.bf16.mxu0 %v2661_v11  ;;  %v1141_v40 = vld [vmem:[%s3748_s8] sm:$0x3] }
 0x31f   :  { %v1060_v2 = vmax.f32 %v1027_v49, 0.0  ;;  %v3520_v0 = vadd.f32 %v1058_v24, %v3797_v3  ;;  %2448 = vmatpush3.bf16.msra.mxu1 %v2664_v20  ;;  %v3574_v28 = vrot.slane %v1141_v40, %v3092_v29  ;;  %v3577_v17 = vrot.slane %v1141_v40, %v3087_v27 }
 0x320   :  { %v3516_v60 = vadd.f32 %v1059_v4, %v3796_v43  ;;  %2441 = vmatprep.subr.bf16.mxu1 %v2665_v38 }
 0x321   :  { %v3524_v9 = vadd.f32 %v1060_v2, %v3798_v23 }
 0x322   :  { %v1107_v10 = vpack.c.bf16 %v3516_v60, %v3528_v44 }
 0x323   :  { %v1108_v63 = vpack.c.bf16 %v3524_v9, %v3520_v0  ;;  %2449 = vmatpush3.bf16.msra.mxu1 %v2666_v32 }
 0x324   :  { %2442 = vmatprep.subr.bf16.mxu1 %v2667_v16 }
 0x325   :  { %1415 = vmatprep.mubr.bf16.mxu1 %v1108_v63 }
 0x326   :  { %1416 = vmatmul.mubr.bf16.gmra.mrb[60].mxu1 %v1107_v10 }
 0x327   :  { %2450 = vmatpush3.bf16.msra.mxu1 %v2668_v15 }
 0x328   :  { %2443 = vmatprep.subr.bf16.mxu1 %v3561_v19 }
 0x32b   :  { %2451 = vmatpush3.bf16.msra.mxu1 %v3567_v52 }
 0x3c1   :  { %v1347_v14 = vpop.f32.mrb[32].mxu1 }
 0x3c2   :  { %v1348_v59 = vadd.f32 %v1347_v14, %v3574_v28  ;;  %v1349_v24 = vpop.f32.mrb[33].mxu1 }
 0x3c3   :  { %v1350_v49 = vadd.f32 %v1349_v24, %v3577_v17  ;;  %v1351_v1 = vpop.f32.mrb[34].mxu1 }
 0x3c4   :  { %v1352_v4 = vadd.f32 %v1351_v1, %v3574_v28  ;;  %v1353_v2 = vpop.f32.mrb[35].mxu1  ;;  %v1426_v3 = vmax.f32 %v1348_v59, 0.0 }
 0x3c5   :  { %v1354_v43 = vadd.f32 %v1353_v2, %v3577_v17  ;;  %v1427_v31 = vmax.f32 %v1350_v49, 0.0 }
 0x3c6   :  { %v1428_v23 = vmax.f32 %v1352_v4, 0.0 }
 0x3c7   :  { %v1429_v63 = vmax.f32 %v1354_v43, 0.0 }
 0x3c8   :  { %v1458_v10 = vpack.c.bf16 %v1428_v23, %v1426_v3 }
 0x3c9   :  { %v1459_v35 = vpack.c.bf16 %v1429_v63, %v1427_v31  ;;  %v1357_v58 = vpop.f32.mrb[36].mxu1 }
 0x3ca   :  { %v1358_v51 = vadd.f32 %v1357_v58, %v3574_v28  ;;  %v1359_v25 = vpop.f32.mrb[37].mxu1 }
 0x3cb   :  { %v1360_v11 = vadd.f32 %v1359_v25, %v3577_v17  ;;  %v1361_v40 = vpop.f32.mrb[38].mxu1  ;;  %1710 = vmatprep.mubr.bf16.mxu0 %v1459_v35 }
 0x3cc   :  { %v1362_v14 = vadd.f32 %v1361_v40, %v3574_v28  ;;  %v1363_v24 = vpop.f32.mrb[39].mxu1  ;;  %1711 = vmatmul.mubr.bf16.vlgmr.msra.gmra.mrb[64].mxu0 %v1458_v10  ;;  %v1430_v59 = vmax.f32 %v1358_v51, 0.0 }
 0x3cd   :  { %v1364_v1 = vadd.f32 %v1363_v24, %v3577_v17  ;;  %2376 = vmatpush3.bf16.msra.mxu0 %v2662_v33  ;;  %v1431_v4 = vmax.f32 %v1360_v11, 0.0 }
 0x3ce   :  { %v1432_v49 = vmax.f32 %v1362_v14, 0.0  ;;  %2377 = vmatprep.subr.bf16.mxu0 %v2663_v48 }
 0x3cf   :  { %v1433_v2 = vmax.f32 %v1364_v1, 0.0 }
 0x3d0   :  { %v1460_v43 = vpack.c.bf16 %v1432_v49, %v1430_v59 }
 0x3d1   :  { %v1461_v3 = vpack.c.bf16 %v1433_v2, %v1431_v4  ;;  %v1367_v23 = vpop.f32.mrb[40].mxu1  ;;  %2378 = vmatpush3.bf16.msra.mxu0 %v2664_v20 }
 0x3d2   :  { %v1368_v31 = vadd.f32 %v1367_v23, %v3574_v28  ;;  %v1369_v63 = vpop.f32.mrb[41].mxu1  ;;  %2379 = vmatprep.subr.bf16.mxu0 %v2665_v38 }
 0x3d3   :  { %v1370_v35 = vadd.f32 %v1369_v63, %v3577_v17  ;;  %v1371_v58 = vpop.f32.mrb[42].mxu1  ;;  %1720 = vmatprep.mubr.bf16.mxu0 %v1461_v3 }
 0x3d4   :  { %v1372_v10 = vadd.f32 %v1371_v58, %v3574_v28  ;;  %v1373_v33 = vpop.f32.mrb[43].mxu1  ;;  %1721 = vmatmul.mubr.bf16.gmra.mrb[68].mxu0 %v1460_v43  ;;  %v1434_v51 = vmax.f32 %v1368_v31, 0.0 }
 0x3d5   :  { %v1374_v48 = vadd.f32 %v1373_v33, %v3577_v17  ;;  %2380 = vmatpush3.bf16.msra.mxu0 %v2666_v32  ;;  %v1435_v11 = vmax.f32 %v1370_v35, 0.0 }
 0x3d6   :  { %v1436_v25 = vmax.f32 %v1372_v10, 0.0  ;;  %2381 = vmatprep.subr.bf16.mxu0 %v2667_v16 }
 0x3d7   :  { %v1437_v20 = vmax.f32 %v1374_v48, 0.0 }
 0x3d8   :  { %v1462_v40 = vpack.c.bf16 %v1436_v25, %v1434_v51 }
 0x3d9   :  { %v1463_v14 = vpack.c.bf16 %v1437_v20, %v1435_v11  ;;  %v1377_v24 = vpop.f32.mrb[44].mxu1  ;;  %2382 = vmatpush3.bf16.msra.mxu0 %v2668_v15 }
 0x3da   :  { %v1378_v38 = vadd.f32 %v1377_v24, %v3574_v28  ;;  %v1379_v1 = vpop.f32.mrb[45].mxu1  ;;  %2383 = vmatprep.subr.bf16.mxu0 %v3561_v19 }
 0x3db   :  { %v1380_v59 = vadd.f32 %v1379_v1, %v3577_v17  ;;  %v1381_v49 = vpop.f32.mrb[46].mxu1  ;;  %1730 = vmatprep.mubr.bf16.mxu0 %v1463_v14 }
 0x3dc   :  { %v1382_v32 = vadd.f32 %v1381_v49, %v3574_v28  ;;  %v1383_v4 = vpop.f32.mrb[47].mxu1  ;;  %1731 = vmatmul.mubr.bf16.gmra.mrb[72].mxu0 %v1462_v40  ;;  %v1438_v2 = vmax.f32 %v1378_v38, 0.0 }
 0x3dd   :  { %v1384_v16 = vadd.f32 %v1383_v4, %v3577_v17  ;;  %2384 = vmatpush3.bf16.msra.mxu0 %v3567_v52  ;;  %v1439_v15 = vmax.f32 %v1380_v59, 0.0 }
 0x3de   :  { %v1440_v43 = vmax.f32 %v1382_v32, 0.0 }
 0x3df   :  { %v1441_v3 = vmax.f32 %v1384_v16, 0.0 }
 0x3e0   :  { %v1464_v23 = vpack.c.bf16 %v1440_v43, %v1438_v2 }
 0x3e1   :  { %v1465_v31 = vpack.c.bf16 %v1441_v3, %v1439_v15  ;;  %v1387_v63 = vpop.f32.mrb[48].mxu1 }
 0x3e2   :  { %v1388_v19 = vadd.f32 %v1387_v63, %v3574_v28  ;;  %v1389_v35 = vpop.f32.mrb[49].mxu1 }
 0x3e3   :  { %v1390_v58 = vadd.f32 %v1389_v35, %v3577_v17  ;;  %v1391_v10 = vpop.f32.mrb[50].mxu1  ;;  %1740 = vmatprep.mubr.bf16.mxu0 %v1465_v31 }
 0x3e4   :  { %v1392_v33 = vadd.f32 %v1391_v10, %v3574_v28  ;;  %v1393_v48 = vpop.f32.mrb[51].mxu1  ;;  %1741 = vmatmul.mubr.bf16.gmra.mrb[76].mxu0 %v1464_v23  ;;  %v1442_v51 = vmax.f32 %v1388_v19, 0.0 }
 0x3e5   :  { %v1394_v52 = vadd.f32 %v1393_v48, %v3577_v17  ;;  %v1443_v11 = vmax.f32 %v1390_v58, 0.0 }
 0x3e6   :  { %v1444_v25 = vmax.f32 %v1392_v33, 0.0 }
 0x3e7   :  { %v1445_v20 = vmax.f32 %v1394_v52, 0.0 }
 0x3e8   :  { %v1466_v40 = vpack.c.bf16 %v1444_v25, %v1442_v51 }
 0x3e9   :  { %v1467_v14 = vpack.c.bf16 %v1445_v20, %v1443_v11  ;;  %v1397_v24 = vpop.f32.mrb[52].mxu1 }
 0x3ea   :  { %v1398_v38 = vadd.f32 %v1397_v24, %v3574_v28  ;;  %v1399_v1 = vpop.f32.mrb[53].mxu1 }
 0x3eb   :  { %v1400_v59 = vadd.f32 %v1399_v1, %v3577_v17  ;;  %v1401_v49 = vpop.f32.mrb[54].mxu1  ;;  %1750 = vmatprep.mubr.bf16.mxu0 %v1467_v14 }
 0x3ec   :  { %v1402_v32 = vadd.f32 %v1401_v49, %v3574_v28  ;;  %v1403_v4 = vpop.f32.mrb[55].mxu1  ;;  %1751 = vmatmul.mubr.bf16.gmra.mrb[80].mxu0 %v1466_v40  ;;  %v1446_v2 = vmax.f32 %v1398_v38, 0.0 }
 0x3ed   :  { %v1404_v16 = vadd.f32 %v1403_v4, %v3577_v17  ;;  %v1447_v15 = vmax.f32 %v1400_v59, 0.0 }
 0x3ee   :  { %v1448_v43 = vmax.f32 %v1402_v32, 0.0 }
 0x3ef   :  { %v1449_v3 = vmax.f32 %v1404_v16, 0.0 }
 0x3f0   :  { %v1468_v23 = vpack.c.bf16 %v1448_v43, %v1446_v2 }
 0x3f1   :  { %v1469_v31 = vpack.c.bf16 %v1449_v3, %v1447_v15  ;;  %v1407_v63 = vpop.f32.mrb[56].mxu1 }
 0x3f2   :  { %v1408_v19 = vadd.f32 %v1407_v63, %v3574_v28  ;;  %v1409_v35 = vpop.f32.mrb[57].mxu1  ;;  %v2671_v63 = vld [vmem:[%s3751_s11 + $0x68] sm:$0xff]  }
 0x3f3   :  { %v1410_v58 = vadd.f32 %v1409_v35, %v3577_v17  ;;  %v1411_v10 = vpop.f32.mrb[58].mxu1  ;;  %1760 = vmatprep.mubr.bf16.mxu0 %v1469_v31  ;;  %2385 = vmatprep.subr.bf16.mxu0 %v2671_v63  ;;  %v2675_v35 = vld [vmem:[%s3751_s11 + $0x78] sm:$0xff]  }
 0x3f4   :  { %v1412_v33 = vadd.f32 %v1411_v10, %v3574_v28  ;;  %v1413_v48 = vpop.f32.mrb[59].mxu1  ;;  %1761 = vmatmul.mubr.bf16.gmra.mrb[84].mxu0 %v1468_v23  ;;  %v1450_v51 = vmax.f32 %v1408_v19, 0.0  ;;  %2444 = vmatprep.subr.bf16.mxu1 %v2671_v63  ;;  %v2674_v19 = vld [vmem:[%s3751_s11 + $0x30] sm:$0xff]   ;;  %v1506_v10 = vld [vmem:[%s3750_s10] sm:$0x3] }
 0x3f5   :  { %v1414_v52 = vadd.f32 %v1413_v48, %v3577_v17  ;;  %v1451_v11 = vmax.f32 %v1410_v58, 0.0  ;;  %v2676_v58 = vld [vmem:[%s3751_s11 + $0x38] sm:$0xff]   ;;  %v3638_v48 = vrot.slane %v1506_v10, %v3087_v27 }
 0x3f6   :  { %v1452_v25 = vmax.f32 %v1412_v33, 0.0  ;;  %v3635_v33 = vrot.slane %v1506_v10, %v3092_v29 }
 0x3f7   :  { %v1453_v20 = vmax.f32 %v1414_v52, 0.0 }
 0x3f8   :  { %v1470_v40 = vpack.c.bf16 %v1452_v25, %v1450_v51 }
 0x3f9   :  { %v1471_v14 = vpack.c.bf16 %v1453_v20, %v1451_v11  ;;  %v1417_v24 = vpop.f32.mrb[60].mxu1 }
 0x3fa   :  { %v1418_v38 = vadd.f32 %v1417_v24, %v3574_v28  ;;  %v1419_v1 = vpop.f32.mrb[61].mxu1 }
 0x3fb   :  { %v1420_v59 = vadd.f32 %v1419_v1, %v3577_v17  ;;  %v1421_v49 = vpop.f32.mrb[62].mxu1  ;;  %1770 = vmatprep.mubr.bf16.mxu0 %v1471_v14 }
 0x3fc   :  { %v1422_v32 = vadd.f32 %v1421_v49, %v3574_v28  ;;  %v1423_v4 = vpop.f32.mrb[63].mxu1  ;;  %1771 = vmatmul.mubr.bf16.gmra.mrb[88].mxu0 %v1470_v40  ;;  %v1454_v2 = vmax.f32 %v1418_v38, 0.0  ;;  %v2672_v28 = vld [vmem:[%s3751_s11 + $0x28] sm:$0xff]  }
 0x3fd   :  { %v1424_v16 = vadd.f32 %v1423_v4, %v3577_v17  ;;  %v1455_v15 = vmax.f32 %v1420_v59, 0.0  ;;  %2386 = vmatpush3.bf16.msra.mxu0 %v2672_v28  ;;  %2452 = vmatpush3.bf16.msra.mxu1 %v2672_v28  ;;  %v2673_v17 = vld [vmem:[%s3751_s11 + $0x70] sm:$0xff]  }
 0x3fe   :  { %v1456_v43 = vmax.f32 %v1422_v32, 0.0  ;;  %2387 = vmatprep.subr.bf16.mxu0 %v2673_v17  ;;  %2445 = vmatprep.subr.bf16.mxu1 %v2673_v17 }
 0x3ff   :  { %v1457_v3 = vmax.f32 %v1424_v16, 0.0 }
 0x400   :  { %v1472_v23 = vpack.c.bf16 %v1456_v43, %v1454_v2 }
 0x401   :  { %v1473_v31 = vpack.c.bf16 %v1457_v3, %v1455_v15  ;;  %2388 = vmatpush3.bf16.msra.mxu0 %v2674_v19  ;;  %2453 = vmatpush3.bf16.msra.mxu1 %v2674_v19 }
 0x402   :  { %2389 = vmatprep.subr.bf16.mxu0 %v2675_v35  ;;  %2446 = vmatprep.subr.bf16.mxu1 %v2675_v35 }
 0x403   :  { %1780 = vmatprep.mubr.bf16.mxu0 %v1473_v31 }
 0x404   :  { %1781 = vmatmul.mubr.bf16.gmra.mrb[92].mxu0 %v1472_v23 }
 0x405   :  { %2390 = vmatpush3.bf16.msra.mxu0 %v2676_v58  ;;  %2454 = vmatpush3.bf16.msra.mxu1 %v2676_v58 }
 0x49f   :  { %v1712_v52 = vpop.f32.mrb[64].mxu0 }
 0x4a0   :  { %v1713_v51 = vadd.f32 %v1712_v52, %v3635_v33  ;;  %v1714_v25 = vpop.f32.mrb[65].mxu0 }
 0x4a1   :  { %v1715_v11 = vadd.f32 %v1714_v25, %v3638_v48  ;;  %v1716_v20 = vpop.f32.mrb[66].mxu0 }
 0x4a2   :  { %v1791_v40 = vmax.f32 %v1713_v51, 0.0  ;;  %v1717_v14 = vadd.f32 %v1716_v20, %v3635_v33  ;;  %v1718_v24 = vpop.f32.mrb[67].mxu0 }
 0x4a3   :  { %v1792_v38 = vmax.f32 %v1715_v11, 0.0  ;;  %v1719_v1 = vadd.f32 %v1718_v24, %v3638_v48 }
 0x4a4   :  { %v1793_v59 = vmax.f32 %v1717_v14, 0.0  ;;  %v1823_v49 = vadd.f32 %v1791_v40, %v3360_v21 }
 0x4a5   :  { %v1794_v29 = vmax.f32 %v1719_v1, 0.0  ;;  %v1824_v32 = vadd.f32 %v1792_v38, %v3352_v13 }
 0x4a6   :  { %v1825_v27 = vadd.f32 %v1793_v59, %v3348_v22 }
 0x4a7   :  { %v1826_v4 = vadd.f32 %v1794_v29, %v3356_v45  ;;  %v1722_v16 = vpop.f32.mrb[68].mxu0 }
 0x4a8   :  { %v1855_v2 = vpack.c.bf16 %v1825_v27, %v1823_v49  ;;  %v1723_v43 = vadd.f32 %v1722_v16, %v3635_v33  ;;  %v1724_v15 = vpop.f32.mrb[69].mxu0 }
 0x4a9   :  { %v1725_v3 = vadd.f32 %v1724_v15, %v3638_v48  ;;  %v1726_v23 = vpop.f32.mrb[70].mxu0  ;;  %v1856_v31 = vpack.c.bf16 %v1826_v4, %v1824_v32 }
 0x4aa   :  { %v1795_v63 = vmax.f32 %v1723_v43, 0.0  ;;  %v1727_v28 = vadd.f32 %v1726_v23, %v3635_v33  ;;  %v1728_v17 = vpop.f32.mrb[71].mxu0 }
 0x4ab   :  { %v1796_v21 = vmax.f32 %v1725_v3, 0.0  ;;  %v1729_v22 = vadd.f32 %v1728_v17, %v3638_v48  ;;  %2038 = vmatprep.mubr.bf16.mxu0 %v1856_v31 }
 0x4ac   :  { %v1797_v13 = vmax.f32 %v1727_v28, 0.0  ;;  %2039 = vmatmul.mubr.bf16.vlgmr.msra.gmra.mrb[96].mxu0 %v1855_v2  ;;  %v1827_v19 = vadd.f32 %v1795_v63, %v3384_v46 }
 0x4ad   :  { %v1798_v45 = vmax.f32 %v1729_v22, 0.0  ;;  %v1828_v58 = vadd.f32 %v1796_v21, %v3376_v7 }
 0x4ae   :  { %v1829_v35 = vadd.f32 %v1797_v13, %v3372_v8 }
 0x4af   :  { %v1830_v10 = vadd.f32 %v1798_v45, %v3380_v18  ;;  %v1732_v52 = vpop.f32.mrb[72].mxu0 }
 0x4b0   :  { %v1733_v51 = vadd.f32 %v1732_v52, %v3635_v33  ;;  %v1734_v25 = vpop.f32.mrb[73].mxu0  ;;  %v1857_v11 = vpack.c.bf16 %v1829_v35, %v1827_v19 }
 0x4b1   :  { %v1735_v20 = vadd.f32 %v1734_v25, %v3638_v48  ;;  %v1736_v40 = vpop.f32.mrb[74].mxu0  ;;  %v1858_v14 = vpack.c.bf16 %v1830_v10, %v1828_v58 }
 0x4b2   :  { %v1799_v24 = vmax.f32 %v1733_v51, 0.0  ;;  %v1737_v38 = vadd.f32 %v1736_v40, %v3635_v33  ;;  %v1738_v1 = vpop.f32.mrb[75].mxu0 }
 0x4b3   :  { %v1800_v46 = vmax.f32 %v1735_v20, 0.0  ;;  %v1739_v8 = vadd.f32 %v1738_v1, %v3638_v48  ;;  %2046 = vmatprep.mubr.bf16.mxu0 %v1858_v14 }
 0x4b4   :  { %v1801_v7 = vmax.f32 %v1737_v38, 0.0  ;;  %2047 = vmatmul.mubr.bf16.gmra.mrb[100].mxu0 %v1857_v11  ;;  %v1831_v59 = vadd.f32 %v1799_v24, %v3408_v42 }
 0x4b5   :  { %v1802_v18 = vmax.f32 %v1739_v8, 0.0  ;;  %v1832_v49 = vadd.f32 %v1800_v46, %v3400_v37 }
 0x4b6   :  { %v1833_v29 = vadd.f32 %v1801_v7, %v3396_v30 }
 0x4b7   :  { %v1834_v27 = vadd.f32 %v1802_v18, %v3404_v34  ;;  %v1742_v32 = vpop.f32.mrb[76].mxu0 }
 0x4b8   :  { %v1743_v4 = vadd.f32 %v1742_v32, %v3635_v33  ;;  %v1744_v16 = vpop.f32.mrb[77].mxu0  ;;  %v1859_v2 = vpack.c.bf16 %v1833_v29, %v1831_v59 }
 0x4b9   :  { %v1745_v43 = vadd.f32 %v1744_v16, %v3638_v48  ;;  %v1746_v15 = vpop.f32.mrb[78].mxu0  ;;  %v1860_v3 = vpack.c.bf16 %v1834_v27, %v1832_v49 }
 0x4ba   :  { %v1803_v23 = vmax.f32 %v1743_v4, 0.0  ;;  %v1747_v31 = vadd.f32 %v1746_v15, %v3635_v33  ;;  %v1748_v63 = vpop.f32.mrb[79].mxu0 }
 0x4bb   :  { %v1804_v42 = vmax.f32 %v1745_v43, 0.0  ;;  %v1749_v30 = vadd.f32 %v1748_v63, %v3638_v48  ;;  %2054 = vmatprep.mubr.bf16.mxu0 %v1860_v3 }
 0x4bc   :  { %v1805_v37 = vmax.f32 %v1747_v31, 0.0  ;;  %2055 = vmatmul.mubr.bf16.gmra.mrb[104].mxu0 %v1859_v2  ;;  %v1835_v28 = vadd.f32 %v1803_v23, %v3432_v57 }
 0x4bd   :  { %v1806_v34 = vmax.f32 %v1749_v30, 0.0  ;;  %v1836_v21 = vadd.f32 %v1804_v42, %v3424_v55 }
 0x4be   :  { %v1837_v17 = vadd.f32 %v1805_v37, %v3420_v54 }
 0x4bf   :  { %v1838_v22 = vadd.f32 %v1806_v34, %v3428_v53  ;;  %v1752_v13 = vpop.f32.mrb[80].mxu0 }
 0x4c0   :  { %v1861_v45 = vpack.c.bf16 %v1837_v17, %v1835_v28  ;;  %v1753_v19 = vadd.f32 %v1752_v13, %v3635_v33  ;;  %v1754_v35 = vpop.f32.mrb[81].mxu0 }
 0x4c1   :  { %v1755_v58 = vadd.f32 %v1754_v35, %v3638_v48  ;;  %v1756_v10 = vpop.f32.mrb[82].mxu0  ;;  %v1862_v52 = vpack.c.bf16 %v1838_v22, %v1836_v21 }
 0x4c2   :  { %v1807_v51 = vmax.f32 %v1753_v19, 0.0  ;;  %v1757_v25 = vadd.f32 %v1756_v10, %v3635_v33  ;;  %v1758_v11 = vpop.f32.mrb[83].mxu0 }
 0x4c3   :  { %v1808_v57 = vmax.f32 %v1755_v58, 0.0  ;;  %v1759_v54 = vadd.f32 %v1758_v11, %v3638_v48  ;;  %2062 = vmatprep.mubr.bf16.mxu1 %v1862_v52 }
 0x4c4   :  { %v1809_v55 = vmax.f32 %v1757_v25, 0.0  ;;  %2063 = vmatmul.mubr.bf16.vlgmr.msra.gmra.mrb[64].mxu1 %v1861_v45  ;;  %v1839_v20 = vadd.f32 %v1807_v51, %v3456_v61 }
 0x4c5   :  { %v1810_v53 = vmax.f32 %v1759_v54, 0.0  ;;  %v1840_v14 = vadd.f32 %v1808_v57, %v3448_v6 }
 0x4c6   :  { %v1841_v40 = vadd.f32 %v1809_v55, %v3444_v62 }
 0x4c7   :  { %v1842_v24 = vadd.f32 %v1810_v53, %v3452_v47  ;;  %v1762_v38 = vpop.f32.mrb[84].mxu0 }
 0x4c8   :  { %v1763_v1 = vadd.f32 %v1762_v38, %v3635_v33  ;;  %v1764_v46 = vpop.f32.mrb[85].mxu0  ;;  %v1863_v8 = vpack.c.bf16 %v1841_v40, %v1839_v20 }
 0x4c9   :  { %v1765_v7 = vadd.f32 %v1764_v46, %v3638_v48  ;;  %v1766_v18 = vpop.f32.mrb[86].mxu0  ;;  %v1864_v59 = vpack.c.bf16 %v1842_v24, %v1840_v14 }
 0x4ca   :  { %v1811_v29 = vmax.f32 %v1763_v1, 0.0  ;;  %v1767_v49 = vadd.f32 %v1766_v18, %v3635_v33  ;;  %v1768_v27 = vpop.f32.mrb[87].mxu0 }
 0x4cb   :  { %v1812_v61 = vmax.f32 %v1765_v7, 0.0  ;;  %v1769_v62 = vadd.f32 %v1768_v27, %v3638_v48  ;;  %2070 = vmatprep.mubr.bf16.mxu1 %v1864_v59 }
 0x4cc   :  { %v1813_v6 = vmax.f32 %v1767_v49, 0.0  ;;  %2071 = vmatmul.mubr.bf16.gmra.mrb[68].mxu1 %v1863_v8  ;;  %v1843_v32 = vadd.f32 %v1811_v29, %v3480_v36 }
 0x4cd   :  { %v1814_v47 = vmax.f32 %v1769_v62, 0.0  ;;  %v1844_v16 = vadd.f32 %v1812_v61, %v3472_v41 }
 0x4ce   :  { %v1845_v4 = vadd.f32 %v1813_v6, %v3468_v12 }
 0x4cf   :  { %v1846_v2 = vadd.f32 %v1814_v47, %v3476_v39  ;;  %v1772_v43 = vpop.f32.mrb[88].mxu0 }
 0x4d0   :  { %v1773_v15 = vadd.f32 %v1772_v43, %v3635_v33  ;;  %v1774_v3 = vpop.f32.mrb[89].mxu0  ;;  %v1865_v23 = vpack.c.bf16 %v1845_v4, %v1843_v32 }
 0x4d1   :  { %v1775_v31 = vadd.f32 %v1774_v3, %v3638_v48  ;;  %v1776_v63 = vpop.f32.mrb[90].mxu0  ;;  %v1866_v42 = vpack.c.bf16 %v1846_v2, %v1844_v16 }
 0x4d2   :  { %v1815_v30 = vmax.f32 %v1773_v15, 0.0  ;;  %v1777_v37 = vadd.f32 %v1776_v63, %v3635_v33  ;;  %v1778_v34 = vpop.f32.mrb[91].mxu0 }
 0x4d3   :  { %v1816_v36 = vmax.f32 %v1775_v31, 0.0  ;;  %v1779_v12 = vadd.f32 %v1778_v34, %v3638_v48  ;;  %2078 = vmatprep.mubr.bf16.mxu1 %v1866_v42 }
 0x4d4   :  { %v1817_v41 = vmax.f32 %v1777_v37, 0.0  ;;  %2079 = vmatmul.mubr.bf16.gmra.mrb[72].mxu1 %v1865_v23  ;;  %v1847_v28 = vadd.f32 %v1815_v30, %v3504_v5 }
 0x4d5   :  { %v1818_v39 = vmax.f32 %v1779_v12, 0.0  ;;  %v1848_v21 = vadd.f32 %v1816_v36, %v3496_v56 }
 0x4d6   :  { %v1849_v17 = vadd.f32 %v1817_v41, %v3492_v26 }
 0x4d7   :  { %v1850_v22 = vadd.f32 %v1818_v39, %v3500_v50  ;;  %v1782_v13 = vpop.f32.mrb[92].mxu0 }
 0x4d8   :  { %v1783_v45 = vadd.f32 %v1782_v13, %v3635_v33  ;;  %v1784_v19 = vpop.f32.mrb[93].mxu0  ;;  %v1867_v35 = vpack.c.bf16 %v1849_v17, %v1847_v28 }
 0x4d9   :  { %v1785_v58 = vadd.f32 %v1784_v19, %v3638_v48  ;;  %v1786_v10 = vpop.f32.mrb[94].mxu0  ;;  %v1868_v52 = vpack.c.bf16 %v1850_v22, %v1848_v21 }
 0x4da   :  { %v1819_v51 = vmax.f32 %v1783_v45, 0.0  ;;  %v1787_v25 = vadd.f32 %v1786_v10, %v3635_v33  ;;  %v1788_v11 = vpop.f32.mrb[95].mxu0 }
 0x4db   :  { %v1820_v5 = vmax.f32 %v1785_v58, 0.0  ;;  %v1789_v26 = vadd.f32 %v1788_v11, %v3638_v48  ;;  %2086 = vmatprep.mubr.bf16.mxu1 %v1868_v52  ;;  %v3707_v48 = vld [vmem:[%s3752_s12] ss:$0 sm:$0xff]  ;;  %s2866_s12 = smov [#allocation10]  }
 0x4dc   :  { %v1821_v56 = vmax.f32 %v1787_v25, 0.0  ;;  %2087 = vmatmul.mubr.bf16.gmra.mrb[76].mxu1 %v1867_v35  ;;  %v1851_v57 = vadd.f32 %v1819_v51, %v3528_v44  ;;  %s2204_s19 = sshll.u32 %s2866_s12, 4  ;;  %s2205_s19 = int_to_ptr.vmem [resolvable:$true] %s2204_s19 }
 0x4dd   :  { %v1822_v50 = vmax.f32 %v1789_v26, 0.0  ;;  %v1852_v55 = vadd.f32 %v1820_v5, %v3520_v0  ;;  %s2829_s1 = scalar_lea.vmem %s2205_s19, 2048  ;;  %p2834_p5 = scmp.lt.s32.totalorder %s2205_s19, %s2205_s19 }
 0x4de   :  { %v1853_v54 = vadd.f32 %v1821_v56, %v3516_v60  ;;  %p2830_p4 = scmp.ne.s32.totalorder %s2205_s19, %s2829_s1  ;;  %p2835_p6 = scmp.lt.s32.totalorder %s2829_s1, %s2829_s1 }
 0x4df   :  { %v1854_v53 = vadd.f32 %v1822_v50, %v3524_v9 }
 0x4e0   :  { %v1869_v20 = vpack.c.bf16 %v1853_v54, %v1851_v57  ;;  %p2836_p7 = por %p2835_p6, %p2834_p5 }
 0x4e1   :  { %v1870_v40 = vpack.c.bf16 %v1854_v53, %v1852_v55 }
 0x4e2   :  { %p2837_p8 = pnand %p2836_p7, %p2830_p4 }
 0x4e3   :  { %2094 = vmatprep.mubr.bf16.mxu1 %v1870_v40 }
 0x4e4   :  { %2095 = vmatmul.mubr.bf16.gmra.mrb[80].mxu1 %v1869_v20 }
 0x57f   :  { %v2391_v33 = vpop.f32.mrb[96].mxu0 }
 0x580   :  { %v2392_v14 = vpop.f32.mrb[97].mxu0 }
 0x581   :  { %v2393_v24 = vadd.f32 %v2392_v14, %v2391_v33  ;;  %v2394_v38 = vpop.f32.mrb[98].mxu0 }
 0x582   :  { %v2395_v44 = vpop.f32.mrb[99].mxu0 }
 0x583   :  { %v2041_v60 = vadd.f32 %v2393_v24, %v3707_v48  ;;  %v2396_v1 = vadd.f32 %v2395_v44, %v2394_v38 }
 0x585   :  { %v2103_v0 = vsub.f32 0.0, %v2041_v60  ;;  %v2044_v9 = vadd.f32 %v2396_v1, %v3707_v48 }
 0x587   :  { %v2119_v46 = vmul.f32 1.442695, %v2103_v0  ;;  %v2104_v8 = vsub.f32 0.0, %v2044_v9  ;;  %v2397_v7 = vpop.f32.mrb[100].mxu0 }
 0x588   :  { %v2398_v18 = vpop.f32.mrb[101].mxu0 }
 0x589   :  { %2677 = vpow2.f32 %v2119_v46  ;;  %v2121_v59 = vmul.f32 1.442695, %v2104_v8  ;;  %v2399_v29 = vadd.f32 %v2398_v18, %v2397_v7  ;;  %v2400_v49 = vpop.f32.mrb[102].mxu0 }
 0x58a   :  { %v2401_v27 = vpop.f32.mrb[103].mxu0 }
 0x58b   :  { %2679 = vpow2.f32 %v2121_v59  ;;  %v2049_v61 = vadd.f32 %v2399_v29, %v3707_v48  ;;  %v2402_v62 = vadd.f32 %v2401_v27, %v2400_v49 }
 0x58d   :  { %v2105_v6 = vsub.f32 0.0, %v2049_v61  ;;  %v2052_v47 = vadd.f32 %v2402_v62, %v3707_v48 }
 0x58f   :  { %v2123_v32 = vmul.f32 1.442695, %v2105_v6  ;;  %v2106_v4 = vsub.f32 0.0, %v2052_v47  ;;  %v2403_v16 = vpop.f32.mrb[104].mxu0 }
 0x590   :  { %v2404_v2 = vpop.f32.mrb[105].mxu0 }
 0x591   :  { %2681 = vpow2.f32 %v2123_v32  ;;  %v2125_v43 = vmul.f32 1.442695, %v2106_v4  ;;  %v2405_v15 = vadd.f32 %v2404_v2, %v2403_v16  ;;  %v2406_v3 = vpop.f32.mrb[106].mxu0 }
 0x592   :  { %v2407_v23 = vpop.f32.mrb[107].mxu0 }
 0x593   :  { %v2678_v31 = vpop.eup %2677  ;;  %2683 = vpow2.f32 %v2125_v43  ;;  %v2057_v63 = vadd.f32 %v2405_v15, %v3707_v48  ;;  %v2408_v42 = vadd.f32 %v2407_v23, %v2406_v3 }
 0x594   :  { %v2151_v30 = vadd.f32 1.0, %v2678_v31 }
 0x595   :  { %v2680_v37 = vpop.eup %2679  ;;  %v2107_v34 = vsub.f32 0.0, %v2057_v63  ;;  %v2060_v36 = vadd.f32 %v2408_v42, %v3707_v48 }
 0x596   :  { %2685 = vrcp.f32 %v2151_v30  ;;  %v2152_v12 = vadd.f32 1.0, %v2680_v37 }
 0x597   :  { %v2127_v41 = vmul.f32 1.442695, %v2107_v34  ;;  %v2108_v39 = vsub.f32 0.0, %v2060_v36  ;;  %v2409_v28 = vpop.f32.mrb[64].mxu1 }
 0x598   :  { %2687 = vrcp.f32 %v2152_v12  ;;  %v2410_v17 = vpop.f32.mrb[65].mxu1 }
 0x599   :  { %2689 = vpow2.f32 %v2127_v41  ;;  %v2129_v21 = vmul.f32 1.442695, %v2108_v39  ;;  %v2411_v22 = vadd.f32 %v2410_v17, %v2409_v28  ;;  %v2412_v13 = vpop.f32.mrb[66].mxu1 }
 0x59a   :  { %v2413_v45 = vpop.f32.mrb[67].mxu1 }
 0x59b   :  { %v2682_v19 = vpop.eup %2681  ;;  %2691 = vpow2.f32 %v2129_v21  ;;  %v2065_v35 = vadd.f32 %v2411_v22, %v3707_v48  ;;  %v2414_v58 = vadd.f32 %v2413_v45, %v2412_v13 }
 0x59c   :  { %v2153_v10 = vadd.f32 1.0, %v2682_v19 }
 0x59d   :  { %v2684_v52 = vpop.eup %2683  ;;  %v2109_v51 = vsub.f32 0.0, %v2065_v35  ;;  %v2068_v25 = vadd.f32 %v2414_v58, %v3707_v48 }
 0x59e   :  { %2693 = vrcp.f32 %v2153_v10  ;;  %v2154_v11 = vadd.f32 1.0, %v2684_v52 }
 0x59f   :  { %v2131_v5 = vmul.f32 1.442695, %v2109_v51  ;;  %v2110_v26 = vsub.f32 0.0, %v2068_v25  ;;  %v2415_v56 = vpop.f32.mrb[68].mxu1 }
 0x5a0   :  { %v2686_v50 = vpop.eup %2685  ;;  %2695 = vrcp.f32 %v2154_v11  ;;  %v2416_v57 = vpop.f32.mrb[69].mxu1 }
 0x5a1   :  { %2183 = vst [vmem:[#allocation10] sm:$0xff] %v2686_v50  ;;  %2697 = vpow2.f32 %v2131_v5  ;;  %v2133_v54 = vmul.f32 1.442695, %v2110_v26  ;;  %v2417_v55 = vadd.f32 %v2416_v57, %v2415_v56  ;;  %v2418_v53 = vpop.f32.mrb[70].mxu1 }
 0x5a2   :  { %v2688_v20 = vpop.eup %2687  ;;  %v2419_v40 = vpop.f32.mrb[71].mxu1 }
 0x5a3   :  { %v2690_v33 = vpop.eup %2689  ;;  %2184 = vst [vmem:[#allocation10 + $0x8] sm:$0xff] %v2688_v20  ;;  %2699 = vpow2.f32 %v2133_v54  ;;  %v2073_v14 = vadd.f32 %v2417_v55, %v3707_v48  ;;  %v2420_v24 = vadd.f32 %v2419_v40, %v2418_v53 }
 0x5a4   :  { %v2155_v38 = vadd.f32 1.0, %v2690_v33 }
 0x5a5   :  { %v2692_v44 = vpop.eup %2691  ;;  %v2111_v60 = vsub.f32 0.0, %v2073_v14  ;;  %v2076_v1 = vadd.f32 %v2420_v24, %v3707_v48 }
 0x5a6   :  { %2701 = vrcp.f32 %v2155_v38  ;;  %v2156_v0 = vadd.f32 1.0, %v2692_v44 }
 0x5a7   :  { %v2135_v9 = vmul.f32 1.442695, %v2111_v60  ;;  %v2112_v46 = vsub.f32 0.0, %v2076_v1  ;;  %v2421_v8 = vpop.f32.mrb[72].mxu1 }
 0x5a8   :  { %v2694_v7 = vpop.eup %2693  ;;  %2703 = vrcp.f32 %v2156_v0  ;;  %v2422_v18 = vpop.f32.mrb[73].mxu1 }
 0x5a9   :  { %2185 = vst [vmem:[#allocation10 + $0x10] sm:$0xff] %v2694_v7  ;;  %2705 = vpow2.f32 %v2135_v9  ;;  %v2137_v59 = vmul.f32 1.442695, %v2112_v46  ;;  %v2423_v29 = vadd.f32 %v2422_v18, %v2421_v8  ;;  %v2424_v49 = vpop.f32.mrb[74].mxu1 }
 0x5aa   :  { %v2696_v27 = vpop.eup %2695  ;;  %v2425_v61 = vpop.f32.mrb[75].mxu1 }
 0x5ab   :  { %v2698_v62 = vpop.eup %2697  ;;  %2186 = vst [vmem:[#allocation10 + $0x18] sm:$0xff] %v2696_v27  ;;  %2707 = vpow2.f32 %v2137_v59  ;;  %v2081_v6 = vadd.f32 %v2423_v29, %v3707_v48  ;;  %v2426_v47 = vadd.f32 %v2425_v61, %v2424_v49 }
 0x5ac   :  { %v2157_v32 = vadd.f32 1.0, %v2698_v62 }
 0x5ad   :  { %v2700_v4 = vpop.eup %2699  ;;  %v2113_v16 = vsub.f32 0.0, %v2081_v6  ;;  %v2084_v2 = vadd.f32 %v2426_v47, %v3707_v48 }
 0x5ae   :  { %2709 = vrcp.f32 %v2157_v32  ;;  %v2158_v43 = vadd.f32 1.0, %v2700_v4 }
 0x5af   :  { %v2139_v15 = vmul.f32 1.442695, %v2113_v16  ;;  %v2114_v3 = vsub.f32 0.0, %v2084_v2  ;;  %v2427_v23 = vpop.f32.mrb[76].mxu1 }
 0x5b0   :  { %v2702_v31 = vpop.eup %2701  ;;  %2711 = vrcp.f32 %v2158_v43  ;;  %v2428_v63 = vpop.f32.mrb[77].mxu1 }
 0x5b1   :  { %2187 = vst [vmem:[#allocation10 + $0x20] sm:$0xff] %v2702_v31  ;;  %2713 = vpow2.f32 %v2139_v15  ;;  %v2141_v42 = vmul.f32 1.442695, %v2114_v3  ;;  %v2429_v30 = vadd.f32 %v2428_v63, %v2427_v23  ;;  %v2430_v37 = vpop.f32.mrb[78].mxu1 }
 0x5b2   :  { %v2704_v34 = vpop.eup %2703  ;;  %v2431_v36 = vpop.f32.mrb[79].mxu1 }
 0x5b3   :  { %v2706_v12 = vpop.eup %2705  ;;  %2188 = vst [vmem:[#allocation10 + $0x28] sm:$0xff] %v2704_v34  ;;  %2715 = vpow2.f32 %v2141_v42  ;;  %v2089_v41 = vadd.f32 %v2429_v30, %v3707_v48  ;;  %v2432_v39 = vadd.f32 %v2431_v36, %v2430_v37 }
 0x5b4   :  { %v2159_v28 = vadd.f32 1.0, %v2706_v12 }
 0x5b5   :  { %v2708_v17 = vpop.eup %2707  ;;  %v2115_v21 = vsub.f32 0.0, %v2089_v41  ;;  %v2092_v22 = vadd.f32 %v2432_v39, %v3707_v48 }
 0x5b6   :  { %2717 = vrcp.f32 %v2159_v28  ;;  %v2160_v13 = vadd.f32 1.0, %v2708_v17 }
 0x5b7   :  { %v2143_v45 = vmul.f32 1.442695, %v2115_v21  ;;  %v2116_v19 = vsub.f32 0.0, %v2092_v22  ;;  %v2433_v35 = vpop.f32.mrb[80].mxu1 }
 0x5b8   :  { %v2710_v58 = vpop.eup %2709  ;;  %2719 = vrcp.f32 %v2160_v13  ;;  %v2434_v10 = vpop.f32.mrb[81].mxu1 }
 0x5b9   :  { %2189 = vst [vmem:[#allocation10 + $0x30] sm:$0xff] %v2710_v58  ;;  %2721 = vpow2.f32 %v2143_v45  ;;  %v2145_v52 = vmul.f32 1.442695, %v2116_v19  ;;  %v2435_v51 = vadd.f32 %v2434_v10, %v2433_v35  ;;  %v2436_v25 = vpop.f32.mrb[82].mxu1 }
 0x5ba   :  { %v2712_v11 = vpop.eup %2711  ;;  %v2437_v5 = vpop.f32.mrb[83].mxu1 }
 0x5bb   :  { %v2714_v26 = vpop.eup %2713  ;;  %2190 = vst [vmem:[#allocation10 + $0x38] sm:$0xff] %v2712_v11  ;;  %2723 = vpow2.f32 %v2145_v52  ;;  %v2097_v56 = vadd.f32 %v2435_v51, %v3707_v48  ;;  %v2438_v50 = vadd.f32 %v2437_v5, %v2436_v25 }
 0x5bc   :  { %v2161_v57 = vadd.f32 1.0, %v2714_v26 }
 0x5bd   :  { %v2716_v54 = vpop.eup %2715  ;;  %v2117_v55 = vsub.f32 0.0, %v2097_v56  ;;  %v2100_v53 = vadd.f32 %v2438_v50, %v3707_v48 }
 0x5be   :  { %2725 = vrcp.f32 %v2161_v57  ;;  %v2162_v20 = vadd.f32 1.0, %v2716_v54 }
 0x5bf   :  { %v2147_v40 = vmul.f32 1.442695, %v2117_v55  ;;  %v2118_v33 = vsub.f32 0.0, %v2100_v53 }
 0x5c0   :  { %v2718_v14 = vpop.eup %2717  ;;  %2727 = vrcp.f32 %v2162_v20 }
 0x5c1   :  { %2191 = vst [vmem:[#allocation10 + $0x40] sm:$0xff] %v2718_v14  ;;  %2729 = vpow2.f32 %v2147_v40  ;;  %v2149_v24 = vmul.f32 1.442695, %v2118_v33 }
 0x5c2   :  { %v2720_v38 = vpop.eup %2719 }
 0x5c3   :  { %v2722_v44 = vpop.eup %2721  ;;  %2192 = vst [vmem:[#allocation10 + $0x48] sm:$0xff] %v2720_v38  ;;  %2731 = vpow2.f32 %v2149_v24 }
 0x5c4   :  { %v2163_v60 = vadd.f32 1.0, %v2722_v44 }
 0x5c5   :  { %v2724_v1 = vpop.eup %2723 }
 0x5c6   :  { %2733 = vrcp.f32 %v2163_v60  ;;  %v2164_v0 = vadd.f32 1.0, %v2724_v1 }
 0x5c8   :  { %v2726_v9 = vpop.eup %2725  ;;  %2735 = vrcp.f32 %v2164_v0 }
 0x5c9   :  { %2193 = vst [vmem:[#allocation10 + $0x50] sm:$0xff] %v2726_v9 }
 0x5ca   :  { %v2728_v48 = vpop.eup %2727 }
 0x5cb   :  { %v2730_v46 = vpop.eup %2729  ;;  %2194 = vst [vmem:[#allocation10 + $0x58] sm:$0xff] %v2728_v48 }
 0x5cc   :  { %v2165_v8 = vadd.f32 1.0, %v2730_v46 }
 0x5cd   :  { %v2732_v7 = vpop.eup %2731 }
 0x5ce   :  { %2737 = vrcp.f32 %v2165_v8  ;;  %v2166_v18 = vadd.f32 1.0, %v2732_v7 }
 0x5d0   :  { %v2734_v59 = vpop.eup %2733  ;;  %2739 = vrcp.f32 %v2166_v18 }
 0x5d1   :  { %2195 = vst [vmem:[#allocation10 + $0x60] sm:$0xff] %v2734_v59 }
 0x5d2   :  { %v2736_v29 = vpop.eup %2735 }
 0x5d3   :  { %2196 = vst [vmem:[#allocation10 + $0x68] sm:$0xff] %v2736_v29 }
 0x5d8   :  { %v2738_v49 = vpop.eup %2737 }
 0x5d9   :  { %2197 = vst [vmem:[#allocation10 + $0x70] sm:$0xff] %v2738_v49 }
 0x5da   :  { %v2740_v27 = vpop.eup %2739 }
 0x5db   :  { %2198 = vst [vmem:[#allocation10 + $0x78] sm:$0xff] %v2740_v27 }
 0x5dc   :  { %2840 = shalt.err (!%p2837_p8)
}
 0x5dd   :  { %s2841_s25 = scalar_lea.hbm %s3753_s13, 2048 }
 0x5de   :  { %p2842_p9 = scmp.ne.s32.totalorder %s3753_s13, %s2841_s25  ;;  %p2845_p10 = scmp.lt.u32.totalorder %s2841_s25, %s3753_s13 }
 0x5e0   :  { %p2847_p11 = pnand %p2845_p10, %p2842_p9 }
 0x5e2   :  { %2850 = shalt.err (!%p2847_p11)
}
 0x5e3   :  { %2210 = dma.vmem_to_hbm [thread:$0]  %s2205_s19, 2048, %s3753_s13, [#allocation4], %s2861_s20, %s2861_s20, %s2862_s21  }
 0x5e4   :  { %2857 = dma.done.wait [#allocation4], 2048  }
 0x5e5   :  { %2858 = vsyncadd [#allocation4], 4294965248 }
 0x5e6   :  { %2214 = vsyncpa [#allocation3], 1 }
 0x5e7   :  { %2215 = vsyncpa [#allocation6], 1 }
 0x5e8   :  { %2216 = vsyncpa [#allocation9], 1 }
 0x5e9   :  { %2217 = vsyncpa [#allocation4], 1 }

</bundles_post_ra>
